<compile_context>
chip_gen: v6e
topology: v6e:2x2x1
jax: 0.10.0
libtpu: 0.0.40
codegen_flags: <defaults>
</compile_context>

<pallas_src>
import functools

import jax
import jax.numpy as jnp
from jax.experimental import pallas as pl
from jax.experimental.pallas import tpu as pltpu


# ----------------------------------------------------------------------------
# Pallas kernels
# ----------------------------------------------------------------------------
def _conv_pool_kernel(p_ref, w_ref, b_ref, o_ref, *, n_pool):
    """Fused conv + bias + ReLU + maxpool, lane-dense.

    p_ref: (PP, K, M)  im2col patches, one slab per pool-window offset
    w_ref: (Cout, K)   conv weights
    b_ref: (Cout, 1)   bias
    o_ref: (Cout, M)   pooled, activated output (M = N*PH*PW on lanes)
    """
    w = w_ref[...]
    acc = jnp.dot(w, p_ref[0], preferred_element_type=jnp.float32)
    for t in range(1, n_pool):
        acc = jnp.maximum(
            acc, jnp.dot(w, p_ref[t], preferred_element_type=jnp.float32))
    o_ref[...] = jnp.maximum(acc + b_ref[...], 0.0)


def _matmul_bias_act_kernel(w_ref, p_ref, b_ref, o_ref, *, act):
    """Lane-dense (Cout, K) @ (K, TM) + bias with fused activation."""
    y = jnp.dot(w_ref[...], p_ref[...], preferred_element_type=jnp.float32)
    y = y + b_ref[...]
    if act == "relu":
        y = jnp.maximum(y, 0.0)
    elif act == "tanh":
        y = jnp.tanh(y)
    o_ref[...] = y.astype(o_ref.dtype)


# ----------------------------------------------------------------------------
# Pallas wrappers
# ----------------------------------------------------------------------------
def _pick_m_tiling(m, target=1024, max_blocks=4):
    """Pick a lane-aligned (multiple of 128) tile of M; returns (tile_m, nblocks)."""
    if m <= target:
        return m, 1
    m_pad = -(-m // 128) * 128
    chunks = m_pad // 128
    nblocks = min(max_blocks, m_pad // target)
    while chunks % nblocks:
        nblocks -= 1
    return m_pad // nblocks, nblocks


def matmul_bias_act(wt, pt, b, act):
    """(Cout, K) @ (K, M) + bias, fused activation, tiled over M (lane axis)."""
    cout, kdim = wt.shape
    _, m = pt.shape
    b2 = b.reshape(cout, 1)
    tm, nb = _pick_m_tiling(m)
    m_pad = tm * nb
    if m_pad != m:
        pt = jnp.pad(pt, ((0, 0), (0, m_pad - m)))
    out = pl.pallas_call(
        functools.partial(_matmul_bias_act_kernel, act=act),
        out_shape=jax.ShapeDtypeStruct((cout, m_pad), jnp.float32),
        grid=(nb,),
        in_specs=[
            pl.BlockSpec((cout, kdim), lambda i: (0, 0)),
            pl.BlockSpec((kdim, tm), lambda i: (0, i)),
            pl.BlockSpec((cout, 1), lambda i: (0, 0)),
        ],
        out_specs=pl.BlockSpec((cout, tm), lambda i: (0, i)),
        compiler_params=pltpu.CompilerParams(
            dimension_semantics=("parallel",)),
    )(wt, pt, b2)
    if m_pad != m:
        out = out[:, :m]
    return out


def encoder_stage(x, w, b, *, conv_stride, conv_pad, pool_k, pool_stride):
    """Conv2d(stride, pad) + ReLU + MaxPool2d(pool_k, pool_stride).  NHWC in/out.

    The pool window is composed into the im2col extraction so the whole stage
    is a single fused Pallas kernel with a lane-dense (Cout, M) output.
    """
    cout, cin, kh, kw = w.shape
    n, h, wd, c = x.shape
    assert c == cin
    sc, p, sp = conv_stride, conv_pad, pool_stride

    xp = jnp.pad(x, ((0, 0), (p, p), (p, p), (0, 0)))
    ohc = (h + 2 * p - kh) // sc + 1
    owc = (wd + 2 * p - kw) // sc + 1
    # conv im2col patches: (N, OHc, OWc, KH*KW, Cin)
    slabs = [xp[:, i:i + sc * (ohc - 1) + 1:sc, j:j + sc * (owc - 1) + 1:sc, :]
             for i in range(kh) for j in range(kw)]
    pc = jnp.stack(slabs, axis=3)
    # compose the pool window offsets: (PP, N, PH, PW, KH*KW, Cin)
    ph = (ohc - pool_k) // sp + 1
    pw = (owc - pool_k) // sp + 1
    pooled = [pc[:, pi:pi + sp * (ph - 1) + 1:sp, pj:pj + sp * (pw - 1) + 1:sp]
              for pi in range(pool_k) for pj in range(pool_k)]
    pp = jnp.stack(pooled, axis=0)

    kdim = kh * kw * cin
    m = n * ph * pw
    npool = pool_k * pool_k
    # -> (PP, K, M): K on sublanes, big M on lanes.
    patches = jnp.transpose(pp, (0, 4, 5, 1, 2, 3)).reshape(npool, kdim, m)

    wt = jnp.transpose(w, (0, 2, 3, 1)).reshape(cout, kdim)
    b2 = b.reshape(cout, 1)

    out = pl.pallas_call(
        functools.partial(_conv_pool_kernel, n_pool=npool),
        out_shape=jax.ShapeDtypeStruct((cout, m), jnp.float32),
        grid=(1,),
        in_specs=[
            pl.BlockSpec((npool, kdim, m), lambda i: (0, 0, 0)),
            pl.BlockSpec((cout, kdim), lambda i: (0, 0)),
            pl.BlockSpec((cout, 1), lambda i: (0, 0)),
        ],
        out_specs=pl.BlockSpec((cout, m), lambda i: (0, 0)),
    )(patches, wt, b2)
    return out.reshape(cout, n, ph, pw).transpose(1, 2, 3, 0)


def conv_transpose(x, w, b, *, stride, padding, act):
    """ConvTranspose2d (PyTorch semantics), NHWC in/out, fused bias + activation.

    Implemented as: dilate + edge-pad the input (one lax.pad), im2col into a
    lane-dense (K, M) patch matrix, and run the channel-swapped, spatially
    flipped kernel as a single (Cout, K) @ (K, M) Pallas matmul (tiled over M).
    """
    cin, cout, kh, kw = w.shape
    n, h, wd, c = x.shape
    assert c == cin
    pad_h = kh - 1 - padding
    pad_w = kw - 1 - padding
    assert pad_h >= 0 and pad_w >= 0

    xdp = jax.lax.pad(
        x, jnp.array(0.0, x.dtype),
        ((0, 0, 0),
         (pad_h, pad_h, stride - 1),
         (pad_w, pad_w, stride - 1),
         (0, 0, 0)))
    oh = (h - 1) * stride + kh - 2 * padding
    ow = (wd - 1) * stride + kw - 2 * padding

    slabs = [xdp[:, i:i + oh, j:j + ow, :] for i in range(kh) for j in range(kw)]
    pc = jnp.stack(slabs, axis=0)                       # (KK, N, OH, OW, Cin)
    kdim = kh * kw * cin
    m = n * oh * ow
    patches = jnp.transpose(pc, (0, 4, 1, 2, 3)).reshape(kdim, m)

    wc = jnp.flip(jnp.transpose(w, (1, 0, 2, 3)), axis=(2, 3))  # (Cout,Cin,KH,KW)
    wt = jnp.transpose(wc, (0, 2, 3, 1)).reshape(cout, kdim)

    y = matmul_bias_act(wt, patches, b, act)                    # (Cout, M)
    return y.reshape(cout, n, oh, ow).transpose(1, 2, 3, 0)


# ----------------------------------------------------------------------------
# Model: parameters + forward
# ----------------------------------------------------------------------------
def init_params(key):
    def conv_p(k, cout, cin, kh, kw):
        k1, k2 = jax.random.split(k)
        bound = 1.0 / (cin * kh * kw) ** 0.5
        w = jax.random.uniform(k1, (cout, cin, kh, kw), jnp.float32, -bound, bound)
        b = jax.random.uniform(k2, (cout,), jnp.float32, -bound, bound)
        return w, b

    def convT_p(k, cin, cout, kh, kw):
        k1, k2 = jax.random.split(k)
        bound = 1.0 / (cout * kh * kw) ** 0.5
        w = jax.random.uniform(k1, (cin, cout, kh, kw), jnp.float32, -bound, bound)
        b = jax.random.uniform(k2, (cout,), jnp.float32, -bound, bound)
        return w, b

    ks = jax.random.split(key, 7)
    return {
        "enc1": conv_p(ks[0], 16, 1, 3, 3),
        "enc2": conv_p(ks[1], 16, 16, 3, 3),
        "enc3": conv_p(ks[2], 8, 16, 3, 3),
        "dec1": convT_p(ks[3], 8, 16, 3, 3),
        "dec2": convT_p(ks[4], 16, 16, 3, 3),
        "dec3": convT_p(ks[5], 16, 8, 5, 5),
        "dec4": convT_p(ks[6], 8, 1, 2, 2),
    }


@jax.jit
def celeba_autoencoder(x_nchw, params):
    x = jnp.transpose(x_nchw, (0, 2, 3, 1))  # NCHW -> NHWC

    # ----- encoder: three fused conv + ReLU + maxpool stages -----
    h = encoder_stage(x, *params["enc1"],
                      conv_stride=3, conv_pad=1, pool_k=2, pool_stride=2)
    h = encoder_stage(h, *params["enc2"],
                      conv_stride=2, conv_pad=1, pool_k=2, pool_stride=1)
    h = encoder_stage(h, *params["enc3"],
                      conv_stride=2, conv_pad=1, pool_k=2, pool_stride=1)
    encoded = h

    # ----- decoder: four transposed convolutions -----
    d = conv_transpose(encoded, *params["dec1"], stride=2, padding=0, act="relu")
    d = conv_transpose(d, *params["dec2"], stride=2, padding=0, act="relu")
    d = conv_transpose(d, *params["dec3"], stride=3, padding=1, act="relu")
    d = conv_transpose(d, *params["dec4"], stride=2, padding=1, act="tanh")

    enc_nchw = jnp.transpose(encoded, (0, 3, 1, 2))
    dec_nchw = jnp.transpose(d, (0, 3, 1, 2))
    return enc_nchw, dec_nchw


# ----------------------------------------------------------------------------
# Pure-XLA reference (lax convs) for structural validation of the Pallas path
# ----------------------------------------------------------------------------
def reference_forward(x_nchw, params):
    x = jnp.transpose(x_nchw, (0, 2, 3, 1))
    dn = ("NHWC", "HWIO", "NHWC")

    def conv(h, w, b, s, p):
        y = jax.lax.conv_general_dilated(
            h, jnp.transpose(w, (2, 3, 1, 0)), (s, s), [(p, p), (p, p)],
            dimension_numbers=dn)
        return jax.nn.relu(y + b)

    def pool(h, k, s):
        return jax.lax.reduce_window(
            h, -jnp.inf, jax.lax.max, (1, k, k, 1), (1, s, s, 1), "VALID")

    def convt(h, w, b, s, p, act):
        kh = w.shape[2]
        wc = jnp.flip(jnp.transpose(w, (1, 0, 2, 3)), axis=(2, 3))
        y = jax.lax.conv_general_dilated(
            h, jnp.transpose(wc, (2, 3, 1, 0)), (1, 1),
            [(kh - 1 - p, kh - 1 - p)] * 2, lhs_dilation=(s, s),
            dimension_numbers=dn)
        y = y + b
        return jax.nn.relu(y) if act == "relu" else jnp.tanh(y)

    h = pool(conv(x, *params["enc1"], 3, 1), 2, 2)
    h = pool(conv(h, *params["enc2"], 2, 1), 2, 1)
    h = pool(conv(h, *params["enc3"], 2, 1), 2, 1)
    enc = h
    d = convt(enc, *params["dec1"], 2, 0, "relu")
    d = convt(d, *params["dec2"], 2, 0, "relu")
    d = convt(d, *params["dec3"], 3, 1, "relu")
    d = convt(d, *params["dec4"], 2, 1, "tanh")
    return jnp.transpose(enc, (0, 3, 1, 2)), jnp.transpose(d, (0, 3, 1, 2))


if __name__ == "__main__":
    key = jax.random.PRNGKey(0)
    k_param, k_x = jax.random.split(key)
    params = init_params(k_param)

    # CELEBA-style single-channel input; 64x64 keeps every strided layer valid.
    x = jax.random.normal(k_x, (2, 1, 64, 64), jnp.float32)

    encoded, decoded = celeba_autoencoder(x, params)
    jax.block_until_ready((encoded, decoded))

    assert encoded.shape == (2, 8, 2, 2), encoded.shape
    assert decoded.shape == (2, 1, 64, 64), decoded.shape
    assert bool(jnp.all(encoded >= 0.0))           # post-ReLU
    assert bool(jnp.all(jnp.abs(decoded) <= 1.0))  # post-tanh

    # Structural check vs. the XLA reference (loose tolerance: MXU matmul pass
    # decomposition may differ slightly between the Pallas and XLA paths).
    enc_ref, dec_ref = reference_forward(x, params)
    assert bool(jnp.allclose(encoded, enc_ref, rtol=0.1, atol=0.1))
    assert bool(jnp.allclose(decoded, dec_ref, rtol=0.1, atol=0.1))

    print("KERNEL_OK")
</pallas_src>

<mosaic_0001>
module attributes {stable_mosaic.version = 11 : i64} {
  func.func @_conv_pool_kernel(%arg0: i32, %arg1: memref<4x9x242xf32, #tpu.memory_space<vmem>>, %arg2: memref<16x9xf32, #tpu.memory_space<vmem>>, %arg3: memref<16x1xf32, #tpu.memory_space<vmem>>, %arg4: memref<16x242xf32, #tpu.memory_space<vmem>>) attributes {dimension_semantics = [#tpu.dimension_semantics<arbitrary>], iteration_bounds = array<i64: 1>, scalar_prefetch = 0 : i64, scratch_operands = 0 : i64, tpu.core_type = #tpu.core_type<tc>, window_params = [{pipeline_mode = #tpu.pipeline_mode<synchronous>, transform_indices = @transform_0, window_bounds = array<i64: 4, 9, 242>}, {pipeline_mode = #tpu.pipeline_mode<synchronous>, transform_indices = @transform_1, window_bounds = array<i64: 16, 9>}, {pipeline_mode = #tpu.pipeline_mode<synchronous>, transform_indices = @transform_2, window_bounds = array<i64: 16, 1>}, {pipeline_mode = #tpu.pipeline_mode<synchronous>, transform_indices = @transform_3, window_bounds = array<i64: 16, 242>}]} {
    %c0 = arith.constant 0 : index
    %c0_0 = arith.constant 0 : index
    %0 = vector.load %arg2[%c0, %c0_0] : memref<16x9xf32, #tpu.memory_space<vmem>>, vector<16x9xf32>
    %c0_1 = arith.constant 0 : index
    %c0_2 = arith.constant 0 : index
    %c0_3 = arith.constant 0 : index
    %1 = vector.load %arg1[%c0_1, %c0_2, %c0_3] : memref<4x9x242xf32, #tpu.memory_space<vmem>>, vector<1x9x242xf32>
    %2 = vector.shape_cast %1 : vector<1x9x242xf32> to vector<9x242xf32>
    %cst = arith.constant dense<0.000000e+00> : vector<16x242xf32>
    %3 = tpu.matmul %0, %2, %cst {dimension_numbers = #tpu.dot_dimension_numbers<[1], [0], [0], [1], [0, 0, 1, 1], [], []>} : vector<16x9xf32>, vector<9x242xf32>, vector<16x242xf32> -> vector<16x242xf32>
    %c1 = arith.constant 1 : index
    %c0_4 = arith.constant 0 : index
    %c0_5 = arith.constant 0 : index
    %4 = vector.load %arg1[%c1, %c0_4, %c0_5] : memref<4x9x242xf32, #tpu.memory_space<vmem>>, vector<1x9x242xf32>
    %5 = vector.shape_cast %4 : vector<1x9x242xf32> to vector<9x242xf32>
    %cst_6 = arith.constant dense<0.000000e+00> : vector<16x242xf32>
    %6 = tpu.matmul %0, %5, %cst_6 {dimension_numbers = #tpu.dot_dimension_numbers<[1], [0], [0], [1], [0, 0, 1, 1], [], []>} : vector<16x9xf32>, vector<9x242xf32>, vector<16x242xf32> -> vector<16x242xf32>
    %7 = arith.maximumf %3, %6 : vector<16x242xf32>
    %c2 = arith.constant 2 : index
    %c0_7 = arith.constant 0 : index
    %c0_8 = arith.constant 0 : index
    %8 = vector.load %arg1[%c2, %c0_7, %c0_8] : memref<4x9x242xf32, #tpu.memory_space<vmem>>, vector<1x9x242xf32>
    %9 = vector.shape_cast %8 : vector<1x9x242xf32> to vector<9x242xf32>
    %cst_9 = arith.constant dense<0.000000e+00> : vector<16x242xf32>
    %10 = tpu.matmul %0, %9, %cst_9 {dimension_numbers = #tpu.dot_dimension_numbers<[1], [0], [0], [1], [0, 0, 1, 1], [], []>} : vector<16x9xf32>, vector<9x242xf32>, vector<16x242xf32> -> vector<16x242xf32>
    %11 = arith.maximumf %7, %10 : vector<16x242xf32>
    %c3 = arith.constant 3 : index
    %c0_10 = arith.constant 0 : index
    %c0_11 = arith.constant 0 : index
    %12 = vector.load %arg1[%c3, %c0_10, %c0_11] : memref<4x9x242xf32, #tpu.memory_space<vmem>>, vector<1x9x242xf32>
    %13 = vector.shape_cast %12 : vector<1x9x242xf32> to vector<9x242xf32>
    %cst_12 = arith.constant dense<0.000000e+00> : vector<16x242xf32>
    %14 = tpu.matmul %0, %13, %cst_12 {dimension_numbers = #tpu.dot_dimension_numbers<[1], [0], [0], [1], [0, 0, 1, 1], [], []>} : vector<16x9xf32>, vector<9x242xf32>, vector<16x242xf32> -> vector<16x242xf32>
    %15 = arith.maximumf %11, %14 : vector<16x242xf32>
    %c0_13 = arith.constant 0 : index
    %c0_14 = arith.constant 0 : index
    %16 = vector.load %arg3[%c0_13, %c0_14] : memref<16x1xf32, #tpu.memory_space<vmem>>, vector<16x1xf32>
    %17 = vector.broadcast %16 : vector<16x1xf32> to vector<16x242xf32>
    %18 = arith.addf %15, %17 : vector<16x242xf32>
    %cst_15 = arith.constant 0.000000e+00 : f32
    %19 = vector.broadcast %cst_15 : f32 to vector<16x242xf32>
    %20 = arith.maximumf %18, %19 : vector<16x242xf32>
    %c0_16 = arith.constant 0 : index
    %c0_17 = arith.constant 0 : index
    %21 = vector.load %arg4[%c0_16, %c0_17] : memref<16x242xf32, #tpu.memory_space<vmem>>, vector<16x242xf32>
    tpu.vector_store %arg4[%c0_16, %c0_17], %20 {strides = array<i32>} : memref<16x242xf32, #tpu.memory_space<vmem>>, vector<16x242xf32>,
    return
  }
  func.func @transform_0(%arg0: i32) -> (i32, i32, i32) {
    %c0_i32 = arith.constant 0 : i32
    %c0_i32_0 = arith.constant 0 : i32
    %c0_i32_1 = arith.constant 0 : i32
    %c0_i32_2 = arith.constant 0 : i32
    return %c0_i32, %c0_i32_0, %c0_i32_1 : i32, i32, i32
  }
  func.func @transform_1(%arg0: i32) -> (i32, i32) {
    %c0_i32 = arith.constant 0 : i32
    %c0_i32_0 = arith.constant 0 : i32
    %c0_i32_1 = arith.constant 0 : i32
    return %c0_i32, %c0_i32_0 : i32, i32
  }
  func.func @transform_2(%arg0: i32) -> (i32, i32) {
    %c0_i32 = arith.constant 0 : i32
    %c0_i32_0 = arith.constant 0 : i32
    %c0_i32_1 = arith.constant 0 : i32
    return %c0_i32, %c0_i32_0 : i32, i32
  }
  func.func @transform_3(%arg0: i32) -> (i32, i32) {
    %c0_i32 = arith.constant 0 : i32
    %c0_i32_0 = arith.constant 0 : i32
    %c0_i32_1 = arith.constant 0 : i32
    return %c0_i32, %c0_i32_0 : i32, i32
  }
}

module attributes {stable_mosaic.version = 11 : i64} {
  func.func @_conv_pool_kernel(%arg0: i32, %arg1: memref<4x144x50xf32, #tpu.memory_space<vmem>>, %arg2: memref<16x144xf32, #tpu.memory_space<vmem>>, %arg3: memref<16x1xf32, #tpu.memory_space<vmem>>, %arg4: memref<16x50xf32, #tpu.memory_space<vmem>>) attributes {dimension_semantics = [#tpu.dimension_semantics<arbitrary>], iteration_bounds = array<i64: 1>, scalar_prefetch = 0 : i64, scratch_operands = 0 : i64, tpu.core_type = #tpu.core_type<tc>, window_params = [{pipeline_mode = #tpu.pipeline_mode<synchronous>, transform_indices = @transform_0, window_bounds = array<i64: 4, 144, 50>}, {pipeline_mode = #tpu.pipeline_mode<synchronous>, transform_indices = @transform_1, window_bounds = array<i64: 16, 144>}, {pipeline_mode = #tpu.pipeline_mode<synchronous>, transform_indices = @transform_2, window_bounds = array<i64: 16, 1>}, {pipeline_mode = #tpu.pipeline_mode<synchronous>, transform_indices = @transform_3, window_bounds = array<i64: 16, 50>}]} {
    %c0 = arith.constant 0 : index
    %c0_0 = arith.constant 0 : index
    %0 = vector.load %arg2[%c0, %c0_0] : memref<16x144xf32, #tpu.memory_space<vmem>>, vector<16x144xf32>
    %c0_1 = arith.constant 0 : index
    %c0_2 = arith.constant 0 : index
    %c0_3 = arith.constant 0 : index
    %1 = vector.load %arg1[%c0_1, %c0_2, %c0_3] : memref<4x144x50xf32, #tpu.memory_space<vmem>>, vector<1x144x50xf32>
    %2 = vector.shape_cast %1 : vector<1x144x50xf32> to vector<144x50xf32>
    %cst = arith.constant dense<0.000000e+00> : vector<16x50xf32>
    %3 = tpu.matmul %0, %2, %cst {dimension_numbers = #tpu.dot_dimension_numbers<[1], [0], [0], [1], [0, 0, 1, 1], [], []>} : vector<16x144xf32>, vector<144x50xf32>, vector<16x50xf32> -> vector<16x50xf32>
    %c1 = arith.constant 1 : index
    %c0_4 = arith.constant 0 : index
    %c0_5 = arith.constant 0 : index
    %4 = vector.load %arg1[%c1, %c0_4, %c0_5] : memref<4x144x50xf32, #tpu.memory_space<vmem>>, vector<1x144x50xf32>
    %5 = vector.shape_cast %4 : vector<1x144x50xf32> to vector<144x50xf32>
    %cst_6 = arith.constant dense<0.000000e+00> : vector<16x50xf32>
    %6 = tpu.matmul %0, %5, %cst_6 {dimension_numbers = #tpu.dot_dimension_numbers<[1], [0], [0], [1], [0, 0, 1, 1], [], []>} : vector<16x144xf32>, vector<144x50xf32>, vector<16x50xf32> -> vector<16x50xf32>
    %7 = arith.maximumf %3, %6 : vector<16x50xf32>
    %c2 = arith.constant 2 : index
    %c0_7 = arith.constant 0 : index
    %c0_8 = arith.constant 0 : index
    %8 = vector.load %arg1[%c2, %c0_7, %c0_8] : memref<4x144x50xf32, #tpu.memory_space<vmem>>, vector<1x144x50xf32>
    %9 = vector.shape_cast %8 : vector<1x144x50xf32> to vector<144x50xf32>
    %cst_9 = arith.constant dense<0.000000e+00> : vector<16x50xf32>
    %10 = tpu.matmul %0, %9, %cst_9 {dimension_numbers = #tpu.dot_dimension_numbers<[1], [0], [0], [1], [0, 0, 1, 1], [], []>} : vector<16x144xf32>, vector<144x50xf32>, vector<16x50xf32> -> vector<16x50xf32>
    %11 = arith.maximumf %7, %10 : vector<16x50xf32>
    %c3 = arith.constant 3 : index
    %c0_10 = arith.constant 0 : index
    %c0_11 = arith.constant 0 : index
    %12 = vector.load %arg1[%c3, %c0_10, %c0_11] : memref<4x144x50xf32, #tpu.memory_space<vmem>>, vector<1x144x50xf32>
    %13 = vector.shape_cast %12 : vector<1x144x50xf32> to vector<144x50xf32>
    %cst_12 = arith.constant dense<0.000000e+00> : vector<16x50xf32>
    %14 = tpu.matmul %0, %13, %cst_12 {dimension_numbers = #tpu.dot_dimension_numbers<[1], [0], [0], [1], [0, 0, 1, 1], [], []>} : vector<16x144xf32>, vector<144x50xf32>, vector<16x50xf32> -> vector<16x50xf32>
    %15 = arith.maximumf %11, %14 : vector<16x50xf32>
    %c0_13 = arith.constant 0 : index
    %c0_14 = arith.constant 0 : index
    %16 = vector.load %arg3[%c0_13, %c0_14] : memref<16x1xf32, #tpu.memory_space<vmem>>, vector<16x1xf32>
    %17 = vector.broadcast %16 : vector<16x1xf32> to vector<16x50xf32>
    %18 = arith.addf %15, %17 : vector<16x50xf32>
    %cst_15 = arith.constant 0.000000e+00 : f32
    %19 = vector.broadcast %cst_15 : f32 to vector<16x50xf32>
    %20 = arith.maximumf %18, %19 : vector<16x50xf32>
    %c0_16 = arith.constant 0 : index
    %c0_17 = arith.constant 0 : index
    %21 = vector.load %arg4[%c0_16, %c0_17] : memref<16x50xf32, #tpu.memory_space<vmem>>, vector<16x50xf32>
    tpu.vector_store %arg4[%c0_16, %c0_17], %20 {strides = array<i32>} : memref<16x50xf32, #tpu.memory_space<vmem>>, vector<16x50xf32>,
    return
  }
  func.func @transform_0(%arg0: i32) -> (i32, i32, i32) {
    %c0_i32 = arith.constant 0 : i32
    %c0_i32_0 = arith.constant 0 : i32
    %c0_i32_1 = arith.constant 0 : i32
    %c0_i32_2 = arith.constant 0 : i32
    return %c0_i32, %c0_i32_0, %c0_i32_1 : i32, i32, i32
  }
  func.func @transform_1(%arg0: i32) -> (i32, i32) {
    %c0_i32 = arith.constant 0 : i32
    %c0_i32_0 = arith.constant 0 : i32
    %c0_i32_1 = arith.constant 0 : i32
    return %c0_i32, %c0_i32_0 : i32, i32
  }
  func.func @transform_2(%arg0: i32) -> (i32, i32) {
    %c0_i32 = arith.constant 0 : i32
    %c0_i32_0 = arith.constant 0 : i32
    %c0_i32_1 = arith.constant 0 : i32
    return %c0_i32, %c0_i32_0 : i32, i32
  }
  func.func @transform_3(%arg0: i32) -> (i32, i32) {
    %c0_i32 = arith.constant 0 : i32
    %c0_i32_0 = arith.constant 0 : i32
    %c0_i32_1 = arith.constant 0 : i32
    return %c0_i32, %c0_i32_0 : i32, i32
  }
}

module attributes {stable_mosaic.version = 11 : i64} {
  func.func @_conv_pool_kernel(%arg0: i32, %arg1: memref<4x144x8xf32, #tpu.memory_space<vmem>>, %arg2: memref<8x144xf32, #tpu.memory_space<vmem>>, %arg3: memref<8x1xf32, #tpu.memory_space<vmem>>, %arg4: memref<8x8xf32, #tpu.memory_space<vmem>>) attributes {dimension_semantics = [#tpu.dimension_semantics<arbitrary>], iteration_bounds = array<i64: 1>, scalar_prefetch = 0 : i64, scratch_operands = 0 : i64, tpu.core_type = #tpu.core_type<tc>, window_params = [{pipeline_mode = #tpu.pipeline_mode<synchronous>, transform_indices = @transform_0, window_bounds = array<i64: 4, 144, 8>}, {pipeline_mode = #tpu.pipeline_mode<synchronous>, transform_indices = @transform_1, window_bounds = array<i64: 8, 144>}, {pipeline_mode = #tpu.pipeline_mode<synchronous>, transform_indices = @transform_2, window_bounds = array<i64: 8, 1>}, {pipeline_mode = #tpu.pipeline_mode<synchronous>, transform_indices = @transform_3, window_bounds = array<i64: 8, 8>}]} {
    %c0 = arith.constant 0 : index
    %c0_0 = arith.constant 0 : index
    %0 = vector.load %arg2[%c0, %c0_0] : memref<8x144xf32, #tpu.memory_space<vmem>>, vector<8x144xf32>
    %c0_1 = arith.constant 0 : index
    %c0_2 = arith.constant 0 : index
    %c0_3 = arith.constant 0 : index
    %1 = vector.load %arg1[%c0_1, %c0_2, %c0_3] : memref<4x144x8xf32, #tpu.memory_space<vmem>>, vector<1x144x8xf32>
    %2 = vector.shape_cast %1 : vector<1x144x8xf32> to vector<144x8xf32>
    %cst = arith.constant dense<0.000000e+00> : vector<8x8xf32>
    %3 = tpu.matmul %0, %2, %cst {dimension_numbers = #tpu.dot_dimension_numbers<[1], [0], [0], [1], [0, 0, 1, 1], [], []>} : vector<8x144xf32>, vector<144x8xf32>, vector<8x8xf32> -> vector<8x8xf32>
    %c1 = arith.constant 1 : index
    %c0_4 = arith.constant 0 : index
    %c0_5 = arith.constant 0 : index
    %4 = vector.load %arg1[%c1, %c0_4, %c0_5] : memref<4x144x8xf32, #tpu.memory_space<vmem>>, vector<1x144x8xf32>
    %5 = vector.shape_cast %4 : vector<1x144x8xf32> to vector<144x8xf32>
    %cst_6 = arith.constant dense<0.000000e+00> : vector<8x8xf32>
    %6 = tpu.matmul %0, %5, %cst_6 {dimension_numbers = #tpu.dot_dimension_numbers<[1], [0], [0], [1], [0, 0, 1, 1], [], []>} : vector<8x144xf32>, vector<144x8xf32>, vector<8x8xf32> -> vector<8x8xf32>
    %7 = arith.maximumf %3, %6 : vector<8x8xf32>
    %c2 = arith.constant 2 : index
    %c0_7 = arith.constant 0 : index
    %c0_8 = arith.constant 0 : index
    %8 = vector.load %arg1[%c2, %c0_7, %c0_8] : memref<4x144x8xf32, #tpu.memory_space<vmem>>, vector<1x144x8xf32>
    %9 = vector.shape_cast %8 : vector<1x144x8xf32> to vector<144x8xf32>
    %cst_9 = arith.constant dense<0.000000e+00> : vector<8x8xf32>
    %10 = tpu.matmul %0, %9, %cst_9 {dimension_numbers = #tpu.dot_dimension_numbers<[1], [0], [0], [1], [0, 0, 1, 1], [], []>} : vector<8x144xf32>, vector<144x8xf32>, vector<8x8xf32> -> vector<8x8xf32>
    %11 = arith.maximumf %7, %10 : vector<8x8xf32>
    %c3 = arith.constant 3 : index
    %c0_10 = arith.constant 0 : index
    %c0_11 = arith.constant 0 : index
    %12 = vector.load %arg1[%c3, %c0_10, %c0_11] : memref<4x144x8xf32, #tpu.memory_space<vmem>>, vector<1x144x8xf32>
    %13 = vector.shape_cast %12 : vector<1x144x8xf32> to vector<144x8xf32>
    %cst_12 = arith.constant dense<0.000000e+00> : vector<8x8xf32>
    %14 = tpu.matmul %0, %13, %cst_12 {dimension_numbers = #tpu.dot_dimension_numbers<[1], [0], [0], [1], [0, 0, 1, 1], [], []>} : vector<8x144xf32>, vector<144x8xf32>, vector<8x8xf32> -> vector<8x8xf32>
    %15 = arith.maximumf %11, %14 : vector<8x8xf32>
    %c0_13 = arith.constant 0 : index
    %c0_14 = arith.constant 0 : index
    %16 = vector.load %arg3[%c0_13, %c0_14] : memref<8x1xf32, #tpu.memory_space<vmem>>, vector<8x1xf32>
    %17 = vector.broadcast %16 : vector<8x1xf32> to vector<8x8xf32>
    %18 = arith.addf %15, %17 : vector<8x8xf32>
    %cst_15 = arith.constant 0.000000e+00 : f32
    %19 = vector.broadcast %cst_15 : f32 to vector<8x8xf32>
    %20 = arith.maximumf %18, %19 : vector<8x8xf32>
    %c0_16 = arith.constant 0 : index
    %c0_17 = arith.constant 0 : index
    %21 = vector.load %arg4[%c0_16, %c0_17] : memref<8x8xf32, #tpu.memory_space<vmem>>, vector<8x8xf32>
    tpu.vector_store %arg4[%c0_16, %c0_17], %20 {strides = array<i32>} : memref<8x8xf32, #tpu.memory_space<vmem>>, vector<8x8xf32>,
    return
  }
  func.func @transform_0(%arg0: i32) -> (i32, i32, i32) {
    %c0_i32 = arith.constant 0 : i32
    %c0_i32_0 = arith.constant 0 : i32
    %c0_i32_1 = arith.constant 0 : i32
    %c0_i32_2 = arith.constant 0 : i32
    return %c0_i32, %c0_i32_0, %c0_i32_1 : i32, i32, i32
  }
  func.func @transform_1(%arg0: i32) -> (i32, i32) {
    %c0_i32 = arith.constant 0 : i32
    %c0_i32_0 = arith.constant 0 : i32
    %c0_i32_1 = arith.constant 0 : i32
    return %c0_i32, %c0_i32_0 : i32, i32
  }
  func.func @transform_2(%arg0: i32) -> (i32, i32) {
    %c0_i32 = arith.constant 0 : i32
    %c0_i32_0 = arith.constant 0 : i32
    %c0_i32_1 = arith.constant 0 : i32
    return %c0_i32, %c0_i32_0 : i32, i32
  }
  func.func @transform_3(%arg0: i32) -> (i32, i32) {
    %c0_i32 = arith.constant 0 : i32
    %c0_i32_0 = arith.constant 0 : i32
    %c0_i32_1 = arith.constant 0 : i32
    return %c0_i32, %c0_i32_0 : i32, i32
  }
}

module attributes {stable_mosaic.version = 11 : i64} {
  func.func @_matmul_bias_act_kernel(%arg0: i32, %arg1: memref<16x72xf32, #tpu.memory_space<vmem>>, %arg2: memref<72x50xf32, #tpu.memory_space<vmem>>, %arg3: memref<16x1xf32, #tpu.memory_space<vmem>>, %arg4: memref<16x50xf32, #tpu.memory_space<vmem>>) attributes {dimension_semantics = [#tpu.dimension_semantics<parallel>], iteration_bounds = array<i64: 1>, scalar_prefetch = 0 : i64, scratch_operands = 0 : i64, tpu.core_type = #tpu.core_type<tc>, window_params = [{pipeline_mode = #tpu.pipeline_mode<synchronous>, transform_indices = @transform_0, window_bounds = array<i64: 16, 72>}, {transform_indices = @transform_1, window_bounds = array<i64: 72, 50>}, {pipeline_mode = #tpu.pipeline_mode<synchronous>, transform_indices = @transform_2, window_bounds = array<i64: 16, 1>}, {transform_indices = @transform_3, window_bounds = array<i64: 16, 50>}]} {
    %c0 = arith.constant 0 : index
    %c0_0 = arith.constant 0 : index
    %0 = vector.load %arg1[%c0, %c0_0] : memref<16x72xf32, #tpu.memory_space<vmem>>, vector<16x72xf32>
    %c0_1 = arith.constant 0 : index
    %c0_2 = arith.constant 0 : index
    %1 = vector.load %arg2[%c0_1, %c0_2] : memref<72x50xf32, #tpu.memory_space<vmem>>, vector<72x50xf32>
    %cst = arith.constant dense<0.000000e+00> : vector<16x50xf32>
    %2 = tpu.matmul %0, %1, %cst {dimension_numbers = #tpu.dot_dimension_numbers<[1], [0], [0], [1], [0, 0, 1, 1], [], []>} : vector<16x72xf32>, vector<72x50xf32>, vector<16x50xf32> -> vector<16x50xf32>
    %c0_3 = arith.constant 0 : index
    %c0_4 = arith.constant 0 : index
    %3 = vector.load %arg3[%c0_3, %c0_4] : memref<16x1xf32, #tpu.memory_space<vmem>>, vector<16x1xf32>
    %4 = vector.broadcast %3 : vector<16x1xf32> to vector<16x50xf32>
    %5 = arith.addf %2, %4 : vector<16x50xf32>
    %cst_5 = arith.constant 0.000000e+00 : f32
    %6 = vector.broadcast %cst_5 : f32 to vector<16x50xf32>
    %7 = arith.maximumf %5, %6 : vector<16x50xf32>
    %c0_6 = arith.constant 0 : index
    %c0_7 = arith.constant 0 : index
    %8 = vector.load %arg4[%c0_6, %c0_7] : memref<16x50xf32, #tpu.memory_space<vmem>>, vector<16x50xf32>
    tpu.vector_store %arg4[%c0_6, %c0_7], %7 {strides = array<i32>} : memref<16x50xf32, #tpu.memory_space<vmem>>, vector<16x50xf32>,
    return
  }
  func.func @transform_0(%arg0: i32) -> (i32, i32) {
    %c0_i32 = arith.constant 0 : i32
    %c0_i32_0 = arith.constant 0 : i32
    %c0_i32_1 = arith.constant 0 : i32
    return %c0_i32, %c0_i32_0 : i32, i32
  }
  func.func @transform_1(%arg0: i32) -> (i32, i32) {
    %c0_i32 = arith.constant 0 : i32
    %c0_i32_0 = arith.constant 0 : i32
    return %c0_i32, %arg0 : i32, i32
  }
  func.func @transform_2(%arg0: i32) -> (i32, i32) {
    %c0_i32 = arith.constant 0 : i32
    %c0_i32_0 = arith.constant 0 : i32
    %c0_i32_1 = arith.constant 0 : i32
    return %c0_i32, %c0_i32_0 : i32, i32
  }
  func.func @transform_3(%arg0: i32) -> (i32, i32) {
    %c0_i32 = arith.constant 0 : i32
    %c0_i32_0 = arith.constant 0 : i32
    return %c0_i32, %arg0 : i32, i32
  }
}

module attributes {stable_mosaic.version = 11 : i64} {
  func.func @_matmul_bias_act_kernel(%arg0: i32, %arg1: memref<16x144xf32, #tpu.memory_space<vmem>>, %arg2: memref<144x242xf32, #tpu.memory_space<vmem>>, %arg3: memref<16x1xf32, #tpu.memory_space<vmem>>, %arg4: memref<16x242xf32, #tpu.memory_space<vmem>>) attributes {dimension_semantics = [#tpu.dimension_semantics<parallel>], iteration_bounds = array<i64: 1>, scalar_prefetch = 0 : i64, scratch_operands = 0 : i64, tpu.core_type = #tpu.core_type<tc>, window_params = [{pipeline_mode = #tpu.pipeline_mode<synchronous>, transform_indices = @transform_0, window_bounds = array<i64: 16, 144>}, {transform_indices = @transform_1, window_bounds = array<i64: 144, 242>}, {pipeline_mode = #tpu.pipeline_mode<synchronous>, transform_indices = @transform_2, window_bounds = array<i64: 16, 1>}, {transform_indices = @transform_3, window_bounds = array<i64: 16, 242>}]} {
    %c0 = arith.constant 0 : index
    %c0_0 = arith.constant 0 : index
    %0 = vector.load %arg1[%c0, %c0_0] : memref<16x144xf32, #tpu.memory_space<vmem>>, vector<16x144xf32>
    %c0_1 = arith.constant 0 : index
    %c0_2 = arith.constant 0 : index
    %1 = vector.load %arg2[%c0_1, %c0_2] : memref<144x242xf32, #tpu.memory_space<vmem>>, vector<144x242xf32>
    %cst = arith.constant dense<0.000000e+00> : vector<16x242xf32>
    %2 = tpu.matmul %0, %1, %cst {dimension_numbers = #tpu.dot_dimension_numbers<[1], [0], [0], [1], [0, 0, 1, 1], [], []>} : vector<16x144xf32>, vector<144x242xf32>, vector<16x242xf32> -> vector<16x242xf32>
    %c0_3 = arith.constant 0 : index
    %c0_4 = arith.constant 0 : index
    %3 = vector.load %arg3[%c0_3, %c0_4] : memref<16x1xf32, #tpu.memory_space<vmem>>, vector<16x1xf32>
    %4 = vector.broadcast %3 : vector<16x1xf32> to vector<16x242xf32>
    %5 = arith.addf %2, %4 : vector<16x242xf32>
    %cst_5 = arith.constant 0.000000e+00 : f32
    %6 = vector.broadcast %cst_5 : f32 to vector<16x242xf32>
    %7 = arith.maximumf %5, %6 : vector<16x242xf32>
    %c0_6 = arith.constant 0 : index
    %c0_7 = arith.constant 0 : index
    %8 = vector.load %arg4[%c0_6, %c0_7] : memref<16x242xf32, #tpu.memory_space<vmem>>, vector<16x242xf32>
    tpu.vector_store %arg4[%c0_6, %c0_7], %7 {strides = array<i32>} : memref<16x242xf32, #tpu.memory_space<vmem>>, vector<16x242xf32>,
    return
  }
  func.func @transform_0(%arg0: i32) -> (i32, i32) {
    %c0_i32 = arith.constant 0 : i32
    %c0_i32_0 = arith.constant 0 : i32
    %c0_i32_1 = arith.constant 0 : i32
    return %c0_i32, %c0_i32_0 : i32, i32
  }
  func.func @transform_1(%arg0: i32) -> (i32, i32) {
    %c0_i32 = arith.constant 0 : i32
    %c0_i32_0 = arith.constant 0 : i32
    return %c0_i32, %arg0 : i32, i32
  }
  func.func @transform_2(%arg0: i32) -> (i32, i32) {
    %c0_i32 = arith.constant 0 : i32
    %c0_i32_0 = arith.constant 0 : i32
    %c0_i32_1 = arith.constant 0 : i32
    return %c0_i32, %c0_i32_0 : i32, i32
  }
  func.func @transform_3(%arg0: i32) -> (i32, i32) {
    %c0_i32 = arith.constant 0 : i32
    %c0_i32_0 = arith.constant 0 : i32
    return %c0_i32, %arg0 : i32, i32
  }
}

module attributes {stable_mosaic.version = 11 : i64} {
  func.func @_matmul_bias_act_kernel(%arg0: i32, %arg1: memref<8x400xf32, #tpu.memory_space<vmem>>, %arg2: memref<400x1152xf32, #tpu.memory_space<vmem>>, %arg3: memref<8x1xf32, #tpu.memory_space<vmem>>, %arg4: memref<8x1152xf32, #tpu.memory_space<vmem>>) attributes {dimension_semantics = [#tpu.dimension_semantics<parallel>], iteration_bounds = array<i64: 2>, scalar_prefetch = 0 : i64, scratch_operands = 0 : i64, tpu.core_type = #tpu.core_type<tc>, window_params = [{pipeline_mode = #tpu.pipeline_mode<synchronous>, transform_indices = @transform_0, window_bounds = array<i64: 8, 400>}, {transform_indices = @transform_1, window_bounds = array<i64: 400, 1152>}, {pipeline_mode = #tpu.pipeline_mode<synchronous>, transform_indices = @transform_2, window_bounds = array<i64: 8, 1>}, {transform_indices = @transform_3, window_bounds = array<i64: 8, 1152>}]} {
    %c0 = arith.constant 0 : index
    %c0_0 = arith.constant 0 : index
    %0 = vector.load %arg1[%c0, %c0_0] : memref<8x400xf32, #tpu.memory_space<vmem>>, vector<8x400xf32>
    %c0_1 = arith.constant 0 : index
    %c0_2 = arith.constant 0 : index
    %1 = vector.load %arg2[%c0_1, %c0_2] : memref<400x1152xf32, #tpu.memory_space<vmem>>, vector<400x1152xf32>
    %cst = arith.constant dense<0.000000e+00> : vector<8x1152xf32>
    %2 = tpu.matmul %0, %1, %cst {dimension_numbers = #tpu.dot_dimension_numbers<[1], [0], [0], [1], [0, 0, 1, 1], [], []>} : vector<8x400xf32>, vector<400x1152xf32>, vector<8x1152xf32> -> vector<8x1152xf32>
    %c0_3 = arith.constant 0 : index
    %c0_4 = arith.constant 0 : index
    %3 = vector.load %arg3[%c0_3, %c0_4] : memref<8x1xf32, #tpu.memory_space<vmem>>, vector<8x1xf32>
    %4 = vector.broadcast %3 : vector<8x1xf32> to vector<8x1152xf32>
    %5 = arith.addf %2, %4 : vector<8x1152xf32>
    %cst_5 = arith.constant 0.000000e+00 : f32
    %6 = vector.broadcast %cst_5 : f32 to vector<8x1152xf32>
    %7 = arith.maximumf %5, %6 : vector<8x1152xf32>
    %c0_6 = arith.constant 0 : index
    %c0_7 = arith.constant 0 : index
    %8 = vector.load %arg4[%c0_6, %c0_7] : memref<8x1152xf32, #tpu.memory_space<vmem>>, vector<8x1152xf32>
    tpu.vector_store %arg4[%c0_6, %c0_7], %7 {strides = array<i32>} : memref<8x1152xf32, #tpu.memory_space<vmem>>, vector<8x1152xf32>,
    return
  }
  func.func @transform_0(%arg0: i32) -> (i32, i32) {
    %c0_i32 = arith.constant 0 : i32
    %c0_i32_0 = arith.constant 0 : i32
    %c0_i32_1 = arith.constant 0 : i32
    return %c0_i32, %c0_i32_0 : i32, i32
  }
  func.func @transform_1(%arg0: i32) -> (i32, i32) {
    %c0_i32 = arith.constant 0 : i32
    %c0_i32_0 = arith.constant 0 : i32
    return %c0_i32, %arg0 : i32, i32
  }
  func.func @transform_2(%arg0: i32) -> (i32, i32) {
    %c0_i32 = arith.constant 0 : i32
    %c0_i32_0 = arith.constant 0 : i32
    %c0_i32_1 = arith.constant 0 : i32
    return %c0_i32, %c0_i32_0 : i32, i32
  }
  func.func @transform_3(%arg0: i32) -> (i32, i32) {
    %c0_i32 = arith.constant 0 : i32
    %c0_i32_0 = arith.constant 0 : i32
    return %c0_i32, %arg0 : i32, i32
  }
}

module attributes {stable_mosaic.version = 11 : i64} {
  func.func @_matmul_bias_act_kernel(%arg0: i32, %arg1: memref<1x32xf32, #tpu.memory_space<vmem>>, %arg2: memref<32x2048xf32, #tpu.memory_space<vmem>>, %arg3: memref<1x1xf32, #tpu.memory_space<vmem>>, %arg4: memref<1x2048xf32, #tpu.memory_space<vmem>>) attributes {dimension_semantics = [#tpu.dimension_semantics<parallel>], iteration_bounds = array<i64: 4>, scalar_prefetch = 0 : i64, scratch_operands = 0 : i64, tpu.core_type = #tpu.core_type<tc>, window_params = [{pipeline_mode = #tpu.pipeline_mode<synchronous>, transform_indices = @transform_0, window_bounds = array<i64: 1, 32>}, {transform_indices = @transform_1, window_bounds = array<i64: 32, 2048>}, {pipeline_mode = #tpu.pipeline_mode<synchronous>, transform_indices = @transform_2, window_bounds = array<i64: 1, 1>}, {transform_indices = @transform_3, window_bounds = array<i64: 1, 2048>}]} {
    %c0 = arith.constant 0 : index
    %c0_0 = arith.constant 0 : index
    %0 = vector.load %arg1[%c0, %c0_0] : memref<1x32xf32, #tpu.memory_space<vmem>>, vector<1x32xf32>
    %c0_1 = arith.constant 0 : index
    %c0_2 = arith.constant 0 : index
    %1 = vector.load %arg2[%c0_1, %c0_2] : memref<32x2048xf32, #tpu.memory_space<vmem>>, vector<32x2048xf32>
    %cst = arith.constant dense<0.000000e+00> : vector<1x2048xf32>
    %2 = tpu.matmul %0, %1, %cst {dimension_numbers = #tpu.dot_dimension_numbers<[1], [0], [0], [1], [0, 0, 1, 1], [], []>} : vector<1x32xf32>, vector<32x2048xf32>, vector<1x2048xf32> -> vector<1x2048xf32>
    %c0_3 = arith.constant 0 : index
    %c0_4 = arith.constant 0 : index
    %3 = vector.load %arg3[%c0_3, %c0_4] : memref<1x1xf32, #tpu.memory_space<vmem>>, vector<1x1xf32>
    %4 = vector.broadcast %3 : vector<1x1xf32> to vector<1x2048xf32>
    %5 = arith.addf %2, %4 : vector<1x2048xf32>
    %6 = math.tanh %5 : vector<1x2048xf32>
    %c0_5 = arith.constant 0 : index
    %c0_6 = arith.constant 0 : index
    %7 = vector.load %arg4[%c0_5, %c0_6] : memref<1x2048xf32, #tpu.memory_space<vmem>>, vector<1x2048xf32>
    tpu.vector_store %arg4[%c0_5, %c0_6], %6 {strides = array<i32>} : memref<1x2048xf32, #tpu.memory_space<vmem>>, vector<1x2048xf32>,
    return
  }
  func.func @transform_0(%arg0: i32) -> (i32, i32) {
    %c0_i32 = arith.constant 0 : i32
    %c0_i32_0 = arith.constant 0 : i32
    %c0_i32_1 = arith.constant 0 : i32
    return %c0_i32, %c0_i32_0 : i32, i32
  }
  func.func @transform_1(%arg0: i32) -> (i32, i32) {
    %c0_i32 = arith.constant 0 : i32
    %c0_i32_0 = arith.constant 0 : i32
    return %c0_i32, %arg0 : i32, i32
  }
  func.func @transform_2(%arg0: i32) -> (i32, i32) {
    %c0_i32 = arith.constant 0 : i32
    %c0_i32_0 = arith.constant 0 : i32
    %c0_i32_1 = arith.constant 0 : i32
    return %c0_i32, %c0_i32_0 : i32, i32
  }
  func.func @transform_3(%arg0: i32) -> (i32, i32) {
    %c0_i32 = arith.constant 0 : i32
    %c0_i32_0 = arith.constant 0 : i32
    return %c0_i32, %arg0 : i32, i32
  }
}

</mosaic_0001>

<bundles_post_ra>
// kernel: celeba_autoencoder.7
= control target key start
LH: loop header
LB: loop body
LE: loop exit
PB: predicated region body
PF: predicated region fallthrough
CT: control target
= control target key end

     0   :  { %vm27_vm0 = vcmask 1040384   ;;  %v447_v3 = vmov 0.0   ;;  %vm20_vm1 = vcmask 72704   ;;  %v448_v20 = vmov 0   ;;  %s557_s0 = inlined_call_operand.vmem [shape: f32[4,9,242], index: 0, kind: input, shape index: {}]   ;;  %s558_s1 = inlined_call_operand.vmem [shape: f32[16,9], index: 1, kind: input, shape index: {}]   ;;  %s559_s2 = inlined_call_operand.vmem [shape: f32[16,1], index: 2, kind: input, shape index: {}]   ;;  %s560_s3 = inlined_call_operand.vmem [shape: f32[16,242], index: 3, kind: output, shape index: {}]  }
   0x1   :  { %v19_v0 = vld [vmem:[%s557_s0 + $0x18] sm:$0x1]  ;;  %v18_v2 = vld [vmem:[%s557_s0 + $0x10] sm:$0x1]  ;;  %98 = vmatprep.mubr.f32.mxu0 %v447_v3  ;;  %186 = vmatprep.mubr.f32.mxu1 %v447_v3  ;;  %v17_v5 = vld [vmem:[%s557_s0 + $0x8] sm:$0xff]  ;;  %vm408_vm2 = vcmask 932864  }
   0x2   :  { %v423_v1 = vld [vmem:[%s557_s0 + $0x38] sm:$0x1]  ;;  %416 = vmatprep.subr.msk.mxu0 %vm27_vm0, %v19_v0  ;;  %v422_v4 = vld [vmem:[%s557_s0 + $0x30] sm:$0x1]  ;;  %v421_v6 = vld [vmem:[%s557_s0 + $0x28] sm:$0xff]  ;;  %446 = vset.pattern.permute.xlu0 %v448_v20 }
   0x3   :  { %424 = vmatprep.subr.msk.mxu1 %vm27_vm0, %v423_v1  ;;  %417 = vmatpush1.msk.msra.mxu0 %vm27_vm0, %v18_v2  ;;  %v16_v7 = vld [vmem:[%s557_s0] sm:$0xff]  ;;  %v431_v10 = vld [vmem:[%s557_s0 + $0x58] sm:$0x1]  ;;  %v430_v12 = vld [vmem:[%s557_s0 + $0x50] sm:$0x1] }
   0x4   :  { %425 = vmatpush1.msk.msra.mxu1 %vm27_vm0, %v422_v4  ;;  %v420_v8 = vld [vmem:[%s557_s0 + $0x20] sm:$0xff]  ;;  %64 = vmatprep.subr.mxu0 %v17_v5  ;;  %v439_v11 = vld [vmem:[%s557_s0 + $0x78] sm:$0x1]  ;;  %v438_v13 = vld [vmem:[%s557_s0 + $0x70] sm:$0x1] }
   0x5   :  { %v14_v9 = vld [vmem:[%s558_s1] sm:$0xff]  ;;  %152 = vmatprep.subr.mxu1 %v421_v6  ;;  %65 = vmatpush1.msra.mxu0 %v16_v7  ;;  %v15_v14 = vld [vmem:[%s558_s1 + $0x8] sm:$0xff] }
   0x6   :  { %153 = vmatpush1.msra.mxu1 %v420_v8  ;;  %418 = vmatmul.mubr.msk.f32.vlgmr.msra.gmra.mxu0 %vm20_vm1, %v14_v9  ;;  %v429_v15 = vld [vmem:[%s557_s0 + $0x48] sm:$0xff]  ;;  %v428_v17 = vld [vmem:[%s557_s0 + $0x40] sm:$0xff] }
   0x7   :  { %426 = vmatmul.mubr.msk.f32.vlgmr.msra.gmra.mxu1 %vm20_vm1, %v14_v9  ;;  %432 = vmatprep.subr.msk.mxu0 %vm27_vm0, %v431_v10  ;;  %v437_v16 = vld [vmem:[%s557_s0 + $0x68] sm:$0xff]  ;;  %v436_v18 = vld [vmem:[%s557_s0 + $0x60] sm:$0xff] }
   0x8   :  { %440 = vmatprep.subr.msk.mxu1 %vm27_vm0, %v439_v11  ;;  %433 = vmatpush1.msk.msra.mxu0 %vm27_vm0, %v430_v12  ;;  %v387_v19 = vld [vmem:[%s559_s2] sm:$0xff]  ;;  %v388_v21 = vld [vmem:[%s559_s2 + $0x8] sm:$0xff] }
   0x9   :  { %104 = vmatprep.mubr.f32.mxu0 %v447_v3  ;;  %192 = vmatprep.mubr.f32.mxu1 %v447_v3 }
   0xa   :  { %441 = vmatpush1.msk.msra.mxu1 %vm27_vm0, %v438_v13  ;;  %419 = vmatmul.mubr.msk.f32.gmra.mxu0 %vm20_vm1, %v15_v14 }
   0xb   :  { %427 = vmatmul.mubr.msk.f32.gmra.mxu1 %vm20_vm1, %v15_v14  ;;  %244 = vmatprep.subr.mxu0 %v429_v15 }
   0xc   :  { %336 = vmatprep.subr.mxu1 %v437_v16  ;;  %245 = vmatpush1.msra.mxu0 %v428_v17 }
   0xd   :  { %278 = vmatprep.mubr.f32.mxu0 %v447_v3  ;;  %337 = vmatpush1.msra.mxu1 %v436_v18 }
   0xe   :  { %370 = vmatprep.mubr.f32.mxu1 %v447_v3  ;;  %434 = vmatmul.mubr.msk.f32.vlgmr.msra.gmra.mxu0 %vm20_vm1, %v14_v9 }
   0xf   :  { %442 = vmatmul.mubr.msk.f32.vlgmr.msra.gmra.mxu1 %vm20_vm1, %v14_v9  ;;  %284 = vmatprep.mubr.f32.mxu0 %v447_v3 }
  0x10   :  { %376 = vmatprep.mubr.f32.mxu1 %v447_v3  ;;  %391 = vperm.xlu0 %446, %v387_v19  }
  0x12   :  { %435 = vmatmul.mubr.msk.f32.gmra.mxu0 %vm20_vm1, %v15_v14 }
  0x13   :  { %443 = vmatmul.mubr.msk.f32.gmra.mxu1 %vm20_vm1, %v15_v14 }
  0x14   :  { %396 = vperm.xlu0 %446, %v388_v21  }
  0x8b   :  { %v392_v35 = vpop.permute.xlu0 %391 }
  0x8f   :  { %v397_v52 = vpop.permute.xlu0 %396 }
  0xc6   :  { %v100_v22 = vpop.f32.mrf.mxu0 }
  0xc7   :  { %v188_v23 = vpop.f32.mrf.mxu1 }
  0xc8   :  { %v102_v24 = vpop.f32.mrf.mxu0  ;;  %v199_v30 = vmax.f32 %v100_v22, %v188_v23 }
  0xc9   :  { %v190_v25 = vpop.f32.mrf.mxu1 }
  0xca   :  { %v106_v26 = vpop.f32.mrf.mxu0  ;;  %v200_v33 = vmax.f32 %v102_v24, %v190_v25 }
  0xcb   :  { %v194_v27 = vpop.f32.mrf.mxu1 }
  0xcc   :  { %v108_v28 = vpop.f32.mrf.mxu0  ;;  %v201_v38 = vmax.f32 %v106_v26, %v194_v27 }
  0xcd   :  { %v196_v29 = vpop.f32.mrf.mxu1 }
  0xce   :  { %v280_v31 = vpop.f32.mrf.mxu0  ;;  %v202_v43 = vmax.f32 %v108_v28, %v196_v29 }
  0xcf   :  { %v372_v32 = vpop.f32.mrf.mxu1  ;;  %v291_v34 = vmax.f32 %v199_v30, %v280_v31 }
  0xd0   :  { %v282_v36 = vpop.f32.mrf.mxu0 }
  0xd1   :  { %v374_v37 = vpop.f32.mrf.mxu1  ;;  %v383_v39 = vmax.f32 %v291_v34, %v372_v32  ;;  %v292_v40 = vmax.f32 %v200_v33, %v282_v36 }
  0xd2   :  { %v286_v41 = vpop.f32.mrf.mxu0 }
  0xd3   :  { %v378_v42 = vpop.f32.mrf.mxu1  ;;  %v399_v44 = vadd.f32 %v392_v35, %v383_v39  ;;  %v384_v45 = vmax.f32 %v292_v40, %v374_v37  ;;  %v293_v46 = vmax.f32 %v201_v38, %v286_v41 }
  0xd4   :  { %v288_v47 = vpop.f32.mrf.mxu0 }
  0xd5   :  { %v403_v48 = vmax.f32 %v399_v44, 0.0  ;;  %v400_v49 = vadd.f32 %v392_v35, %v384_v45  ;;  %v385_v50 = vmax.f32 %v293_v46, %v378_v42  ;;  %v294_v51 = vmax.f32 %v202_v43, %v288_v47  ;;  %v380_v53 = vpop.f32.mrf.mxu1 }
  0xd7   :  { %407 = vst [vmem:[%s560_s3] sm:$0xff] %v403_v48  ;;  %v404_v54 = vmax.f32 %v400_v49, 0.0  ;;  %v401_v55 = vadd.f32 %v397_v52, %v385_v50  ;;  %v386_v56 = vmax.f32 %v294_v51, %v380_v53 }
  0xd9   :  { %409 = vst.msk [vmem:[%s560_s3 + $0x8] sm:$0xff] %vm408_vm2, %v404_v54  ;;  %v405_v57 = vmax.f32 %v401_v55, 0.0  ;;  %v402_v58 = vadd.f32 %v397_v52, %v386_v56 }
  0xdb   :  { %410 = vst [vmem:[%s560_s3 + $0x10] sm:$0xff] %v405_v57  ;;  %v406_v59 = vmax.f32 %v402_v58, 0.0 }
  0xdd   :  { %411 = vst.msk [vmem:[%s560_s3 + $0x18] sm:$0xff] %vm408_vm2, %v406_v59 }

// kernel: celeba_autoencoder.8
= control target key start
LH: loop header
LB: loop body
LE: loop exit
PB: predicated region body
PF: predicated region fallthrough
CT: control target
= control target key end

     0   :  { %v494_v0 = vmov 0.0   ;;  %vm36_vm0 = vcmask 130048   ;;  %vm422_vm1 = vcmask 408576   ;;  %s848_s0 = inlined_call_operand.vmem [shape: f32[4,144,50], index: 0, kind: input, shape index: {}]   ;;  %s849_s1 = inlined_call_operand.vmem [shape: f32[16,144], index: 1, kind: input, shape index: {}]   ;;  %s850_s2 = inlined_call_operand.vmem [shape: f32[16,1], index: 2, kind: input, shape index: {}]   ;;  %s851_s3 = inlined_call_operand.vmem [shape: f32[16,50], index: 3, kind: output, shape index: {}]  }
   0x1   :  { %43 = vmatprep.subr.mxu0 %v494_v0  ;;  %137 = vmatprep.subr.mxu1 %v494_v0  ;;  %v33_v1 = vld [vmem:[%s848_s0 + $0x78] sm:$0xff]  ;;  %v446_v2 = vld [vmem:[%s848_s0 + $0x108] sm:$0xff]  ;;  %v32_v3 = vld [vmem:[%s848_s0 + $0x70] sm:$0xff] }
   0x2   :  { %44 = vmatpush1.msra.mxu0 %v33_v1  ;;  %138 = vmatpush1.msra.mxu1 %v446_v2  ;;  %v445_v4 = vld [vmem:[%s848_s0 + $0x100] sm:$0xff]  ;;  %v31_v5 = vld [vmem:[%s848_s0 + $0x68] sm:$0xff]  ;;  %v444_v6 = vld [vmem:[%s848_s0 + $0xf8] sm:$0xff] }
   0x3   :  { %45 = vmatprep.subr.mxu0 %v494_v0  ;;  %139 = vmatprep.subr.mxu1 %v494_v0  ;;  %v30_v7 = vld [vmem:[%s848_s0 + $0x60] sm:$0xff]  ;;  %v443_v8 = vld [vmem:[%s848_s0 + $0xf0] sm:$0xff]  ;;  %v29_v9 = vld [vmem:[%s848_s0 + $0x58] sm:$0xff] }
   0x4   :  { %46 = vmatpush1.msra.mxu0 %v32_v3  ;;  %140 = vmatpush1.msra.mxu1 %v445_v4  ;;  %v442_v10 = vld [vmem:[%s848_s0 + $0xe8] sm:$0xff]  ;;  %v28_v11 = vld [vmem:[%s848_s0 + $0x50] sm:$0xff]  ;;  %v441_v12 = vld [vmem:[%s848_s0 + $0xe0] sm:$0xff] }
   0x5   :  { %47 = vmatprep.subr.mxu0 %v494_v0  ;;  %141 = vmatprep.subr.mxu1 %v494_v0  ;;  %v27_v13 = vld [vmem:[%s848_s0 + $0x48] sm:$0xff]  ;;  %v440_v14 = vld [vmem:[%s848_s0 + $0xd8] sm:$0xff]  ;;  %v26_v15 = vld [vmem:[%s848_s0 + $0x40] sm:$0xff] }
   0x6   :  { %48 = vmatpush1.msra.mxu0 %v31_v5  ;;  %142 = vmatpush1.msra.mxu1 %v444_v6  ;;  %v439_v16 = vld [vmem:[%s848_s0 + $0xd0] sm:$0xff]  ;;  %v25_v17 = vld [vmem:[%s848_s0 + $0x38] sm:$0xff]  ;;  %v438_v18 = vld [vmem:[%s848_s0 + $0xc8] sm:$0xff] }
   0x7   :  { %49 = vmatprep.subr.mxu0 %v494_v0  ;;  %143 = vmatprep.subr.mxu1 %v494_v0  ;;  %v24_v19 = vld [vmem:[%s848_s0 + $0x30] sm:$0xff]  ;;  %v437_v20 = vld [vmem:[%s848_s0 + $0xc0] sm:$0xff]  ;;  %v23_v21 = vld [vmem:[%s848_s0 + $0x28] sm:$0xff] }
   0x8   :  { %50 = vmatpush1.msra.mxu0 %v30_v7  ;;  %144 = vmatpush1.msra.mxu1 %v443_v8  ;;  %v436_v22 = vld [vmem:[%s848_s0 + $0xb8] sm:$0xff]  ;;  %v22_v23 = vld [vmem:[%s848_s0 + $0x20] sm:$0xff]  ;;  %v435_v24 = vld [vmem:[%s848_s0 + $0xb0] sm:$0xff] }
   0x9   :  { %51 = vmatprep.subr.mxu0 %v494_v0  ;;  %145 = vmatprep.subr.mxu1 %v494_v0  ;;  %v21_v25 = vld [vmem:[%s848_s0 + $0x18] sm:$0xff]  ;;  %v434_v26 = vld [vmem:[%s848_s0 + $0xa8] sm:$0xff]  ;;  %v20_v27 = vld [vmem:[%s848_s0 + $0x10] sm:$0xff] }
   0xa   :  { %52 = vmatpush1.msra.mxu0 %v29_v9  ;;  %146 = vmatpush1.msra.mxu1 %v442_v10  ;;  %v433_v28 = vld [vmem:[%s848_s0 + $0xa0] sm:$0xff]  ;;  %v19_v29 = vld [vmem:[%s848_s0 + $0x8] sm:$0xff]  ;;  %v432_v30 = vld [vmem:[%s848_s0 + $0x98] sm:$0xff] }
   0xb   :  { %53 = vmatprep.subr.mxu0 %v494_v0  ;;  %147 = vmatprep.subr.mxu1 %v494_v0  ;;  %v18_v31 = vld [vmem:[%s848_s0] sm:$0xff]  ;;  %v431_v32 = vld [vmem:[%s848_s0 + $0x90] sm:$0xff]  ;;  %v35_v33 = vld [vmem:[%s848_s0 + $0x88] sm:$0xff] }
   0xc   :  { %54 = vmatpush1.msra.mxu0 %v28_v11  ;;  %148 = vmatpush1.msra.mxu1 %v441_v12  ;;  %v448_v34 = vld [vmem:[%s848_s0 + $0x118] sm:$0xff]  ;;  %v34_v35 = vld [vmem:[%s848_s0 + $0x80] sm:$0xff]  ;;  %v658_v36 = vld [vmem:[%s849_s1 + $0x8] sm:$0xff] }
   0xd   :  { %55 = vmatprep.subr.mxu0 %v494_v0  ;;  %149 = vmatprep.subr.mxu1 %v494_v0  ;;  %v447_v37 = vld [vmem:[%s848_s0 + $0x110] sm:$0xff]  ;;  %v666_v38 = vld [vmem:[%s849_s1] sm:$0xff]  ;;  %v466_v39 = vld [vmem:[%s848_s0 + $0x198] sm:$0xff] }
   0xe   :  { %56 = vmatpush1.msra.mxu0 %v27_v13  ;;  %150 = vmatpush1.msra.mxu1 %v440_v14  ;;  %v486_v40 = vld [vmem:[%s848_s0 + $0x228] sm:$0xff]  ;;  %v465_v41 = vld [vmem:[%s848_s0 + $0x190] sm:$0xff]  ;;  %v485_v42 = vld [vmem:[%s848_s0 + $0x220] sm:$0xff] }
   0xf   :  { %57 = vmatprep.subr.mxu0 %v494_v0  ;;  %151 = vmatprep.subr.mxu1 %v494_v0  ;;  %v464_v43 = vld [vmem:[%s848_s0 + $0x188] sm:$0xff]  ;;  %v484_v44 = vld [vmem:[%s848_s0 + $0x218] sm:$0xff]  ;;  %v463_v45 = vld [vmem:[%s848_s0 + $0x180] sm:$0xff] }
  0x10   :  { %58 = vmatpush1.msra.mxu0 %v26_v15  ;;  %152 = vmatpush1.msra.mxu1 %v439_v16  ;;  %v483_v46 = vld [vmem:[%s848_s0 + $0x210] sm:$0xff]  ;;  %v462_v47 = vld [vmem:[%s848_s0 + $0x178] sm:$0xff]  ;;  %v482_v48 = vld [vmem:[%s848_s0 + $0x208] sm:$0xff] }
  0x11   :  { %59 = vmatprep.subr.mxu0 %v494_v0  ;;  %153 = vmatprep.subr.mxu1 %v494_v0  ;;  %v461_v49 = vld [vmem:[%s848_s0 + $0x170] sm:$0xff]  ;;  %v481_v50 = vld [vmem:[%s848_s0 + $0x200] sm:$0xff]  ;;  %v460_v51 = vld [vmem:[%s848_s0 + $0x168] sm:$0xff] }
  0x12   :  { %60 = vmatpush1.msra.mxu0 %v25_v17  ;;  %154 = vmatpush1.msra.mxu1 %v438_v18  ;;  %v480_v52 = vld [vmem:[%s848_s0 + $0x1f8] sm:$0xff]  ;;  %v459_v53 = vld [vmem:[%s848_s0 + $0x160] sm:$0xff]  ;;  %v479_v54 = vld [vmem:[%s848_s0 + $0x1f0] sm:$0xff] }
  0x13   :  { %61 = vmatprep.subr.mxu0 %v494_v0  ;;  %155 = vmatprep.subr.mxu1 %v494_v0  ;;  %v458_v55 = vld [vmem:[%s848_s0 + $0x158] sm:$0xff]  ;;  %v478_v56 = vld [vmem:[%s848_s0 + $0x1e8] sm:$0xff]  ;;  %v457_v57 = vld [vmem:[%s848_s0 + $0x150] sm:$0xff] }
  0x14   :  { %62 = vmatpush1.msra.mxu0 %v24_v19  ;;  %156 = vmatpush1.msra.mxu1 %v437_v20  ;;  %v477_v58 = vld [vmem:[%s848_s0 + $0x1e0] sm:$0xff]  ;;  %v456_v59 = vld [vmem:[%s848_s0 + $0x148] sm:$0xff]  ;;  %v476_v60 = vld [vmem:[%s848_s0 + $0x1d8] sm:$0xff] }
  0x15   :  { %63 = vmatprep.subr.mxu0 %v494_v0  ;;  %157 = vmatprep.subr.mxu1 %v494_v0  ;;  %v455_v61 = vld [vmem:[%s848_s0 + $0x140] sm:$0xff]  ;;  %v475_v62 = vld [vmem:[%s848_s0 + $0x1d0] sm:$0xff]  ;;  %v454_v63 = vld [vmem:[%s848_s0 + $0x138] sm:$0xff] }
  0x16   :  { %64 = vmatpush1.msra.mxu0 %v23_v21  ;;  %158 = vmatpush1.msra.mxu1 %v436_v22  ;;  %v474_v1 = vld [vmem:[%s848_s0 + $0x1c8] sm:$0xff]  ;;  %v453_v2 = vld [vmem:[%s848_s0 + $0x130] sm:$0xff]  ;;  %v473_v3 = vld [vmem:[%s848_s0 + $0x1c0] sm:$0xff] }
  0x17   :  { %65 = vmatprep.subr.mxu0 %v494_v0  ;;  %159 = vmatprep.subr.mxu1 %v494_v0  ;;  %v17_v4 = vld [vmem:[%s849_s1 + $0x18] sm:$0xff]  ;;  %v452_v5 = vld [vmem:[%s848_s0 + $0x128] sm:$0xff]  ;;  %v16_v7 = vld [vmem:[%s849_s1 + $0x10] sm:$0xff] }
  0x18   :  { %66 = vmatpush1.msra.mxu0 %v22_v23  ;;  %160 = vmatpush1.msra.mxu1 %v435_v24  ;;  %v472_v6 = vld [vmem:[%s848_s0 + $0x1b8] sm:$0xff]  ;;  %v451_v8 = vld [vmem:[%s848_s0 + $0x120] sm:$0xff]  ;;  %v471_v9 = vld [vmem:[%s848_s0 + $0x1b0] sm:$0xff] }
  0x19   :  { %67 = vmatprep.subr.mxu0 %v494_v0  ;;  %161 = vmatprep.subr.mxu1 %v494_v0  ;;  %v468_v10 = vld [vmem:[%s848_s0 + $0x1a8] sm:$0xff]  ;;  %v488_v11 = vld [vmem:[%s848_s0 + $0x238] sm:$0xff]  ;;  %v467_v12 = vld [vmem:[%s848_s0 + $0x1a0] sm:$0xff] }
  0x1a   :  { %68 = vmatpush1.msra.mxu0 %v21_v25  ;;  %162 = vmatpush1.msra.mxu1 %v434_v26  ;;  %v487_v13 = vld [vmem:[%s848_s0 + $0x230] sm:$0xff]  ;;  %v406_v14 = vld [vmem:[%s850_s2] sm:$0xff]  ;;  %v407_v15 = vld [vmem:[%s850_s2 + $0x8] sm:$0xff] }
  0x1b   :  { %69 = vmatprep.subr.mxu0 %v494_v0  ;;  %163 = vmatprep.subr.mxu1 %v494_v0 }
  0x1c   :  { %70 = vmatpush1.msra.mxu0 %v20_v27  ;;  %164 = vmatpush1.msra.mxu1 %v433_v28 }
  0x1d   :  { %71 = vmatprep.subr.mxu0 %v494_v0  ;;  %165 = vmatprep.subr.mxu1 %v494_v0 }
  0x1e   :  { %72 = vmatpush1.msra.mxu0 %v19_v29  ;;  %166 = vmatpush1.msra.mxu1 %v432_v30 }
  0x1f   :  { %73 = vmatprep.subr.mxu0 %v494_v0  ;;  %167 = vmatprep.subr.mxu1 %v494_v0 }
  0x20   :  { %74 = vmatpush1.msra.mxu0 %v18_v31  ;;  %168 = vmatpush1.msra.mxu1 %v431_v32 }
  0x21   :  { %103 = vmatprep.subr.mxu0 %v494_v0  ;;  %197 = vmatprep.subr.mxu1 %v494_v0 }
  0x22   :  { %104 = vmatpush2.msra.mxu0 %v35_v33  ;;  %198 = vmatpush2.msra.mxu1 %v448_v34 }
  0x23   :  { %105 = vmatprep.subr.mxu0 %v494_v0  ;;  %199 = vmatprep.subr.mxu1 %v494_v0 }
  0x24   :  { %106 = vmatpush2.msra.mxu0 %v34_v35  ;;  %429 = vmatprep.mubr.msk.f32.mxu0 %vm36_vm0, %v658_v36 }
  0x25   :  { %200 = vmatpush2.msra.mxu1 %v447_v37  ;;  %108 = vmatmul.mubr.f32.vlgmr.msra.gmra.mxu0 %v666_v38 }
  0x26   :  { %449 = vmatprep.mubr.msk.f32.mxu1 %vm36_vm0, %v658_v36  ;;  %233 = vmatprep.subr.mxu0 %v494_v0 }
  0x27   :  { %329 = vmatprep.subr.mxu1 %v494_v0  ;;  %202 = vmatmul.mubr.f32.vlgmr.msra.gmra.mxu1 %v666_v38 }
  0x28   :  { %234 = vmatpush1.msra.mxu0 %v466_v39  ;;  %330 = vmatpush1.msra.mxu1 %v486_v40 }
  0x29   :  { %235 = vmatprep.subr.mxu0 %v494_v0  ;;  %331 = vmatprep.subr.mxu1 %v494_v0 }
  0x2a   :  { %236 = vmatpush1.msra.mxu0 %v465_v41  ;;  %332 = vmatpush1.msra.mxu1 %v485_v42 }
  0x2b   :  { %237 = vmatprep.subr.mxu0 %v494_v0  ;;  %333 = vmatprep.subr.mxu1 %v494_v0 }
  0x2c   :  { %238 = vmatpush1.msra.mxu0 %v464_v43  ;;  %334 = vmatpush1.msra.mxu1 %v484_v44 }
  0x2d   :  { %239 = vmatprep.subr.mxu0 %v494_v0  ;;  %335 = vmatprep.subr.mxu1 %v494_v0 }
  0x2e   :  { %240 = vmatpush1.msra.mxu0 %v463_v45  ;;  %336 = vmatpush1.msra.mxu1 %v483_v46 }
  0x2f   :  { %241 = vmatprep.subr.mxu0 %v494_v0  ;;  %337 = vmatprep.subr.mxu1 %v494_v0 }
  0x30   :  { %242 = vmatpush1.msra.mxu0 %v462_v47  ;;  %338 = vmatpush1.msra.mxu1 %v482_v48 }
  0x31   :  { %243 = vmatprep.subr.mxu0 %v494_v0  ;;  %339 = vmatprep.subr.mxu1 %v494_v0 }
  0x32   :  { %244 = vmatpush1.msra.mxu0 %v461_v49  ;;  %340 = vmatpush1.msra.mxu1 %v481_v50 }
  0x33   :  { %245 = vmatprep.subr.mxu0 %v494_v0  ;;  %341 = vmatprep.subr.mxu1 %v494_v0 }
  0x34   :  { %246 = vmatpush1.msra.mxu0 %v460_v51  ;;  %342 = vmatpush1.msra.mxu1 %v480_v52 }
  0x35   :  { %247 = vmatprep.subr.mxu0 %v494_v0  ;;  %343 = vmatprep.subr.mxu1 %v494_v0 }
  0x36   :  { %248 = vmatpush1.msra.mxu0 %v459_v53  ;;  %344 = vmatpush1.msra.mxu1 %v479_v54 }
  0x37   :  { %249 = vmatprep.subr.mxu0 %v494_v0  ;;  %345 = vmatprep.subr.mxu1 %v494_v0 }
  0x38   :  { %250 = vmatpush1.msra.mxu0 %v458_v55  ;;  %346 = vmatpush1.msra.mxu1 %v478_v56 }
  0x39   :  { %251 = vmatprep.subr.mxu0 %v494_v0  ;;  %347 = vmatprep.subr.mxu1 %v494_v0 }
  0x3a   :  { %252 = vmatpush1.msra.mxu0 %v457_v57  ;;  %348 = vmatpush1.msra.mxu1 %v477_v58 }
  0x3b   :  { %253 = vmatprep.subr.mxu0 %v494_v0  ;;  %349 = vmatprep.subr.mxu1 %v494_v0 }
  0x3c   :  { %254 = vmatpush1.msra.mxu0 %v456_v59  ;;  %350 = vmatpush1.msra.mxu1 %v476_v60 }
  0x3d   :  { %255 = vmatprep.subr.mxu0 %v494_v0  ;;  %351 = vmatprep.subr.mxu1 %v494_v0 }
  0x3e   :  { %256 = vmatpush1.msra.mxu0 %v455_v61  ;;  %352 = vmatpush1.msra.mxu1 %v475_v62 }
  0x3f   :  { %257 = vmatprep.subr.mxu0 %v494_v0  ;;  %353 = vmatprep.subr.mxu1 %v494_v0 }
  0x40   :  { %258 = vmatpush1.msra.mxu0 %v454_v63  ;;  %354 = vmatpush1.msra.mxu1 %v474_v1 }
  0x41   :  { %259 = vmatprep.subr.mxu0 %v494_v0  ;;  %355 = vmatprep.subr.mxu1 %v494_v0 }
  0x42   :  { %260 = vmatpush1.msra.mxu0 %v453_v2  ;;  %356 = vmatpush1.msra.mxu1 %v473_v3 }
  0x43   :  { %261 = vmatprep.subr.mxu0 %v494_v0  ;;  %357 = vmatprep.subr.mxu1 %v494_v0 }
  0x44   :  { %430 = vmatprep.mubr.msk.f32.mxu0 %vm36_vm0, %v17_v4  ;;  %262 = vmatpush1.msra.mxu0 %v452_v5 }
  0x45   :  { %358 = vmatpush1.msra.mxu1 %v472_v6  ;;  %113 = vmatmul.mubr.f32.gmra.mxu0 %v16_v7 }
  0x46   :  { %263 = vmatprep.subr.mxu0 %v494_v0  ;;  %359 = vmatprep.subr.mxu1 %v494_v0 }
  0x47   :  { %450 = vmatprep.mubr.msk.f32.mxu1 %vm36_vm0, %v17_v4  ;;  %264 = vmatpush1.msra.mxu0 %v451_v8 }
  0x48   :  { %360 = vmatpush1.msra.mxu1 %v471_v9  ;;  %293 = vmatprep.subr.mxu0 %v494_v0 }
  0x49   :  { %207 = vmatmul.mubr.f32.gmra.mxu1 %v16_v7  ;;  %389 = vmatprep.subr.mxu1 %v494_v0 }
  0x4a   :  { %294 = vmatpush2.msra.mxu0 %v468_v10  ;;  %390 = vmatpush2.msra.mxu1 %v488_v11 }
  0x4b   :  { %295 = vmatprep.subr.mxu0 %v494_v0  ;;  %391 = vmatprep.subr.mxu1 %v494_v0  ;;  %v495_v0 = vmov 0  }
  0x4c   :  { %296 = vmatpush2.msra.mxu0 %v467_v12  ;;  %469 = vmatprep.mubr.msk.f32.mxu0 %vm36_vm0, %v658_v36 }
  0x4d   :  { %392 = vmatpush2.msra.mxu1 %v487_v13  ;;  %489 = vmatprep.mubr.msk.f32.mxu1 %vm36_vm0, %v658_v36 }
  0x4e   :  { %298 = vmatmul.mubr.f32.vlgmr.msra.gmra.mxu0 %v666_v38  ;;  %394 = vmatmul.mubr.f32.vlgmr.msra.gmra.mxu1 %v666_v38 }
  0x4f   :  { %470 = vmatprep.mubr.msk.f32.mxu0 %vm36_vm0, %v17_v4  ;;  %490 = vmatprep.mubr.msk.f32.mxu1 %vm36_vm0, %v17_v4 }
  0x50   :  { %493 = vset.pattern.permute.xlu0 %v495_v0 }
  0x51   :  { %410 = vperm.xlu0 %493, %v406_v14  }
  0x52   :  { %303 = vmatmul.mubr.f32.gmra.mxu0 %v16_v7  ;;  %399 = vmatmul.mubr.f32.gmra.mxu1 %v16_v7 }
  0x55   :  { %415 = vperm.xlu0 %493, %v407_v15  }
  0xcc   :  { %v411_v27 = vpop.permute.xlu0 %410 }
  0xd0   :  { %v416_v41 = vpop.permute.xlu0 %415 }
  0xe5   :  { %v109_v16 = vpop.f32.mrf.mxu0 }
  0xe7   :  { %v203_v17 = vpop.f32.mrf.mxu1  ;;  %v111_v18 = vpop.f32.mrf.mxu0 }
  0xe8   :  { %v212_v24 = vmax.f32 %v109_v16, %v203_v17 }
  0xe9   :  { %v205_v19 = vpop.f32.mrf.mxu1 }
 0x105   :  { %v114_v20 = vpop.f32.mrf.mxu0 }
 0x107   :  { %v116_v21 = vpop.f32.mrf.mxu0 }
 0x109   :  { %v208_v22 = vpop.f32.mrf.mxu1 }
 0x10a   :  { %v213_v31 = vmax.f32 %v114_v20, %v208_v22 }
 0x10b   :  { %v210_v23 = vpop.f32.mrf.mxu1 }
 0x10e   :  { %v299_v25 = vpop.f32.mrf.mxu0  ;;  %v395_v26 = vpop.f32.mrf.mxu1 }
 0x10f   :  { %v308_v28 = vmax.f32 %v212_v24, %v299_v25 }
 0x110   :  { %v301_v29 = vpop.f32.mrf.mxu0  ;;  %v397_v30 = vpop.f32.mrf.mxu1 }
 0x111   :  { %v404_v32 = vmax.f32 %v308_v28, %v395_v26 }
 0x112   :  { %v304_v33 = vpop.f32.mrf.mxu0  ;;  %v400_v34 = vpop.f32.mrf.mxu1 }
 0x113   :  { %v418_v35 = vadd.f32 %v411_v27, %v404_v32  ;;  %v309_v36 = vmax.f32 %v213_v31, %v304_v33 }
 0x114   :  { %v306_v37 = vpop.f32.mrf.mxu0  ;;  %v402_v38 = vpop.f32.mrf.mxu1 }
 0x115   :  { %v420_v39 = vmax.f32 %v418_v35, 0.0  ;;  %v405_v40 = vmax.f32 %v309_v36, %v400_v34 }
 0x117   :  { %423 = vst.msk [vmem:[%s851_s3] sm:$0xff] %vm422_vm1, %v420_v39  ;;  %v419_v42 = vadd.f32 %v416_v41, %v405_v40 }
 0x119   :  { %v421_v43 = vmax.f32 %v419_v42, 0.0 }
 0x11b   :  { %424 = vst.msk [vmem:[%s851_s3 + $0x8] sm:$0xff] %vm422_vm1, %v421_v43 }

// kernel: celeba_autoencoder.9
= control target key start
LH: loop header
LB: loop body
LE: loop exit
PB: predicated region body
PF: predicated region fallthrough
CT: control target
= control target key end

     0   :  { %v453_v0 = vmov 0.0   ;;  %vm34_vm0 = vcmask 130048   ;;  %vm386_vm1 = vcmask 64512   ;;  %s791_s0 = inlined_call_operand.vmem [shape: f32[4,144,8], index: 0, kind: input, shape index: {}]   ;;  %s792_s1 = inlined_call_operand.vmem [shape: f32[8,144], index: 1, kind: input, shape index: {}]   ;;  %s793_s2 = inlined_call_operand.vmem [shape: f32[8,1], index: 2, kind: input, shape index: {}]   ;;  %s794_s3 = inlined_call_operand.vmem [shape: f32[8,8], index: 3, kind: output, shape index: {}]  }
   0x1   :  { %38 = vmatprep.subr.mxu0 %v453_v0  ;;  %127 = vmatprep.subr.mxu1 %v453_v0  ;;  %v31_v1 = vld [vmem:[%s791_s0 + $0x78] sm:$0xff]  ;;  %v408_v2 = vld [vmem:[%s791_s0 + $0x108] sm:$0xff]  ;;  %v30_v3 = vld [vmem:[%s791_s0 + $0x70] sm:$0xff] }
   0x2   :  { %39 = vmatpush1.msra.mxu0 %v31_v1  ;;  %128 = vmatpush1.msra.mxu1 %v408_v2  ;;  %v407_v4 = vld [vmem:[%s791_s0 + $0x100] sm:$0xff]  ;;  %v29_v5 = vld [vmem:[%s791_s0 + $0x68] sm:$0xff]  ;;  %v406_v6 = vld [vmem:[%s791_s0 + $0xf8] sm:$0xff] }
   0x3   :  { %40 = vmatprep.subr.mxu0 %v453_v0  ;;  %129 = vmatprep.subr.mxu1 %v453_v0  ;;  %v28_v7 = vld [vmem:[%s791_s0 + $0x60] sm:$0xff]  ;;  %v405_v8 = vld [vmem:[%s791_s0 + $0xf0] sm:$0xff]  ;;  %v27_v9 = vld [vmem:[%s791_s0 + $0x58] sm:$0xff] }
   0x4   :  { %41 = vmatpush1.msra.mxu0 %v30_v3  ;;  %130 = vmatpush1.msra.mxu1 %v407_v4  ;;  %v404_v10 = vld [vmem:[%s791_s0 + $0xe8] sm:$0xff]  ;;  %v26_v11 = vld [vmem:[%s791_s0 + $0x50] sm:$0xff]  ;;  %v403_v12 = vld [vmem:[%s791_s0 + $0xe0] sm:$0xff] }
   0x5   :  { %42 = vmatprep.subr.mxu0 %v453_v0  ;;  %131 = vmatprep.subr.mxu1 %v453_v0  ;;  %v25_v13 = vld [vmem:[%s791_s0 + $0x48] sm:$0xff]  ;;  %v402_v14 = vld [vmem:[%s791_s0 + $0xd8] sm:$0xff]  ;;  %v24_v15 = vld [vmem:[%s791_s0 + $0x40] sm:$0xff] }
   0x6   :  { %43 = vmatpush1.msra.mxu0 %v29_v5  ;;  %132 = vmatpush1.msra.mxu1 %v406_v6  ;;  %v401_v16 = vld [vmem:[%s791_s0 + $0xd0] sm:$0xff]  ;;  %v23_v17 = vld [vmem:[%s791_s0 + $0x38] sm:$0xff]  ;;  %v400_v18 = vld [vmem:[%s791_s0 + $0xc8] sm:$0xff] }
   0x7   :  { %44 = vmatprep.subr.mxu0 %v453_v0  ;;  %133 = vmatprep.subr.mxu1 %v453_v0  ;;  %v22_v19 = vld [vmem:[%s791_s0 + $0x30] sm:$0xff]  ;;  %v399_v20 = vld [vmem:[%s791_s0 + $0xc0] sm:$0xff]  ;;  %v21_v21 = vld [vmem:[%s791_s0 + $0x28] sm:$0xff] }
   0x8   :  { %45 = vmatpush1.msra.mxu0 %v28_v7  ;;  %134 = vmatpush1.msra.mxu1 %v405_v8  ;;  %v398_v22 = vld [vmem:[%s791_s0 + $0xb8] sm:$0xff]  ;;  %v20_v23 = vld [vmem:[%s791_s0 + $0x20] sm:$0xff]  ;;  %v397_v24 = vld [vmem:[%s791_s0 + $0xb0] sm:$0xff] }
   0x9   :  { %46 = vmatprep.subr.mxu0 %v453_v0  ;;  %135 = vmatprep.subr.mxu1 %v453_v0  ;;  %v19_v25 = vld [vmem:[%s791_s0 + $0x18] sm:$0xff]  ;;  %v396_v26 = vld [vmem:[%s791_s0 + $0xa8] sm:$0xff]  ;;  %v18_v27 = vld [vmem:[%s791_s0 + $0x10] sm:$0xff] }
   0xa   :  { %47 = vmatpush1.msra.mxu0 %v27_v9  ;;  %136 = vmatpush1.msra.mxu1 %v404_v10  ;;  %v395_v28 = vld [vmem:[%s791_s0 + $0xa0] sm:$0xff]  ;;  %v17_v29 = vld [vmem:[%s791_s0 + $0x8] sm:$0xff]  ;;  %v394_v30 = vld [vmem:[%s791_s0 + $0x98] sm:$0xff] }
   0xb   :  { %48 = vmatprep.subr.mxu0 %v453_v0  ;;  %137 = vmatprep.subr.mxu1 %v453_v0  ;;  %v16_v31 = vld [vmem:[%s791_s0] sm:$0xff]  ;;  %v393_v32 = vld [vmem:[%s791_s0 + $0x90] sm:$0xff]  ;;  %v33_v33 = vld [vmem:[%s791_s0 + $0x88] sm:$0xff] }
   0xc   :  { %49 = vmatpush1.msra.mxu0 %v26_v11  ;;  %138 = vmatpush1.msra.mxu1 %v403_v12  ;;  %v410_v34 = vld [vmem:[%s791_s0 + $0x118] sm:$0xff]  ;;  %v32_v35 = vld [vmem:[%s791_s0 + $0x80] sm:$0xff]  ;;  %v617_v36 = vld [vmem:[%s792_s1 + $0x8] sm:$0xff] }
   0xd   :  { %50 = vmatprep.subr.mxu0 %v453_v0  ;;  %139 = vmatprep.subr.mxu1 %v453_v0  ;;  %v409_v37 = vld [vmem:[%s791_s0 + $0x110] sm:$0xff]  ;;  %v625_v38 = vld [vmem:[%s792_s1] sm:$0xff]  ;;  %v427_v39 = vld [vmem:[%s791_s0 + $0x198] sm:$0xff] }
   0xe   :  { %51 = vmatpush1.msra.mxu0 %v25_v13  ;;  %140 = vmatpush1.msra.mxu1 %v402_v14  ;;  %v446_v40 = vld [vmem:[%s791_s0 + $0x228] sm:$0xff]  ;;  %v426_v41 = vld [vmem:[%s791_s0 + $0x190] sm:$0xff]  ;;  %v445_v42 = vld [vmem:[%s791_s0 + $0x220] sm:$0xff]  ;;  %v454_v13 = vmov 0  }
   0xf   :  { %52 = vmatprep.subr.mxu0 %v453_v0  ;;  %141 = vmatprep.subr.mxu1 %v453_v0  ;;  %v425_v43 = vld [vmem:[%s791_s0 + $0x188] sm:$0xff]  ;;  %v444_v44 = vld [vmem:[%s791_s0 + $0x218] sm:$0xff]  ;;  %v424_v45 = vld [vmem:[%s791_s0 + $0x180] sm:$0xff] }
  0x10   :  { %53 = vmatpush1.msra.mxu0 %v24_v15  ;;  %142 = vmatpush1.msra.mxu1 %v401_v16  ;;  %v443_v46 = vld [vmem:[%s791_s0 + $0x210] sm:$0xff]  ;;  %v423_v47 = vld [vmem:[%s791_s0 + $0x178] sm:$0xff]  ;;  %v442_v48 = vld [vmem:[%s791_s0 + $0x208] sm:$0xff] }
  0x11   :  { %54 = vmatprep.subr.mxu0 %v453_v0  ;;  %143 = vmatprep.subr.mxu1 %v453_v0  ;;  %v422_v49 = vld [vmem:[%s791_s0 + $0x170] sm:$0xff]  ;;  %v441_v50 = vld [vmem:[%s791_s0 + $0x200] sm:$0xff]  ;;  %v421_v51 = vld [vmem:[%s791_s0 + $0x168] sm:$0xff] }
  0x12   :  { %55 = vmatpush1.msra.mxu0 %v23_v17  ;;  %144 = vmatpush1.msra.mxu1 %v400_v18  ;;  %v440_v52 = vld [vmem:[%s791_s0 + $0x1f8] sm:$0xff]  ;;  %v420_v53 = vld [vmem:[%s791_s0 + $0x160] sm:$0xff]  ;;  %v439_v54 = vld [vmem:[%s791_s0 + $0x1f0] sm:$0xff] }
  0x13   :  { %56 = vmatprep.subr.mxu0 %v453_v0  ;;  %145 = vmatprep.subr.mxu1 %v453_v0  ;;  %v419_v55 = vld [vmem:[%s791_s0 + $0x158] sm:$0xff]  ;;  %v438_v56 = vld [vmem:[%s791_s0 + $0x1e8] sm:$0xff]  ;;  %v418_v57 = vld [vmem:[%s791_s0 + $0x150] sm:$0xff] }
  0x14   :  { %57 = vmatpush1.msra.mxu0 %v22_v19  ;;  %146 = vmatpush1.msra.mxu1 %v399_v20  ;;  %v437_v58 = vld [vmem:[%s791_s0 + $0x1e0] sm:$0xff]  ;;  %v417_v59 = vld [vmem:[%s791_s0 + $0x148] sm:$0xff]  ;;  %v436_v60 = vld [vmem:[%s791_s0 + $0x1d8] sm:$0xff] }
  0x15   :  { %58 = vmatprep.subr.mxu0 %v453_v0  ;;  %147 = vmatprep.subr.mxu1 %v453_v0  ;;  %v416_v61 = vld [vmem:[%s791_s0 + $0x140] sm:$0xff]  ;;  %v435_v62 = vld [vmem:[%s791_s0 + $0x1d0] sm:$0xff]  ;;  %v415_v63 = vld [vmem:[%s791_s0 + $0x138] sm:$0xff] }
  0x16   :  { %59 = vmatpush1.msra.mxu0 %v21_v21  ;;  %148 = vmatpush1.msra.mxu1 %v398_v22  ;;  %v434_v1 = vld [vmem:[%s791_s0 + $0x1c8] sm:$0xff]  ;;  %v414_v2 = vld [vmem:[%s791_s0 + $0x130] sm:$0xff]  ;;  %v433_v3 = vld [vmem:[%s791_s0 + $0x1c0] sm:$0xff] }
  0x17   :  { %60 = vmatprep.subr.mxu0 %v453_v0  ;;  %149 = vmatprep.subr.mxu1 %v453_v0  ;;  %v413_v4 = vld [vmem:[%s791_s0 + $0x128] sm:$0xff]  ;;  %v432_v5 = vld [vmem:[%s791_s0 + $0x1b8] sm:$0xff]  ;;  %v412_v6 = vld [vmem:[%s791_s0 + $0x120] sm:$0xff] }
  0x18   :  { %61 = vmatpush1.msra.mxu0 %v20_v23  ;;  %150 = vmatpush1.msra.mxu1 %v397_v24  ;;  %v431_v7 = vld [vmem:[%s791_s0 + $0x1b0] sm:$0xff]  ;;  %v429_v8 = vld [vmem:[%s791_s0 + $0x1a8] sm:$0xff]  ;;  %v448_v9 = vld [vmem:[%s791_s0 + $0x238] sm:$0xff] }
  0x19   :  { %62 = vmatprep.subr.mxu0 %v453_v0  ;;  %151 = vmatprep.subr.mxu1 %v453_v0  ;;  %v428_v10 = vld [vmem:[%s791_s0 + $0x1a0] sm:$0xff]  ;;  %v447_v11 = vld [vmem:[%s791_s0 + $0x230] sm:$0xff] }
  0x1a   :  { %63 = vmatpush1.msra.mxu0 %v19_v25  ;;  %152 = vmatpush1.msra.mxu1 %v396_v26  ;;  %v378_v12 = vld [vmem:[%s793_s2] sm:$0xff] }
  0x1b   :  { %64 = vmatprep.subr.mxu0 %v453_v0  ;;  %153 = vmatprep.subr.mxu1 %v453_v0 }
  0x1c   :  { %65 = vmatpush1.msra.mxu0 %v18_v27  ;;  %154 = vmatpush1.msra.mxu1 %v395_v28 }
  0x1d   :  { %66 = vmatprep.subr.mxu0 %v453_v0  ;;  %155 = vmatprep.subr.mxu1 %v453_v0 }
  0x1e   :  { %67 = vmatpush1.msra.mxu0 %v17_v29  ;;  %156 = vmatpush1.msra.mxu1 %v394_v30 }
  0x1f   :  { %68 = vmatprep.subr.mxu0 %v453_v0  ;;  %157 = vmatprep.subr.mxu1 %v453_v0 }
  0x20   :  { %69 = vmatpush1.msra.mxu0 %v16_v31  ;;  %158 = vmatpush1.msra.mxu1 %v393_v32 }
  0x21   :  { %98 = vmatprep.subr.mxu0 %v453_v0  ;;  %187 = vmatprep.subr.mxu1 %v453_v0 }
  0x22   :  { %99 = vmatpush2.msra.mxu0 %v33_v33  ;;  %188 = vmatpush2.msra.mxu1 %v410_v34 }
  0x23   :  { %100 = vmatprep.subr.mxu0 %v453_v0  ;;  %189 = vmatprep.subr.mxu1 %v453_v0 }
  0x24   :  { %101 = vmatpush2.msra.mxu0 %v32_v35  ;;  %392 = vmatprep.mubr.msk.f32.mxu0 %vm34_vm0, %v617_v36 }
  0x25   :  { %190 = vmatpush2.msra.mxu1 %v409_v37  ;;  %103 = vmatmul.mubr.f32.vlgmr.msra.gmra.mxu0 %v625_v38 }
  0x26   :  { %411 = vmatprep.mubr.msk.f32.mxu1 %vm34_vm0, %v617_v36  ;;  %217 = vmatprep.subr.mxu0 %v453_v0 }
  0x27   :  { %307 = vmatprep.subr.mxu1 %v453_v0  ;;  %192 = vmatmul.mubr.f32.vlgmr.msra.gmra.mxu1 %v625_v38 }
  0x28   :  { %218 = vmatpush1.msra.mxu0 %v427_v39  ;;  %308 = vmatpush1.msra.mxu1 %v446_v40 }
  0x29   :  { %219 = vmatprep.subr.mxu0 %v453_v0  ;;  %309 = vmatprep.subr.mxu1 %v453_v0 }
  0x2a   :  { %220 = vmatpush1.msra.mxu0 %v426_v41  ;;  %310 = vmatpush1.msra.mxu1 %v445_v42 }
  0x2b   :  { %221 = vmatprep.subr.mxu0 %v453_v0  ;;  %311 = vmatprep.subr.mxu1 %v453_v0 }
  0x2c   :  { %222 = vmatpush1.msra.mxu0 %v425_v43  ;;  %312 = vmatpush1.msra.mxu1 %v444_v44 }
  0x2d   :  { %223 = vmatprep.subr.mxu0 %v453_v0  ;;  %313 = vmatprep.subr.mxu1 %v453_v0 }
  0x2e   :  { %224 = vmatpush1.msra.mxu0 %v424_v45  ;;  %314 = vmatpush1.msra.mxu1 %v443_v46 }
  0x2f   :  { %225 = vmatprep.subr.mxu0 %v453_v0  ;;  %315 = vmatprep.subr.mxu1 %v453_v0 }
  0x30   :  { %226 = vmatpush1.msra.mxu0 %v423_v47  ;;  %316 = vmatpush1.msra.mxu1 %v442_v48 }
  0x31   :  { %227 = vmatprep.subr.mxu0 %v453_v0  ;;  %317 = vmatprep.subr.mxu1 %v453_v0 }
  0x32   :  { %228 = vmatpush1.msra.mxu0 %v422_v49  ;;  %318 = vmatpush1.msra.mxu1 %v441_v50 }
  0x33   :  { %229 = vmatprep.subr.mxu0 %v453_v0  ;;  %319 = vmatprep.subr.mxu1 %v453_v0 }
  0x34   :  { %230 = vmatpush1.msra.mxu0 %v421_v51  ;;  %320 = vmatpush1.msra.mxu1 %v440_v52 }
  0x35   :  { %231 = vmatprep.subr.mxu0 %v453_v0  ;;  %321 = vmatprep.subr.mxu1 %v453_v0 }
  0x36   :  { %232 = vmatpush1.msra.mxu0 %v420_v53  ;;  %322 = vmatpush1.msra.mxu1 %v439_v54 }
  0x37   :  { %233 = vmatprep.subr.mxu0 %v453_v0  ;;  %323 = vmatprep.subr.mxu1 %v453_v0 }
  0x38   :  { %234 = vmatpush1.msra.mxu0 %v419_v55  ;;  %324 = vmatpush1.msra.mxu1 %v438_v56 }
  0x39   :  { %235 = vmatprep.subr.mxu0 %v453_v0  ;;  %325 = vmatprep.subr.mxu1 %v453_v0 }
  0x3a   :  { %236 = vmatpush1.msra.mxu0 %v418_v57  ;;  %326 = vmatpush1.msra.mxu1 %v437_v58 }
  0x3b   :  { %237 = vmatprep.subr.mxu0 %v453_v0  ;;  %327 = vmatprep.subr.mxu1 %v453_v0 }
  0x3c   :  { %238 = vmatpush1.msra.mxu0 %v417_v59  ;;  %328 = vmatpush1.msra.mxu1 %v436_v60 }
  0x3d   :  { %239 = vmatprep.subr.mxu0 %v453_v0  ;;  %329 = vmatprep.subr.mxu1 %v453_v0 }
  0x3e   :  { %240 = vmatpush1.msra.mxu0 %v416_v61  ;;  %330 = vmatpush1.msra.mxu1 %v435_v62 }
  0x3f   :  { %241 = vmatprep.subr.mxu0 %v453_v0  ;;  %331 = vmatprep.subr.mxu1 %v453_v0 }
  0x40   :  { %242 = vmatpush1.msra.mxu0 %v415_v63  ;;  %332 = vmatpush1.msra.mxu1 %v434_v1 }
  0x41   :  { %243 = vmatprep.subr.mxu0 %v453_v0  ;;  %333 = vmatprep.subr.mxu1 %v453_v0 }
  0x42   :  { %244 = vmatpush1.msra.mxu0 %v414_v2  ;;  %334 = vmatpush1.msra.mxu1 %v433_v3 }
  0x43   :  { %245 = vmatprep.subr.mxu0 %v453_v0  ;;  %335 = vmatprep.subr.mxu1 %v453_v0 }
  0x44   :  { %246 = vmatpush1.msra.mxu0 %v413_v4  ;;  %336 = vmatpush1.msra.mxu1 %v432_v5 }
  0x45   :  { %247 = vmatprep.subr.mxu0 %v453_v0  ;;  %337 = vmatprep.subr.mxu1 %v453_v0 }
  0x46   :  { %248 = vmatpush1.msra.mxu0 %v412_v6  ;;  %338 = vmatpush1.msra.mxu1 %v431_v7 }
  0x47   :  { %277 = vmatprep.subr.mxu0 %v453_v0  ;;  %367 = vmatprep.subr.mxu1 %v453_v0 }
  0x48   :  { %278 = vmatpush2.msra.mxu0 %v429_v8  ;;  %368 = vmatpush2.msra.mxu1 %v448_v9 }
  0x49   :  { %279 = vmatprep.subr.mxu0 %v453_v0  ;;  %369 = vmatprep.subr.mxu1 %v453_v0 }
  0x4a   :  { %280 = vmatpush2.msra.mxu0 %v428_v10  ;;  %430 = vmatprep.mubr.msk.f32.mxu0 %vm34_vm0, %v617_v36 }
  0x4b   :  { %370 = vmatpush2.msra.mxu1 %v447_v11  ;;  %449 = vmatprep.mubr.msk.f32.mxu1 %vm34_vm0, %v617_v36 }
  0x4c   :  { %282 = vmatmul.mubr.f32.vlgmr.msra.gmra.mxu0 %v625_v38  ;;  %372 = vmatmul.mubr.f32.vlgmr.msra.gmra.mxu1 %v625_v38 }
  0x4d   :  { %452 = vset.pattern.permute.xlu0 %v454_v13 }
  0x4e   :  { %381 = vperm.xlu0 %452, %v378_v12  }
  0xc9   :  { %v382_v21 = vpop.permute.xlu0 %381 }
  0xe5   :  { %v104_v0 = vpop.f32.mrf.mxu0 }
  0xe7   :  { %v193_v14 = vpop.f32.mrf.mxu1  ;;  %v106_v15 = vpop.f32.mrf.mxu0 }
  0xe8   :  { %v197_v17 = vmax.f32 %v104_v0, %v193_v14 }
  0xe9   :  { %v195_v16 = vpop.f32.mrf.mxu1 }
 0x10c   :  { %v283_v18 = vpop.f32.mrf.mxu0  ;;  %v373_v19 = vpop.f32.mrf.mxu1 }
 0x10d   :  { %v287_v20 = vmax.f32 %v197_v17, %v283_v18 }
 0x10e   :  { %v285_v22 = vpop.f32.mrf.mxu0  ;;  %v375_v23 = vpop.f32.mrf.mxu1 }
 0x10f   :  { %v377_v24 = vmax.f32 %v287_v20, %v373_v19 }
 0x111   :  { %v384_v25 = vadd.f32 %v382_v21, %v377_v24 }
 0x113   :  { %v385_v26 = vmax.f32 %v384_v25, 0.0 }
 0x115   :  { %387 = vst.msk [vmem:[%s794_s3] sm:$0xff] %vm386_vm1, %v385_v26 }

// kernel: celeba_autoencoder.10
= control target key start
LH: loop header
LB: loop body
LE: loop exit
PB: predicated region body
PF: predicated region fallthrough
CT: control target
= control target key end

     0   :  { %v164_v2 = vmov 0   ;;  %vm37_vm0 = vcmask 588800   ;;  %vm121_vm1 = vcmask 408576   ;;  %s232_s1 = inlined_call_operand.vmem [shape: f32[72,50], index: 1, kind: input, shape index: {}]   ;;  %s233_s0 = inlined_call_operand.vmem [shape: f32[16,72], index: 0, kind: input, shape index: {}]   ;;  %s234_s2 = inlined_call_operand.vmem [shape: f32[16,1], index: 2, kind: input, shape index: {}]   ;;  %s235_s3 = inlined_call_operand.vmem [shape: f32[16,50], index: 3, kind: output, shape index: {}]  }
   0x1   :  { %v24_v0 = vld [vmem:[%s232_s1 + $0x40] sm:$0xff]  ;;  %v23_v1 = vld [vmem:[%s232_s1 + $0x38] sm:$0xff]  ;;  %163 = vset.pattern.permute.xlu0 %v164_v2  ;;  %v22_v3 = vld [vmem:[%s232_s1 + $0x30] sm:$0xff] }
   0x2   :  { %141 = vmatprep.subr.mxu0 %v24_v0  ;;  %v14_v4 = vld [vmem:[%s233_s0] sm:$0xff]  ;;  %v21_v6 = vld [vmem:[%s232_s1 + $0x28] sm:$0xff]  ;;  %v19_v9 = vld [vmem:[%s232_s1 + $0x18] sm:$0xff] }
   0x3   :  { %142 = vmatpush3.msra.mxu0 %v24_v0  ;;  %v25_v5 = vld [vmem:[%s234_s2] sm:$0xff]  ;;  %159 = vmatprep.mubr.msk.f32.mxu0 %vm37_vm0, %v14_v4  ;;  %v26_v8 = vld [vmem:[%s234_s2 + $0x8] sm:$0xff]  ;;  %v18_v10 = vld [vmem:[%s232_s1 + $0x10] sm:$0xff] }
   0x4   :  { %143 = vmatprep.subr.mxu0 %v23_v1  ;;  %29 = vperm.xlu0 %163, %v25_v5   ;;  %v20_v7 = vld [vmem:[%s232_s1 + $0x20] sm:$0xff]  ;;  %v17_v11 = vld [vmem:[%s232_s1 + $0x8] sm:$0xff] }
   0x5   :  { %144 = vmatpush3.msra.mxu0 %v23_v1  ;;  %v16_v12 = vld [vmem:[%s232_s1] sm:$0xff]  ;;  %v15_v13 = vld [vmem:[%s233_s0 + $0x8] sm:$0xff] }
   0x6   :  { %145 = vmatprep.subr.mxu0 %v22_v3 }
   0x7   :  { %146 = vmatpush3.msra.mxu0 %v22_v3 }
   0x8   :  { %147 = vmatprep.subr.mxu0 %v21_v6  ;;  %34 = vperm.xlu0 %163, %v26_v8  }
   0x9   :  { %148 = vmatpush3.msra.mxu0 %v21_v6 }
   0xa   :  { %149 = vmatprep.subr.mxu0 %v20_v7 }
   0xb   :  { %150 = vmatpush3.msra.mxu0 %v20_v7 }
   0xc   :  { %151 = vmatprep.subr.mxu0 %v19_v9 }
   0xd   :  { %152 = vmatpush3.msra.mxu0 %v19_v9 }
   0xe   :  { %153 = vmatprep.subr.mxu0 %v18_v10 }
   0xf   :  { %154 = vmatpush3.msra.mxu0 %v18_v10 }
  0x10   :  { %155 = vmatprep.subr.mxu0 %v17_v11 }
  0x11   :  { %156 = vmatpush3.msra.mxu0 %v17_v11 }
  0x12   :  { %157 = vmatprep.subr.mxu0 %v16_v12 }
  0x13   :  { %158 = vmatpush3.msra.mxu0 %v16_v12 }
  0x14   :  { %160 = vmatmul.mubr.msk.f32.vlgmr.msra.gmra.mxu0 %vm37_vm0, %v15_v13 }
  0x7f   :  { %v30_v14 = vpop.permute.xlu0 %29 }
  0x83   :  { %v35_v15 = vpop.permute.xlu0 %34 }
  0xd4   :  { %v161_v16 = vpop.f32.mrf.mxu0 }
  0xd5   :  { %v116_v17 = vadd.f32 %v161_v16, %v35_v15 }
  0xd6   :  { %v110_v18 = vpop.f32.mrf.mxu0 }
  0xd7   :  { %v120_v19 = vmax.f32 %v116_v17, 0.0  ;;  %v111_v20 = vadd.f32 %v110_v18, %v30_v14 }
  0xd9   :  { %123 = vst.msk [vmem:[%s235_s3 + $0x8] sm:$0xff] %vm121_vm1, %v120_v19  ;;  %v119_v21 = vmax.f32 %v111_v20, 0.0 }
  0xdb   :  { %122 = vst.msk [vmem:[%s235_s3] sm:$0xff] %vm121_vm1, %v119_v21 }

// kernel: celeba_autoencoder.11
= control target key start
LH: loop header
LB: loop body
LE: loop exit
PB: predicated region body
PF: predicated region fallthrough
CT: control target
= control target key end

     0   :  { %v203_v3 = vmov 0   ;;  %vm66_vm0 = vcmask 130048   ;;  %vm155_vm1 = vcmask 932864   ;;  %s362_s1 = inlined_call_operand.vmem [shape: f32[144,242], index: 1, kind: input, shape index: {}]   ;;  %s363_s0 = inlined_call_operand.vmem [shape: f32[16,144], index: 0, kind: input, shape index: {}]   ;;  %s364_s2 = inlined_call_operand.vmem [shape: f32[16,1], index: 2, kind: input, shape index: {}]   ;;  %s365_s3 = inlined_call_operand.vmem [shape: f32[16,242], index: 3, kind: output, shape index: {}]  }
   0x1   :  { %v49_v0 = vld [vmem:[%s362_s1 + $0xf8] sm:$0xff]  ;;  %v48_v1 = vld [vmem:[%s362_s1 + $0xf0] sm:$0xff]  ;;  %v47_v2 = vld [vmem:[%s362_s1 + $0xe8] sm:$0xff]  ;;  %202 = vset.pattern.permute.xlu0 %v203_v3 }
   0x2   :  { %73 = vmatprep.subr.mxu0 %v49_v0  ;;  %165 = vmatprep.subr.mxu1 %v49_v0  ;;  %v46_v4 = vld [vmem:[%s362_s1 + $0xe0] sm:$0xff]  ;;  %v45_v5 = vld [vmem:[%s362_s1 + $0xd8] sm:$0xff]  ;;  %v44_v6 = vld [vmem:[%s362_s1 + $0xd0] sm:$0xff] }
   0x3   :  { %74 = vmatpush1.msra.mxu0 %v48_v1  ;;  %183 = vmatpush1.msra.mxu1 %v48_v1  ;;  %v43_v7 = vld [vmem:[%s362_s1 + $0xc8] sm:$0xff]  ;;  %v42_v8 = vld [vmem:[%s362_s1 + $0xc0] sm:$0xff]  ;;  %v41_v9 = vld [vmem:[%s362_s1 + $0xb8] sm:$0xff] }
   0x4   :  { %75 = vmatprep.subr.mxu0 %v47_v2  ;;  %166 = vmatprep.subr.mxu1 %v47_v2  ;;  %v40_v10 = vld [vmem:[%s362_s1 + $0xb0] sm:$0xff]  ;;  %v39_v11 = vld [vmem:[%s362_s1 + $0xa8] sm:$0xff]  ;;  %v38_v12 = vld [vmem:[%s362_s1 + $0xa0] sm:$0xff] }
   0x5   :  { %76 = vmatpush1.msra.mxu0 %v46_v4  ;;  %184 = vmatpush1.msra.mxu1 %v46_v4  ;;  %v37_v13 = vld [vmem:[%s362_s1 + $0x98] sm:$0xff]  ;;  %v36_v14 = vld [vmem:[%s362_s1 + $0x90] sm:$0xff]  ;;  %v35_v15 = vld [vmem:[%s362_s1 + $0x88] sm:$0xff] }
   0x6   :  { %77 = vmatprep.subr.mxu0 %v45_v5  ;;  %167 = vmatprep.subr.mxu1 %v45_v5  ;;  %v34_v16 = vld [vmem:[%s362_s1 + $0x80] sm:$0xff]  ;;  %v33_v17 = vld [vmem:[%s362_s1 + $0x78] sm:$0xff]  ;;  %v32_v18 = vld [vmem:[%s362_s1 + $0x70] sm:$0xff] }
   0x7   :  { %78 = vmatpush1.msra.mxu0 %v44_v6  ;;  %185 = vmatpush1.msra.mxu1 %v44_v6  ;;  %v31_v19 = vld [vmem:[%s362_s1 + $0x68] sm:$0xff]  ;;  %v30_v20 = vld [vmem:[%s362_s1 + $0x60] sm:$0xff]  ;;  %v29_v21 = vld [vmem:[%s362_s1 + $0x58] sm:$0xff] }
   0x8   :  { %79 = vmatprep.subr.mxu0 %v43_v7  ;;  %168 = vmatprep.subr.mxu1 %v43_v7  ;;  %v28_v22 = vld [vmem:[%s362_s1 + $0x50] sm:$0xff]  ;;  %v27_v23 = vld [vmem:[%s362_s1 + $0x48] sm:$0xff]  ;;  %v26_v24 = vld [vmem:[%s362_s1 + $0x40] sm:$0xff] }
   0x9   :  { %80 = vmatpush1.msra.mxu0 %v42_v8  ;;  %186 = vmatpush1.msra.mxu1 %v42_v8  ;;  %v25_v25 = vld [vmem:[%s362_s1 + $0x38] sm:$0xff]  ;;  %v24_v26 = vld [vmem:[%s362_s1 + $0x30] sm:$0xff]  ;;  %v23_v27 = vld [vmem:[%s362_s1 + $0x28] sm:$0xff] }
   0xa   :  { %81 = vmatprep.subr.mxu0 %v41_v9  ;;  %169 = vmatprep.subr.mxu1 %v41_v9  ;;  %v22_v28 = vld [vmem:[%s362_s1 + $0x20] sm:$0xff]  ;;  %v21_v29 = vld [vmem:[%s362_s1 + $0x18] sm:$0xff]  ;;  %v20_v30 = vld [vmem:[%s362_s1 + $0x10] sm:$0xff] }
   0xb   :  { %82 = vmatpush1.msra.mxu0 %v40_v10  ;;  %187 = vmatpush1.msra.mxu1 %v40_v10  ;;  %v19_v31 = vld [vmem:[%s362_s1 + $0x8] sm:$0xff]  ;;  %v18_v32 = vld [vmem:[%s362_s1] sm:$0xff]  ;;  %v53_v33 = vld [vmem:[%s362_s1 + $0x118] sm:$0xff] }
   0xc   :  { %83 = vmatprep.subr.mxu0 %v39_v11  ;;  %170 = vmatprep.subr.mxu1 %v39_v11  ;;  %v52_v34 = vld [vmem:[%s362_s1 + $0x110] sm:$0xff]  ;;  %v51_v35 = vld [vmem:[%s362_s1 + $0x108] sm:$0xff]  ;;  %v50_v36 = vld [vmem:[%s362_s1 + $0x100] sm:$0xff] }
   0xd   :  { %84 = vmatpush1.msra.mxu0 %v38_v12  ;;  %188 = vmatpush1.msra.mxu1 %v38_v12  ;;  %v15_v37 = vld [vmem:[%s363_s0 + $0x8] sm:$0xff]  ;;  %v17_v38 = vld [vmem:[%s363_s0 + $0x18] sm:$0xff]  ;;  %v14_v39 = vld [vmem:[%s363_s0] sm:$0xff] }
   0xe   :  { %85 = vmatprep.subr.mxu0 %v37_v13  ;;  %171 = vmatprep.subr.mxu1 %v37_v13  ;;  %v16_v40 = vld [vmem:[%s363_s0 + $0x10] sm:$0xff]  ;;  %v54_v41 = vld [vmem:[%s364_s2] sm:$0xff]  ;;  %v55_v42 = vld [vmem:[%s364_s2 + $0x8] sm:$0xff] }
   0xf   :  { %86 = vmatpush1.msra.mxu0 %v36_v14  ;;  %189 = vmatpush1.msra.mxu1 %v36_v14 }
  0x10   :  { %87 = vmatprep.subr.mxu0 %v35_v15  ;;  %172 = vmatprep.subr.mxu1 %v35_v15 }
  0x11   :  { %88 = vmatpush1.msra.mxu0 %v34_v16  ;;  %190 = vmatpush1.msra.mxu1 %v34_v16 }
  0x12   :  { %89 = vmatprep.subr.mxu0 %v33_v17  ;;  %173 = vmatprep.subr.mxu1 %v33_v17 }
  0x13   :  { %90 = vmatpush1.msra.mxu0 %v32_v18  ;;  %191 = vmatpush1.msra.mxu1 %v32_v18 }
  0x14   :  { %91 = vmatprep.subr.mxu0 %v31_v19  ;;  %174 = vmatprep.subr.mxu1 %v31_v19 }
  0x15   :  { %92 = vmatpush1.msra.mxu0 %v30_v20  ;;  %192 = vmatpush1.msra.mxu1 %v30_v20 }
  0x16   :  { %93 = vmatprep.subr.mxu0 %v29_v21  ;;  %175 = vmatprep.subr.mxu1 %v29_v21 }
  0x17   :  { %94 = vmatpush1.msra.mxu0 %v28_v22  ;;  %193 = vmatpush1.msra.mxu1 %v28_v22 }
  0x18   :  { %95 = vmatprep.subr.mxu0 %v27_v23  ;;  %176 = vmatprep.subr.mxu1 %v27_v23 }
  0x19   :  { %96 = vmatpush1.msra.mxu0 %v26_v24  ;;  %194 = vmatpush1.msra.mxu1 %v26_v24 }
  0x1a   :  { %97 = vmatprep.subr.mxu0 %v25_v25  ;;  %177 = vmatprep.subr.mxu1 %v25_v25 }
  0x1b   :  { %98 = vmatpush1.msra.mxu0 %v24_v26  ;;  %195 = vmatpush1.msra.mxu1 %v24_v26 }
  0x1c   :  { %99 = vmatprep.subr.mxu0 %v23_v27  ;;  %178 = vmatprep.subr.mxu1 %v23_v27 }
  0x1d   :  { %100 = vmatpush1.msra.mxu0 %v22_v28  ;;  %196 = vmatpush1.msra.mxu1 %v22_v28 }
  0x1e   :  { %101 = vmatprep.subr.mxu0 %v21_v29  ;;  %179 = vmatprep.subr.mxu1 %v21_v29 }
  0x1f   :  { %102 = vmatpush1.msra.mxu0 %v20_v30  ;;  %197 = vmatpush1.msra.mxu1 %v20_v30 }
  0x20   :  { %103 = vmatprep.subr.mxu0 %v19_v31  ;;  %180 = vmatprep.subr.mxu1 %v19_v31 }
  0x21   :  { %104 = vmatpush1.msra.mxu0 %v18_v32  ;;  %198 = vmatpush1.msra.mxu1 %v18_v32 }
  0x22   :  { %133 = vmatprep.subr.mxu0 %v53_v33  ;;  %181 = vmatprep.subr.mxu1 %v53_v33 }
  0x23   :  { %134 = vmatpush2.msra.mxu0 %v52_v34  ;;  %199 = vmatpush2.msra.mxu1 %v52_v34 }
  0x24   :  { %135 = vmatprep.subr.mxu0 %v51_v35  ;;  %182 = vmatprep.subr.mxu1 %v51_v35 }
  0x25   :  { %136 = vmatpush2.msra.mxu0 %v50_v36  ;;  %200 = vmatpush2.msra.mxu1 %v50_v36 }
  0x26   :  { %163 = vmatprep.mubr.msk.f32.mxu0 %vm66_vm0, %v15_v37  ;;  %164 = vmatprep.mubr.msk.f32.mxu1 %vm66_vm0, %v17_v38 }
  0x27   :  { %138 = vmatmul.mubr.f32.vlgmr.msra.gmra.mxu0 %v14_v39  ;;  %144 = vmatmul.mubr.f32.vlgmr.msra.gmra.mxu1 %v16_v40 }
  0x28   :  { %58 = vperm.xlu0 %202, %v54_v41  }
  0x2c   :  { %63 = vperm.xlu0 %202, %v55_v42  }
  0xa3   :  { %v59_v43 = vpop.permute.xlu0 %58 }
  0xa7   :  { %v64_v44 = vpop.permute.xlu0 %63 }
  0xe7   :  { %v139_v45 = vpop.f32.mrf.mxu0  ;;  %v145_v46 = vpop.f32.mrf.mxu1 }
  0xe8   :  { %v140_v47 = vadd.f32 %v139_v45, %v59_v43  ;;  %v146_v48 = vadd.f32 %v145_v46, %v64_v44 }
  0xe9   :  { %v141_v49 = vpop.f32.mrf.mxu0  ;;  %v147_v50 = vpop.f32.mrf.mxu1 }
  0xea   :  { %v150_v51 = vmax.f32 %v140_v47, 0.0  ;;  %v152_v52 = vmax.f32 %v146_v48, 0.0  ;;  %v142_v53 = vadd.f32 %v141_v49, %v59_v43  ;;  %v148_v54 = vadd.f32 %v147_v50, %v64_v44 }
  0xec   :  { %154 = vst [vmem:[%s365_s3] sm:$0xff] %v150_v51  ;;  %157 = vst [vmem:[%s365_s3 + $0x10] sm:$0xff] %v152_v52  ;;  %v151_v55 = vmax.f32 %v142_v53, 0.0  ;;  %v153_v56 = vmax.f32 %v148_v54, 0.0 }
  0xee   :  { %156 = vst.msk [vmem:[%s365_s3 + $0x8] sm:$0xff] %vm155_vm1, %v151_v55  ;;  %158 = vst.msk [vmem:[%s365_s3 + $0x18] sm:$0xff] %vm155_vm1, %v153_v56 }

// kernel: celeba_autoencoder.12
= control target key start
LH: loop header
LB: loop body
LE: loop exit
PB: predicated region body
PF: predicated region fallthrough
CT: control target
= control target key end

     0   :  { %s2472_s12 = smov 0   ;;  %s2474_s13 = smov 0   ;;  %s3977_s0 = inlined_call_operand.vmem [shape: f32[8,400], index: 0, kind: input, shape index: {}]   ;;  %s3978_s1 = inlined_call_operand.vmem [shape: f32[400,2304], index: 1, kind: input, shape index: {}]   ;;  %s3979_s2 = inlined_call_operand.vmem [shape: f32[8,1], index: 2, kind: input, shape index: {}]   ;;  %s3980_s3 = inlined_call_operand.vmem [shape: f32[8,2304], index: 3, kind: output, shape index: {}]  }
   0x1   :  { %s2476_s14 = smov 0  }
   0x2 LB: > { %s2343_s15 = sadd.s32 4294967295, %s2448_s14   ;;  %s2489_s16 = sadd.s32 1, %s2448_s14   ;;  %s2448_s14 = sphi %s2476_s14, %s3983_s14   ;;  %s2444_s13 = sphi %s2474_s13, %s3982_s13   ;;  %s2440_s12 = sphi %s2472_s12, %s3981_s12  }
   0x3   : > { %s38_s17 = ssub.s32 %s2448_s14, %s2489_s16  ;;  %s41_s18 = sadd.s32 1, %s2444_s13 }
   0x4   : > { %p39_p0 = scmp.eq.s32.totalorder %s38_s17, 0  ;;  %p48_p1 = scmp.ne.s32.totalorder %s2444_s13, %s2440_s12 }
   0x5   : > { %p49_p2 = scmp.eq.s32.totalorder %s2448_s14, 0  ;;  %p2346_p4 = scmp.ge.s32.totalorder %s2448_s14, 2 }
   0x6   : > { %s2498_s19 = scalar_select %p39_p0, %s2444_s13, %s41_s18  }
   0x7   : > { %p50_p3 = por %p49_p2, %p48_p1  ;;  %127 = sbr.rel (%p2346_p4) target bundleno = 242 (0xf2), region = 24 }
   0xc   : > { %130 = sbr.rel (!%p50_p3) target bundleno = 242 (0xf2), region = 28  ;;  %s132_s20 = sand.u32 (%p50_p3), 1, %s2444_s13  }
   0xd   : > { %s2357_s21 = smul.u32 (%p50_p3), 72, %s2448_s14 }
   0xe   : > { %s2393_s22 = smul.u32 (%p50_p3), 3600, %s132_s20 }
   0xf   : > { %s2506_s25 = scalar_lea.vmem (%p50_p3), %s3978_s1, %s2357_s21 }
  0x10   : > { %v150_v0 = vld [vmem:[%s2506_s25] sm:$0xff] (%p50_p3)  ;;  %v152_v1 = vld [vmem:[%s2506_s25 + $0x8] sm:$0xff] (%p50_p3)  ;;  %v154_v2 = vld [vmem:[%s2506_s25 + $0x10] sm:$0xff] (%p50_p3)  ;;  %s2511_s26 = scalar_lea.vmem (%p50_p3), [#allocation2], %s2393_s22 }
  0x11   : > { %151 = vst [vmem:[%s2511_s26] sm:$0xff] %v150_v0  ;;  %153 = vst [vmem:[%s2511_s26 + $0x8] sm:$0xff] %v152_v1  ;;  %v156_v3 = vld [vmem:[%s2506_s25 + $0x18] sm:$0xff]  ;;  %v158_v4 = vld [vmem:[%s2506_s25 + $0x20] sm:$0xff] }
  0x12   : > { %155 = vst [vmem:[%s2511_s26 + $0x10] sm:$0xff] %v154_v2  ;;  %v160_v5 = vld [vmem:[%s2506_s25 + $0x28] sm:$0xff]  ;;  %157 = vst [vmem:[%s2511_s26 + $0x18] sm:$0xff] %v156_v3  ;;  %v162_v6 = vld [vmem:[%s2506_s25 + $0x30] sm:$0xff] }
  0x13   : > { %159 = vst [vmem:[%s2511_s26 + $0x20] sm:$0xff] %v158_v4  ;;  %161 = vst [vmem:[%s2511_s26 + $0x28] sm:$0xff] %v160_v5  ;;  %v164_v7 = vld [vmem:[%s2506_s25 + $0x38] sm:$0xff]  ;;  %v166_v8 = vld [vmem:[%s2506_s25 + $0x40] sm:$0xff] }
  0x14   : > { %163 = vst [vmem:[%s2511_s26 + $0x30] sm:$0xff] %v162_v6  ;;  %165 = vst [vmem:[%s2511_s26 + $0x38] sm:$0xff] %v164_v7  ;;  %v168_v9 = vld [vmem:[%s2506_s25 + $0x90] sm:$0xff]  ;;  %v170_v10 = vld [vmem:[%s2506_s25 + $0x98] sm:$0xff] }
  0x15   : > { %167 = vst [vmem:[%s2511_s26 + $0x40] sm:$0xff] %v166_v8  ;;  %v172_v11 = vld [vmem:[%s2506_s25 + $0xa0] sm:$0xff]  ;;  %169 = vst [vmem:[%s2511_s26 + $0x48] sm:$0xff] %v168_v9  ;;  %v174_v12 = vld [vmem:[%s2506_s25 + $0xa8] sm:$0xff] }
  0x16   : > { %171 = vst [vmem:[%s2511_s26 + $0x50] sm:$0xff] %v170_v10  ;;  %173 = vst [vmem:[%s2511_s26 + $0x58] sm:$0xff] %v172_v11  ;;  %v176_v13 = vld [vmem:[%s2506_s25 + $0xb0] sm:$0xff]  ;;  %v178_v14 = vld [vmem:[%s2506_s25 + $0xb8] sm:$0xff] }
  0x17   : > { %175 = vst [vmem:[%s2511_s26 + $0x60] sm:$0xff] %v174_v12  ;;  %177 = vst [vmem:[%s2511_s26 + $0x68] sm:$0xff] %v176_v13  ;;  %v180_v15 = vld [vmem:[%s2506_s25 + $0xc0] sm:$0xff]  ;;  %v182_v16 = vld [vmem:[%s2506_s25 + $0xc8] sm:$0xff] }
  0x18   : > { %179 = vst [vmem:[%s2511_s26 + $0x70] sm:$0xff] %v178_v14  ;;  %v184_v17 = vld [vmem:[%s2506_s25 + $0xd0] sm:$0xff]  ;;  %181 = vst [vmem:[%s2511_s26 + $0x78] sm:$0xff] %v180_v15  ;;  %v186_v18 = vld [vmem:[%s2506_s25 + $0x120] sm:$0xff] }
  0x19   : > { %183 = vst [vmem:[%s2511_s26 + $0x80] sm:$0xff] %v182_v16  ;;  %185 = vst [vmem:[%s2511_s26 + $0x88] sm:$0xff] %v184_v17  ;;  %v188_v19 = vld [vmem:[%s2506_s25 + $0x128] sm:$0xff]  ;;  %v190_v20 = vld [vmem:[%s2506_s25 + $0x130] sm:$0xff] }
  0x1a   : > { %187 = vst [vmem:[%s2511_s26 + $0x90] sm:$0xff] %v186_v18  ;;  %189 = vst [vmem:[%s2511_s26 + $0x98] sm:$0xff] %v188_v19  ;;  %v192_v21 = vld [vmem:[%s2506_s25 + $0x138] sm:$0xff]  ;;  %v194_v22 = vld [vmem:[%s2506_s25 + $0x140] sm:$0xff] }
  0x1b   : > { %191 = vst [vmem:[%s2511_s26 + $0xa0] sm:$0xff] %v190_v20  ;;  %v196_v23 = vld [vmem:[%s2506_s25 + $0x148] sm:$0xff]  ;;  %193 = vst [vmem:[%s2511_s26 + $0xa8] sm:$0xff] %v192_v21  ;;  %v198_v24 = vld [vmem:[%s2506_s25 + $0x150] sm:$0xff] }
  0x1c   : > { %195 = vst [vmem:[%s2511_s26 + $0xb0] sm:$0xff] %v194_v22  ;;  %197 = vst [vmem:[%s2511_s26 + $0xb8] sm:$0xff] %v196_v23  ;;  %v200_v25 = vld [vmem:[%s2506_s25 + $0x158] sm:$0xff]  ;;  %v202_v26 = vld [vmem:[%s2506_s25 + $0x160] sm:$0xff] }
  0x1d   : > { %199 = vst [vmem:[%s2511_s26 + $0xc0] sm:$0xff] %v198_v24  ;;  %201 = vst [vmem:[%s2511_s26 + $0xc8] sm:$0xff] %v200_v25  ;;  %v204_v27 = vld [vmem:[%s2506_s25 + $0x1b0] sm:$0xff]  ;;  %v206_v28 = vld [vmem:[%s2506_s25 + $0x1b8] sm:$0xff] }
  0x1e   : > { %203 = vst [vmem:[%s2511_s26 + $0xd0] sm:$0xff] %v202_v26  ;;  %v208_v29 = vld [vmem:[%s2506_s25 + $0x1c0] sm:$0xff]  ;;  %205 = vst [vmem:[%s2511_s26 + $0xd8] sm:$0xff] %v204_v27  ;;  %v210_v30 = vld [vmem:[%s2506_s25 + $0x1c8] sm:$0xff] }
  0x1f   : > { %207 = vst [vmem:[%s2511_s26 + $0xe0] sm:$0xff] %v206_v28  ;;  %209 = vst [vmem:[%s2511_s26 + $0xe8] sm:$0xff] %v208_v29  ;;  %v212_v31 = vld [vmem:[%s2506_s25 + $0x1d0] sm:$0xff]  ;;  %v214_v32 = vld [vmem:[%s2506_s25 + $0x1d8] sm:$0xff] }
  0x20   : > { %211 = vst [vmem:[%s2511_s26 + $0xf0] sm:$0xff] %v210_v30  ;;  %213 = vst [vmem:[%s2511_s26 + $0xf8] sm:$0xff] %v212_v31  ;;  %v216_v33 = vld [vmem:[%s2506_s25 + $0x1e0] sm:$0xff]  ;;  %v218_v34 = vld [vmem:[%s2506_s25 + $0x1e8] sm:$0xff] }
  0x21   : > { %215 = vst [vmem:[%s2511_s26 + $0x100] sm:$0xff] %v214_v32  ;;  %v220_v35 = vld [vmem:[%s2506_s25 + $0x1f0] sm:$0xff]  ;;  %217 = vst [vmem:[%s2511_s26 + $0x108] sm:$0xff] %v216_v33  ;;  %v222_v36 = vld [vmem:[%s2506_s25 + $0x240] sm:$0xff] }
  0x22   : > { %219 = vst [vmem:[%s2511_s26 + $0x110] sm:$0xff] %v218_v34  ;;  %221 = vst [vmem:[%s2511_s26 + $0x118] sm:$0xff] %v220_v35  ;;  %v224_v37 = vld [vmem:[%s2506_s25 + $0x248] sm:$0xff]  ;;  %v226_v38 = vld [vmem:[%s2506_s25 + $0x250] sm:$0xff] }
  0x23   : > { %223 = vst [vmem:[%s2511_s26 + $0x120] sm:$0xff] %v222_v36  ;;  %225 = vst [vmem:[%s2511_s26 + $0x128] sm:$0xff] %v224_v37  ;;  %v228_v39 = vld [vmem:[%s2506_s25 + $0x258] sm:$0xff]  ;;  %v230_v40 = vld [vmem:[%s2506_s25 + $0x260] sm:$0xff] }
  0x24   : > { %227 = vst [vmem:[%s2511_s26 + $0x130] sm:$0xff] %v226_v38  ;;  %v232_v41 = vld [vmem:[%s2506_s25 + $0x268] sm:$0xff]  ;;  %229 = vst [vmem:[%s2511_s26 + $0x138] sm:$0xff] %v228_v39  ;;  %v234_v42 = vld [vmem:[%s2506_s25 + $0x270] sm:$0xff] }
  0x25   : > { %231 = vst [vmem:[%s2511_s26 + $0x140] sm:$0xff] %v230_v40  ;;  %233 = vst [vmem:[%s2511_s26 + $0x148] sm:$0xff] %v232_v41  ;;  %v236_v43 = vld [vmem:[%s2506_s25 + $0x278] sm:$0xff]  ;;  %v238_v44 = vld [vmem:[%s2506_s25 + $0x280] sm:$0xff] }
  0x26   : > { %235 = vst [vmem:[%s2511_s26 + $0x150] sm:$0xff] %v234_v42  ;;  %237 = vst [vmem:[%s2511_s26 + $0x158] sm:$0xff] %v236_v43  ;;  %v240_v45 = vld [vmem:[%s2506_s25 + $0x2d0] sm:$0xff]  ;;  %v242_v46 = vld [vmem:[%s2506_s25 + $0x2d8] sm:$0xff] }
  0x27   : > { %239 = vst [vmem:[%s2511_s26 + $0x160] sm:$0xff] %v238_v44  ;;  %v244_v47 = vld [vmem:[%s2506_s25 + $0x2e0] sm:$0xff]  ;;  %241 = vst [vmem:[%s2511_s26 + $0x168] sm:$0xff] %v240_v45  ;;  %v246_v48 = vld [vmem:[%s2506_s25 + $0x2e8] sm:$0xff] }
  0x28   : > { %243 = vst [vmem:[%s2511_s26 + $0x170] sm:$0xff] %v242_v46  ;;  %245 = vst [vmem:[%s2511_s26 + $0x178] sm:$0xff] %v244_v47  ;;  %v248_v49 = vld [vmem:[%s2506_s25 + $0x2f0] sm:$0xff]  ;;  %v250_v50 = vld [vmem:[%s2506_s25 + $0x2f8] sm:$0xff] }
  0x29   : > { %247 = vst [vmem:[%s2511_s26 + $0x180] sm:$0xff] %v246_v48  ;;  %249 = vst [vmem:[%s2511_s26 + $0x188] sm:$0xff] %v248_v49  ;;  %v252_v51 = vld [vmem:[%s2506_s25 + $0x300] sm:$0xff]  ;;  %v254_v52 = vld [vmem:[%s2506_s25 + $0x308] sm:$0xff] }
  0x2a   : > { %251 = vst [vmem:[%s2511_s26 + $0x190] sm:$0xff] %v250_v50  ;;  %v256_v53 = vld [vmem:[%s2506_s25 + $0x310] sm:$0xff]  ;;  %253 = vst [vmem:[%s2511_s26 + $0x198] sm:$0xff] %v252_v51  ;;  %v258_v54 = vld [vmem:[%s2506_s25 + $0x360] sm:$0xff] }
  0x2b   : > { %255 = vst [vmem:[%s2511_s26 + $0x1a0] sm:$0xff] %v254_v52  ;;  %257 = vst [vmem:[%s2511_s26 + $0x1a8] sm:$0xff] %v256_v53  ;;  %v260_v55 = vld [vmem:[%s2506_s25 + $0x368] sm:$0xff]  ;;  %v262_v56 = vld [vmem:[%s2506_s25 + $0x370] sm:$0xff] }
  0x2c   : > { %259 = vst [vmem:[%s2511_s26 + $0x1b0] sm:$0xff] %v258_v54  ;;  %261 = vst [vmem:[%s2511_s26 + $0x1b8] sm:$0xff] %v260_v55  ;;  %v264_v57 = vld [vmem:[%s2506_s25 + $0x378] sm:$0xff]  ;;  %v266_v58 = vld [vmem:[%s2506_s25 + $0x380] sm:$0xff] }
  0x2d   : > { %263 = vst [vmem:[%s2511_s26 + $0x1c0] sm:$0xff] %v262_v56  ;;  %v268_v59 = vld [vmem:[%s2506_s25 + $0x388] sm:$0xff]  ;;  %265 = vst [vmem:[%s2511_s26 + $0x1c8] sm:$0xff] %v264_v57  ;;  %v270_v60 = vld [vmem:[%s2506_s25 + $0x390] sm:$0xff] }
  0x2e   : > { %267 = vst [vmem:[%s2511_s26 + $0x1d0] sm:$0xff] %v266_v58  ;;  %269 = vst [vmem:[%s2511_s26 + $0x1d8] sm:$0xff] %v268_v59  ;;  %v272_v61 = vld [vmem:[%s2506_s25 + $0x398] sm:$0xff]  ;;  %v274_v62 = vld [vmem:[%s2506_s25 + $0x3a0] sm:$0xff] }
  0x2f   : > { %271 = vst [vmem:[%s2511_s26 + $0x1e0] sm:$0xff] %v270_v60  ;;  %273 = vst [vmem:[%s2511_s26 + $0x1e8] sm:$0xff] %v272_v61  ;;  %v276_v63 = vld [vmem:[%s2506_s25 + $0x3f0] sm:$0xff]  ;;  %v278_v0 = vld [vmem:[%s2506_s25 + $0x3f8] sm:$0xff] }
  0x30   : > { %275 = vst [vmem:[%s2511_s26 + $0x1f0] sm:$0xff] %v274_v62  ;;  %v280_v1 = vld [vmem:[%s2506_s25 + $0x400] sm:$0xff]  ;;  %277 = vst [vmem:[%s2511_s26 + $0x1f8] sm:$0xff] %v276_v63  ;;  %v282_v2 = vld [vmem:[%s2506_s25 + $0x408] sm:$0xff] }
  0x31   : > { %279 = vst [vmem:[%s2511_s26 + $0x200] sm:$0xff] %v278_v0  ;;  %281 = vst [vmem:[%s2511_s26 + $0x208] sm:$0xff] %v280_v1  ;;  %v284_v3 = vld [vmem:[%s2506_s25 + $0x410] sm:$0xff]  ;;  %v286_v4 = vld [vmem:[%s2506_s25 + $0x418] sm:$0xff] }
  0x32   : > { %283 = vst [vmem:[%s2511_s26 + $0x210] sm:$0xff] %v282_v2  ;;  %285 = vst [vmem:[%s2511_s26 + $0x218] sm:$0xff] %v284_v3  ;;  %v288_v5 = vld [vmem:[%s2506_s25 + $0x420] sm:$0xff]  ;;  %v290_v6 = vld [vmem:[%s2506_s25 + $0x428] sm:$0xff] }
  0x33   : > { %287 = vst [vmem:[%s2511_s26 + $0x220] sm:$0xff] %v286_v4  ;;  %v292_v7 = vld [vmem:[%s2506_s25 + $0x430] sm:$0xff]  ;;  %289 = vst [vmem:[%s2511_s26 + $0x228] sm:$0xff] %v288_v5  ;;  %v294_v8 = vld [vmem:[%s2506_s25 + $0x480] sm:$0xff] }
  0x34   : > { %291 = vst [vmem:[%s2511_s26 + $0x230] sm:$0xff] %v290_v6  ;;  %293 = vst [vmem:[%s2511_s26 + $0x238] sm:$0xff] %v292_v7  ;;  %v296_v9 = vld [vmem:[%s2506_s25 + $0x488] sm:$0xff]  ;;  %v298_v10 = vld [vmem:[%s2506_s25 + $0x490] sm:$0xff] }
  0x35   : > { %295 = vst [vmem:[%s2511_s26 + $0x240] sm:$0xff] %v294_v8  ;;  %297 = vst [vmem:[%s2511_s26 + $0x248] sm:$0xff] %v296_v9  ;;  %v300_v11 = vld [vmem:[%s2506_s25 + $0x498] sm:$0xff]  ;;  %v302_v12 = vld [vmem:[%s2506_s25 + $0x4a0] sm:$0xff] }
  0x36   : > { %299 = vst [vmem:[%s2511_s26 + $0x250] sm:$0xff] %v298_v10  ;;  %v304_v13 = vld [vmem:[%s2506_s25 + $0x4a8] sm:$0xff]  ;;  %301 = vst [vmem:[%s2511_s26 + $0x258] sm:$0xff] %v300_v11  ;;  %v306_v14 = vld [vmem:[%s2506_s25 + $0x4b0] sm:$0xff] }
  0x37   : > { %303 = vst [vmem:[%s2511_s26 + $0x260] sm:$0xff] %v302_v12  ;;  %305 = vst [vmem:[%s2511_s26 + $0x268] sm:$0xff] %v304_v13  ;;  %v308_v15 = vld [vmem:[%s2506_s25 + $0x4b8] sm:$0xff]  ;;  %v310_v16 = vld [vmem:[%s2506_s25 + $0x4c0] sm:$0xff] }
  0x38   : > { %307 = vst [vmem:[%s2511_s26 + $0x270] sm:$0xff] %v306_v14  ;;  %309 = vst [vmem:[%s2511_s26 + $0x278] sm:$0xff] %v308_v15  ;;  %v312_v17 = vld [vmem:[%s2506_s25 + $0x510] sm:$0xff]  ;;  %v314_v18 = vld [vmem:[%s2506_s25 + $0x518] sm:$0xff] }
  0x39   : > { %311 = vst [vmem:[%s2511_s26 + $0x280] sm:$0xff] %v310_v16  ;;  %v316_v19 = vld [vmem:[%s2506_s25 + $0x520] sm:$0xff]  ;;  %313 = vst [vmem:[%s2511_s26 + $0x288] sm:$0xff] %v312_v17  ;;  %v318_v20 = vld [vmem:[%s2506_s25 + $0x528] sm:$0xff] }
  0x3a   : > { %315 = vst [vmem:[%s2511_s26 + $0x290] sm:$0xff] %v314_v18  ;;  %317 = vst [vmem:[%s2511_s26 + $0x298] sm:$0xff] %v316_v19  ;;  %v320_v21 = vld [vmem:[%s2506_s25 + $0x530] sm:$0xff]  ;;  %v322_v22 = vld [vmem:[%s2506_s25 + $0x538] sm:$0xff] }
  0x3b   : > { %319 = vst [vmem:[%s2511_s26 + $0x2a0] sm:$0xff] %v318_v20  ;;  %321 = vst [vmem:[%s2511_s26 + $0x2a8] sm:$0xff] %v320_v21  ;;  %v324_v23 = vld [vmem:[%s2506_s25 + $0x540] sm:$0xff]  ;;  %v326_v24 = vld [vmem:[%s2506_s25 + $0x548] sm:$0xff] }
  0x3c   : > { %323 = vst [vmem:[%s2511_s26 + $0x2b0] sm:$0xff] %v322_v22  ;;  %v328_v25 = vld [vmem:[%s2506_s25 + $0x550] sm:$0xff]  ;;  %325 = vst [vmem:[%s2511_s26 + $0x2b8] sm:$0xff] %v324_v23  ;;  %v330_v26 = vld [vmem:[%s2506_s25 + $0x5a0] sm:$0xff] }
  0x3d   : > { %327 = vst [vmem:[%s2511_s26 + $0x2c0] sm:$0xff] %v326_v24  ;;  %329 = vst [vmem:[%s2511_s26 + $0x2c8] sm:$0xff] %v328_v25  ;;  %v332_v27 = vld [vmem:[%s2506_s25 + $0x5a8] sm:$0xff]  ;;  %v334_v28 = vld [vmem:[%s2506_s25 + $0x5b0] sm:$0xff] }
  0x3e   : > { %331 = vst [vmem:[%s2511_s26 + $0x2d0] sm:$0xff] %v330_v26  ;;  %333 = vst [vmem:[%s2511_s26 + $0x2d8] sm:$0xff] %v332_v27  ;;  %v336_v29 = vld [vmem:[%s2506_s25 + $0x5b8] sm:$0xff]  ;;  %v338_v30 = vld [vmem:[%s2506_s25 + $0x5c0] sm:$0xff] }
  0x3f   : > { %335 = vst [vmem:[%s2511_s26 + $0x2e0] sm:$0xff] %v334_v28  ;;  %v340_v31 = vld [vmem:[%s2506_s25 + $0x5c8] sm:$0xff]  ;;  %337 = vst [vmem:[%s2511_s26 + $0x2e8] sm:$0xff] %v336_v29  ;;  %v342_v32 = vld [vmem:[%s2506_s25 + $0x5d0] sm:$0xff] }
  0x40   : > { %339 = vst [vmem:[%s2511_s26 + $0x2f0] sm:$0xff] %v338_v30  ;;  %341 = vst [vmem:[%s2511_s26 + $0x2f8] sm:$0xff] %v340_v31  ;;  %v344_v33 = vld [vmem:[%s2506_s25 + $0x5d8] sm:$0xff]  ;;  %v346_v34 = vld [vmem:[%s2506_s25 + $0x5e0] sm:$0xff] }
  0x41   : > { %343 = vst [vmem:[%s2511_s26 + $0x300] sm:$0xff] %v342_v32  ;;  %345 = vst [vmem:[%s2511_s26 + $0x308] sm:$0xff] %v344_v33  ;;  %v348_v35 = vld [vmem:[%s2506_s25 + $0x630] sm:$0xff]  ;;  %v350_v36 = vld [vmem:[%s2506_s25 + $0x638] sm:$0xff] }
  0x42   : > { %347 = vst [vmem:[%s2511_s26 + $0x310] sm:$0xff] %v346_v34  ;;  %v352_v37 = vld [vmem:[%s2506_s25 + $0x640] sm:$0xff]  ;;  %349 = vst [vmem:[%s2511_s26 + $0x318] sm:$0xff] %v348_v35  ;;  %v354_v38 = vld [vmem:[%s2506_s25 + $0x648] sm:$0xff] }
  0x43   : > { %351 = vst [vmem:[%s2511_s26 + $0x320] sm:$0xff] %v350_v36  ;;  %353 = vst [vmem:[%s2511_s26 + $0x328] sm:$0xff] %v352_v37  ;;  %v356_v39 = vld [vmem:[%s2506_s25 + $0x650] sm:$0xff]  ;;  %v358_v40 = vld [vmem:[%s2506_s25 + $0x658] sm:$0xff] }
  0x44   : > { %355 = vst [vmem:[%s2511_s26 + $0x330] sm:$0xff] %v354_v38  ;;  %357 = vst [vmem:[%s2511_s26 + $0x338] sm:$0xff] %v356_v39  ;;  %v360_v41 = vld [vmem:[%s2506_s25 + $0x660] sm:$0xff]  ;;  %v362_v42 = vld [vmem:[%s2506_s25 + $0x668] sm:$0xff] }
  0x45   : > { %359 = vst [vmem:[%s2511_s26 + $0x340] sm:$0xff] %v358_v40  ;;  %v364_v43 = vld [vmem:[%s2506_s25 + $0x670] sm:$0xff]  ;;  %361 = vst [vmem:[%s2511_s26 + $0x348] sm:$0xff] %v360_v41  ;;  %v366_v44 = vld [vmem:[%s2506_s25 + $0x6c0] sm:$0xff] }
  0x46   : > { %363 = vst [vmem:[%s2511_s26 + $0x350] sm:$0xff] %v362_v42  ;;  %365 = vst [vmem:[%s2511_s26 + $0x358] sm:$0xff] %v364_v43  ;;  %v368_v45 = vld [vmem:[%s2506_s25 + $0x6c8] sm:$0xff]  ;;  %v370_v46 = vld [vmem:[%s2506_s25 + $0x6d0] sm:$0xff] }
  0x47   : > { %367 = vst [vmem:[%s2511_s26 + $0x360] sm:$0xff] %v366_v44  ;;  %369 = vst [vmem:[%s2511_s26 + $0x368] sm:$0xff] %v368_v45  ;;  %v372_v47 = vld [vmem:[%s2506_s25 + $0x6d8] sm:$0xff]  ;;  %v374_v48 = vld [vmem:[%s2506_s25 + $0x6e0] sm:$0xff] }
  0x48   : > { %371 = vst [vmem:[%s2511_s26 + $0x370] sm:$0xff] %v370_v46  ;;  %v376_v49 = vld [vmem:[%s2506_s25 + $0x6e8] sm:$0xff]  ;;  %373 = vst [vmem:[%s2511_s26 + $0x378] sm:$0xff] %v372_v47  ;;  %v378_v50 = vld [vmem:[%s2506_s25 + $0x6f0] sm:$0xff] }
  0x49   : > { %375 = vst [vmem:[%s2511_s26 + $0x380] sm:$0xff] %v374_v48  ;;  %377 = vst [vmem:[%s2511_s26 + $0x388] sm:$0xff] %v376_v49  ;;  %v380_v51 = vld [vmem:[%s2506_s25 + $0x6f8] sm:$0xff]  ;;  %v382_v52 = vld [vmem:[%s2506_s25 + $0x700] sm:$0xff] }
  0x4a   : > { %379 = vst [vmem:[%s2511_s26 + $0x390] sm:$0xff] %v378_v50  ;;  %381 = vst [vmem:[%s2511_s26 + $0x398] sm:$0xff] %v380_v51  ;;  %v384_v53 = vld [vmem:[%s2506_s25 + $0x750] sm:$0xff]  ;;  %v386_v54 = vld [vmem:[%s2506_s25 + $0x758] sm:$0xff] }
  0x4b   : > { %383 = vst [vmem:[%s2511_s26 + $0x3a0] sm:$0xff] %v382_v52  ;;  %v388_v55 = vld [vmem:[%s2506_s25 + $0x760] sm:$0xff]  ;;  %385 = vst [vmem:[%s2511_s26 + $0x3a8] sm:$0xff] %v384_v53  ;;  %v390_v56 = vld [vmem:[%s2506_s25 + $0x768] sm:$0xff] }
  0x4c   : > { %387 = vst [vmem:[%s2511_s26 + $0x3b0] sm:$0xff] %v386_v54  ;;  %389 = vst [vmem:[%s2511_s26 + $0x3b8] sm:$0xff] %v388_v55  ;;  %v392_v57 = vld [vmem:[%s2506_s25 + $0x770] sm:$0xff]  ;;  %v394_v58 = vld [vmem:[%s2506_s25 + $0x778] sm:$0xff] }
  0x4d   : > { %391 = vst [vmem:[%s2511_s26 + $0x3c0] sm:$0xff] %v390_v56  ;;  %393 = vst [vmem:[%s2511_s26 + $0x3c8] sm:$0xff] %v392_v57  ;;  %v396_v59 = vld [vmem:[%s2506_s25 + $0x780] sm:$0xff]  ;;  %v398_v60 = vld [vmem:[%s2506_s25 + $0x788] sm:$0xff] }
  0x4e   : > { %395 = vst [vmem:[%s2511_s26 + $0x3d0] sm:$0xff] %v394_v58  ;;  %v400_v61 = vld [vmem:[%s2506_s25 + $0x790] sm:$0xff]  ;;  %397 = vst [vmem:[%s2511_s26 + $0x3d8] sm:$0xff] %v396_v59  ;;  %v402_v62 = vld [vmem:[%s2506_s25 + $0x7e0] sm:$0xff] }
  0x4f   : > { %399 = vst [vmem:[%s2511_s26 + $0x3e0] sm:$0xff] %v398_v60  ;;  %401 = vst [vmem:[%s2511_s26 + $0x3e8] sm:$0xff] %v400_v61  ;;  %v404_v63 = vld [vmem:[%s2506_s25 + $0x7e8] sm:$0xff]  ;;  %v406_v0 = vld [vmem:[%s2506_s25 + $0x7f0] sm:$0xff] }
  0x50   : > { %403 = vst [vmem:[%s2511_s26 + $0x3f0] sm:$0xff] %v402_v62  ;;  %405 = vst [vmem:[%s2511_s26 + $0x3f8] sm:$0xff] %v404_v63  ;;  %v408_v1 = vld [vmem:[%s2506_s25 + $0x7f8] sm:$0xff]  ;;  %v410_v2 = vld [vmem:[%s2506_s25 + $0x800] sm:$0xff] }
  0x51   : > { %407 = vst [vmem:[%s2511_s26 + $0x400] sm:$0xff] %v406_v0  ;;  %v412_v3 = vld [vmem:[%s2506_s25 + $0x808] sm:$0xff]  ;;  %409 = vst [vmem:[%s2511_s26 + $0x408] sm:$0xff] %v408_v1  ;;  %v414_v4 = vld [vmem:[%s2506_s25 + $0x810] sm:$0xff] }
  0x52   : > { %411 = vst [vmem:[%s2511_s26 + $0x410] sm:$0xff] %v410_v2  ;;  %413 = vst [vmem:[%s2511_s26 + $0x418] sm:$0xff] %v412_v3  ;;  %v416_v5 = vld [vmem:[%s2506_s25 + $0x818] sm:$0xff]  ;;  %v418_v6 = vld [vmem:[%s2506_s25 + $0x820] sm:$0xff] }
  0x53   : > { %415 = vst [vmem:[%s2511_s26 + $0x420] sm:$0xff] %v414_v4  ;;  %417 = vst [vmem:[%s2511_s26 + $0x428] sm:$0xff] %v416_v5  ;;  %v420_v7 = vld [vmem:[%s2506_s25 + $0x870] sm:$0xff]  ;;  %v422_v8 = vld [vmem:[%s2506_s25 + $0x878] sm:$0xff] }
  0x54   : > { %419 = vst [vmem:[%s2511_s26 + $0x430] sm:$0xff] %v418_v6  ;;  %v424_v9 = vld [vmem:[%s2506_s25 + $0x880] sm:$0xff]  ;;  %421 = vst [vmem:[%s2511_s26 + $0x438] sm:$0xff] %v420_v7  ;;  %v426_v10 = vld [vmem:[%s2506_s25 + $0x888] sm:$0xff] }
  0x55   : > { %423 = vst [vmem:[%s2511_s26 + $0x440] sm:$0xff] %v422_v8  ;;  %425 = vst [vmem:[%s2511_s26 + $0x448] sm:$0xff] %v424_v9  ;;  %v428_v11 = vld [vmem:[%s2506_s25 + $0x890] sm:$0xff]  ;;  %v430_v12 = vld [vmem:[%s2506_s25 + $0x898] sm:$0xff] }
  0x56   : > { %427 = vst [vmem:[%s2511_s26 + $0x450] sm:$0xff] %v426_v10  ;;  %429 = vst [vmem:[%s2511_s26 + $0x458] sm:$0xff] %v428_v11  ;;  %v432_v13 = vld [vmem:[%s2506_s25 + $0x8a0] sm:$0xff]  ;;  %v434_v14 = vld [vmem:[%s2506_s25 + $0x8a8] sm:$0xff] }
  0x57   : > { %431 = vst [vmem:[%s2511_s26 + $0x460] sm:$0xff] %v430_v12  ;;  %v436_v15 = vld [vmem:[%s2506_s25 + $0x8b0] sm:$0xff]  ;;  %433 = vst [vmem:[%s2511_s26 + $0x468] sm:$0xff] %v432_v13  ;;  %v438_v16 = vld [vmem:[%s2506_s25 + $0x900] sm:$0xff] }
  0x58   : > { %435 = vst [vmem:[%s2511_s26 + $0x470] sm:$0xff] %v434_v14  ;;  %437 = vst [vmem:[%s2511_s26 + $0x478] sm:$0xff] %v436_v15  ;;  %v440_v17 = vld [vmem:[%s2506_s25 + $0x908] sm:$0xff]  ;;  %v442_v18 = vld [vmem:[%s2506_s25 + $0x910] sm:$0xff] }
  0x59   : > { %439 = vst [vmem:[%s2511_s26 + $0x480] sm:$0xff] %v438_v16  ;;  %441 = vst [vmem:[%s2511_s26 + $0x488] sm:$0xff] %v440_v17  ;;  %v444_v19 = vld [vmem:[%s2506_s25 + $0x918] sm:$0xff]  ;;  %v446_v20 = vld [vmem:[%s2506_s25 + $0x920] sm:$0xff] }
  0x5a   : > { %443 = vst [vmem:[%s2511_s26 + $0x490] sm:$0xff] %v442_v18  ;;  %v448_v21 = vld [vmem:[%s2506_s25 + $0x928] sm:$0xff]  ;;  %445 = vst [vmem:[%s2511_s26 + $0x498] sm:$0xff] %v444_v19  ;;  %v450_v22 = vld [vmem:[%s2506_s25 + $0x930] sm:$0xff] }
  0x5b   : > { %447 = vst [vmem:[%s2511_s26 + $0x4a0] sm:$0xff] %v446_v20  ;;  %449 = vst [vmem:[%s2511_s26 + $0x4a8] sm:$0xff] %v448_v21  ;;  %v452_v23 = vld [vmem:[%s2506_s25 + $0x938] sm:$0xff]  ;;  %v454_v24 = vld [vmem:[%s2506_s25 + $0x940] sm:$0xff] }
  0x5c   : > { %451 = vst [vmem:[%s2511_s26 + $0x4b0] sm:$0xff] %v450_v22  ;;  %453 = vst [vmem:[%s2511_s26 + $0x4b8] sm:$0xff] %v452_v23  ;;  %v456_v25 = vld [vmem:[%s2506_s25 + $0x990] sm:$0xff]  ;;  %v458_v26 = vld [vmem:[%s2506_s25 + $0x998] sm:$0xff] }
  0x5d   : > { %455 = vst [vmem:[%s2511_s26 + $0x4c0] sm:$0xff] %v454_v24  ;;  %v460_v27 = vld [vmem:[%s2506_s25 + $0x9a0] sm:$0xff]  ;;  %457 = vst [vmem:[%s2511_s26 + $0x4c8] sm:$0xff] %v456_v25  ;;  %v462_v28 = vld [vmem:[%s2506_s25 + $0x9a8] sm:$0xff] }
  0x5e   : > { %459 = vst [vmem:[%s2511_s26 + $0x4d0] sm:$0xff] %v458_v26  ;;  %461 = vst [vmem:[%s2511_s26 + $0x4d8] sm:$0xff] %v460_v27  ;;  %v464_v29 = vld [vmem:[%s2506_s25 + $0x9b0] sm:$0xff]  ;;  %v466_v30 = vld [vmem:[%s2506_s25 + $0x9b8] sm:$0xff] }
  0x5f   : > { %463 = vst [vmem:[%s2511_s26 + $0x4e0] sm:$0xff] %v462_v28  ;;  %465 = vst [vmem:[%s2511_s26 + $0x4e8] sm:$0xff] %v464_v29  ;;  %v468_v31 = vld [vmem:[%s2506_s25 + $0x9c0] sm:$0xff]  ;;  %v470_v32 = vld [vmem:[%s2506_s25 + $0x9c8] sm:$0xff] }
  0x60   : > { %467 = vst [vmem:[%s2511_s26 + $0x4f0] sm:$0xff] %v466_v30  ;;  %v472_v33 = vld [vmem:[%s2506_s25 + $0x9d0] sm:$0xff]  ;;  %469 = vst [vmem:[%s2511_s26 + $0x4f8] sm:$0xff] %v468_v31  ;;  %v474_v34 = vld [vmem:[%s2506_s25 + $0xa20] sm:$0xff] }
  0x61   : > { %471 = vst [vmem:[%s2511_s26 + $0x500] sm:$0xff] %v470_v32  ;;  %473 = vst [vmem:[%s2511_s26 + $0x508] sm:$0xff] %v472_v33  ;;  %v476_v35 = vld [vmem:[%s2506_s25 + $0xa28] sm:$0xff]  ;;  %v478_v36 = vld [vmem:[%s2506_s25 + $0xa30] sm:$0xff] }
  0x62   : > { %475 = vst [vmem:[%s2511_s26 + $0x510] sm:$0xff] %v474_v34  ;;  %477 = vst [vmem:[%s2511_s26 + $0x518] sm:$0xff] %v476_v35  ;;  %v480_v37 = vld [vmem:[%s2506_s25 + $0xa38] sm:$0xff]  ;;  %v482_v38 = vld [vmem:[%s2506_s25 + $0xa40] sm:$0xff] }
  0x63   : > { %479 = vst [vmem:[%s2511_s26 + $0x520] sm:$0xff] %v478_v36  ;;  %v484_v39 = vld [vmem:[%s2506_s25 + $0xa48] sm:$0xff]  ;;  %481 = vst [vmem:[%s2511_s26 + $0x528] sm:$0xff] %v480_v37  ;;  %v486_v40 = vld [vmem:[%s2506_s25 + $0xa50] sm:$0xff] }
  0x64   : > { %483 = vst [vmem:[%s2511_s26 + $0x530] sm:$0xff] %v482_v38  ;;  %485 = vst [vmem:[%s2511_s26 + $0x538] sm:$0xff] %v484_v39  ;;  %v488_v41 = vld [vmem:[%s2506_s25 + $0xa58] sm:$0xff]  ;;  %v490_v42 = vld [vmem:[%s2506_s25 + $0xa60] sm:$0xff] }
  0x65   : > { %487 = vst [vmem:[%s2511_s26 + $0x540] sm:$0xff] %v486_v40  ;;  %489 = vst [vmem:[%s2511_s26 + $0x548] sm:$0xff] %v488_v41  ;;  %v492_v43 = vld [vmem:[%s2506_s25 + $0xab0] sm:$0xff]  ;;  %v494_v44 = vld [vmem:[%s2506_s25 + $0xab8] sm:$0xff] }
  0x66   : > { %491 = vst [vmem:[%s2511_s26 + $0x550] sm:$0xff] %v490_v42  ;;  %v496_v45 = vld [vmem:[%s2506_s25 + $0xac0] sm:$0xff]  ;;  %493 = vst [vmem:[%s2511_s26 + $0x558] sm:$0xff] %v492_v43  ;;  %v498_v46 = vld [vmem:[%s2506_s25 + $0xac8] sm:$0xff] }
  0x67   : > { %495 = vst [vmem:[%s2511_s26 + $0x560] sm:$0xff] %v494_v44  ;;  %497 = vst [vmem:[%s2511_s26 + $0x568] sm:$0xff] %v496_v45  ;;  %v500_v47 = vld [vmem:[%s2506_s25 + $0xad0] sm:$0xff]  ;;  %v502_v48 = vld [vmem:[%s2506_s25 + $0xad8] sm:$0xff] }
  0x68   : > { %499 = vst [vmem:[%s2511_s26 + $0x570] sm:$0xff] %v498_v46  ;;  %501 = vst [vmem:[%s2511_s26 + $0x578] sm:$0xff] %v500_v47  ;;  %v504_v49 = vld [vmem:[%s2506_s25 + $0xae0] sm:$0xff]  ;;  %v506_v50 = vld [vmem:[%s2506_s25 + $0xae8] sm:$0xff] }
  0x69   : > { %503 = vst [vmem:[%s2511_s26 + $0x580] sm:$0xff] %v502_v48  ;;  %v508_v51 = vld [vmem:[%s2506_s25 + $0xaf0] sm:$0xff]  ;;  %505 = vst [vmem:[%s2511_s26 + $0x588] sm:$0xff] %v504_v49  ;;  %v510_v52 = vld [vmem:[%s2506_s25 + $0xb40] sm:$0xff] }
  0x6a   : > { %507 = vst [vmem:[%s2511_s26 + $0x590] sm:$0xff] %v506_v50  ;;  %509 = vst [vmem:[%s2511_s26 + $0x598] sm:$0xff] %v508_v51  ;;  %v512_v53 = vld [vmem:[%s2506_s25 + $0xb48] sm:$0xff]  ;;  %v514_v54 = vld [vmem:[%s2506_s25 + $0xb50] sm:$0xff] }
  0x6b   : > { %511 = vst [vmem:[%s2511_s26 + $0x5a0] sm:$0xff] %v510_v52  ;;  %513 = vst [vmem:[%s2511_s26 + $0x5a8] sm:$0xff] %v512_v53  ;;  %v516_v55 = vld [vmem:[%s2506_s25 + $0xb58] sm:$0xff]  ;;  %v518_v56 = vld [vmem:[%s2506_s25 + $0xb60] sm:$0xff] }
  0x6c   : > { %515 = vst [vmem:[%s2511_s26 + $0x5b0] sm:$0xff] %v514_v54  ;;  %v520_v57 = vld [vmem:[%s2506_s25 + $0xb68] sm:$0xff]  ;;  %517 = vst [vmem:[%s2511_s26 + $0x5b8] sm:$0xff] %v516_v55  ;;  %v522_v58 = vld [vmem:[%s2506_s25 + $0xb70] sm:$0xff] }
  0x6d   : > { %519 = vst [vmem:[%s2511_s26 + $0x5c0] sm:$0xff] %v518_v56  ;;  %521 = vst [vmem:[%s2511_s26 + $0x5c8] sm:$0xff] %v520_v57  ;;  %v524_v59 = vld [vmem:[%s2506_s25 + $0xb78] sm:$0xff]  ;;  %v526_v60 = vld [vmem:[%s2506_s25 + $0xb80] sm:$0xff] }
  0x6e   : > { %523 = vst [vmem:[%s2511_s26 + $0x5d0] sm:$0xff] %v522_v58  ;;  %525 = vst [vmem:[%s2511_s26 + $0x5d8] sm:$0xff] %v524_v59  ;;  %v528_v61 = vld [vmem:[%s2506_s25 + $0xbd0] sm:$0xff]  ;;  %v530_v62 = vld [vmem:[%s2506_s25 + $0xbd8] sm:$0xff] }
  0x6f   : > { %527 = vst [vmem:[%s2511_s26 + $0x5e0] sm:$0xff] %v526_v60  ;;  %v532_v63 = vld [vmem:[%s2506_s25 + $0xbe0] sm:$0xff]  ;;  %529 = vst [vmem:[%s2511_s26 + $0x5e8] sm:$0xff] %v528_v61  ;;  %v534_v0 = vld [vmem:[%s2506_s25 + $0xbe8] sm:$0xff] }
  0x70   : > { %531 = vst [vmem:[%s2511_s26 + $0x5f0] sm:$0xff] %v530_v62  ;;  %533 = vst [vmem:[%s2511_s26 + $0x5f8] sm:$0xff] %v532_v63  ;;  %v536_v1 = vld [vmem:[%s2506_s25 + $0xbf0] sm:$0xff]  ;;  %v538_v2 = vld [vmem:[%s2506_s25 + $0xbf8] sm:$0xff] }
  0x71   : > { %535 = vst [vmem:[%s2511_s26 + $0x600] sm:$0xff] %v534_v0  ;;  %537 = vst [vmem:[%s2511_s26 + $0x608] sm:$0xff] %v536_v1  ;;  %v540_v3 = vld [vmem:[%s2506_s25 + $0xc00] sm:$0xff]  ;;  %v542_v4 = vld [vmem:[%s2506_s25 + $0xc08] sm:$0xff] }
  0x72   : > { %539 = vst [vmem:[%s2511_s26 + $0x610] sm:$0xff] %v538_v2  ;;  %v544_v5 = vld [vmem:[%s2506_s25 + $0xc10] sm:$0xff]  ;;  %541 = vst [vmem:[%s2511_s26 + $0x618] sm:$0xff] %v540_v3  ;;  %v546_v6 = vld [vmem:[%s2506_s25 + $0xc60] sm:$0xff] }
  0x73   : > { %543 = vst [vmem:[%s2511_s26 + $0x620] sm:$0xff] %v542_v4  ;;  %545 = vst [vmem:[%s2511_s26 + $0x628] sm:$0xff] %v544_v5  ;;  %v548_v7 = vld [vmem:[%s2506_s25 + $0xc68] sm:$0xff]  ;;  %v550_v8 = vld [vmem:[%s2506_s25 + $0xc70] sm:$0xff] }
  0x74   : > { %547 = vst [vmem:[%s2511_s26 + $0x630] sm:$0xff] %v546_v6  ;;  %549 = vst [vmem:[%s2511_s26 + $0x638] sm:$0xff] %v548_v7  ;;  %v552_v9 = vld [vmem:[%s2506_s25 + $0xc78] sm:$0xff]  ;;  %v554_v10 = vld [vmem:[%s2506_s25 + $0xc80] sm:$0xff] }
  0x75   : > { %551 = vst [vmem:[%s2511_s26 + $0x640] sm:$0xff] %v550_v8  ;;  %v556_v11 = vld [vmem:[%s2506_s25 + $0xc88] sm:$0xff]  ;;  %553 = vst [vmem:[%s2511_s26 + $0x648] sm:$0xff] %v552_v9  ;;  %v558_v12 = vld [vmem:[%s2506_s25 + $0xc90] sm:$0xff] }
  0x76   : > { %555 = vst [vmem:[%s2511_s26 + $0x650] sm:$0xff] %v554_v10  ;;  %557 = vst [vmem:[%s2511_s26 + $0x658] sm:$0xff] %v556_v11  ;;  %v560_v13 = vld [vmem:[%s2506_s25 + $0xc98] sm:$0xff]  ;;  %v562_v14 = vld [vmem:[%s2506_s25 + $0xca0] sm:$0xff] }
  0x77   : > { %559 = vst [vmem:[%s2511_s26 + $0x660] sm:$0xff] %v558_v12  ;;  %561 = vst [vmem:[%s2511_s26 + $0x668] sm:$0xff] %v560_v13  ;;  %v564_v15 = vld [vmem:[%s2506_s25 + $0xcf0] sm:$0xff]  ;;  %v566_v16 = vld [vmem:[%s2506_s25 + $0xcf8] sm:$0xff] }
  0x78   : > { %563 = vst [vmem:[%s2511_s26 + $0x670] sm:$0xff] %v562_v14  ;;  %v568_v17 = vld [vmem:[%s2506_s25 + $0xd00] sm:$0xff]  ;;  %565 = vst [vmem:[%s2511_s26 + $0x678] sm:$0xff] %v564_v15  ;;  %v570_v18 = vld [vmem:[%s2506_s25 + $0xd08] sm:$0xff] }
  0x79   : > { %567 = vst [vmem:[%s2511_s26 + $0x680] sm:$0xff] %v566_v16  ;;  %569 = vst [vmem:[%s2511_s26 + $0x688] sm:$0xff] %v568_v17  ;;  %v572_v19 = vld [vmem:[%s2506_s25 + $0xd10] sm:$0xff]  ;;  %v574_v20 = vld [vmem:[%s2506_s25 + $0xd18] sm:$0xff] }
  0x7a   : > { %571 = vst [vmem:[%s2511_s26 + $0x690] sm:$0xff] %v570_v18  ;;  %573 = vst [vmem:[%s2511_s26 + $0x698] sm:$0xff] %v572_v19  ;;  %v576_v21 = vld [vmem:[%s2506_s25 + $0xd20] sm:$0xff]  ;;  %v578_v22 = vld [vmem:[%s2506_s25 + $0xd28] sm:$0xff] }
  0x7b   : > { %575 = vst [vmem:[%s2511_s26 + $0x6a0] sm:$0xff] %v574_v20  ;;  %v580_v23 = vld [vmem:[%s2506_s25 + $0xd30] sm:$0xff]  ;;  %577 = vst [vmem:[%s2511_s26 + $0x6a8] sm:$0xff] %v576_v21  ;;  %v582_v24 = vld [vmem:[%s2506_s25 + $0xd80] sm:$0xff] }
  0x7c   : > { %579 = vst [vmem:[%s2511_s26 + $0x6b0] sm:$0xff] %v578_v22  ;;  %581 = vst [vmem:[%s2511_s26 + $0x6b8] sm:$0xff] %v580_v23  ;;  %v584_v25 = vld [vmem:[%s2506_s25 + $0xd88] sm:$0xff]  ;;  %v586_v26 = vld [vmem:[%s2506_s25 + $0xd90] sm:$0xff] }
  0x7d   : > { %583 = vst [vmem:[%s2511_s26 + $0x6c0] sm:$0xff] %v582_v24  ;;  %585 = vst [vmem:[%s2511_s26 + $0x6c8] sm:$0xff] %v584_v25  ;;  %v588_v27 = vld [vmem:[%s2506_s25 + $0xd98] sm:$0xff]  ;;  %v590_v28 = vld [vmem:[%s2506_s25 + $0xda0] sm:$0xff] }
  0x7e   : > { %587 = vst [vmem:[%s2511_s26 + $0x6d0] sm:$0xff] %v586_v26  ;;  %v592_v29 = vld [vmem:[%s2506_s25 + $0xda8] sm:$0xff]  ;;  %589 = vst [vmem:[%s2511_s26 + $0x6d8] sm:$0xff] %v588_v27  ;;  %v594_v30 = vld [vmem:[%s2506_s25 + $0xdb0] sm:$0xff] }
  0x7f   : > { %591 = vst [vmem:[%s2511_s26 + $0x6e0] sm:$0xff] %v590_v28  ;;  %593 = vst [vmem:[%s2511_s26 + $0x6e8] sm:$0xff] %v592_v29  ;;  %v596_v31 = vld [vmem:[%s2506_s25 + $0xdb8] sm:$0xff]  ;;  %v598_v32 = vld [vmem:[%s2506_s25 + $0xdc0] sm:$0xff] }
  0x80   : > { %595 = vst [vmem:[%s2511_s26 + $0x6f0] sm:$0xff] %v594_v30  ;;  %597 = vst [vmem:[%s2511_s26 + $0x6f8] sm:$0xff] %v596_v31  ;;  %v600_v33 = vld [vmem:[%s2506_s25 + $0xe10] sm:$0xff]  ;;  %v602_v34 = vld [vmem:[%s2506_s25 + $0xe18] sm:$0xff] }
  0x81   : > { %599 = vst [vmem:[%s2511_s26 + $0x700] sm:$0xff] %v598_v32  ;;  %v604_v35 = vld [vmem:[%s2506_s25 + $0xe20] sm:$0xff]  ;;  %601 = vst [vmem:[%s2511_s26 + $0x708] sm:$0xff] %v600_v33  ;;  %v606_v36 = vld [vmem:[%s2506_s25 + $0xe28] sm:$0xff] }
  0x82   : > { %603 = vst [vmem:[%s2511_s26 + $0x710] sm:$0xff] %v602_v34  ;;  %605 = vst [vmem:[%s2511_s26 + $0x718] sm:$0xff] %v604_v35  ;;  %v608_v37 = vld [vmem:[%s2506_s25 + $0xe30] sm:$0xff]  ;;  %v610_v38 = vld [vmem:[%s2506_s25 + $0xe38] sm:$0xff] }
  0x83   : > { %607 = vst [vmem:[%s2511_s26 + $0x720] sm:$0xff] %v606_v36  ;;  %609 = vst [vmem:[%s2511_s26 + $0x728] sm:$0xff] %v608_v37  ;;  %v612_v39 = vld [vmem:[%s2506_s25 + $0xe40] sm:$0xff]  ;;  %v614_v40 = vld [vmem:[%s2506_s25 + $0xe48] sm:$0xff] }
  0x84   : > { %611 = vst [vmem:[%s2511_s26 + $0x730] sm:$0xff] %v610_v38  ;;  %v616_v41 = vld [vmem:[%s2506_s25 + $0xe50] sm:$0xff]  ;;  %613 = vst [vmem:[%s2511_s26 + $0x738] sm:$0xff] %v612_v39  ;;  %v618_v42 = vld [vmem:[%s2506_s25 + $0xea0] sm:$0xff] }
  0x85   : > { %615 = vst [vmem:[%s2511_s26 + $0x740] sm:$0xff] %v614_v40  ;;  %617 = vst [vmem:[%s2511_s26 + $0x748] sm:$0xff] %v616_v41  ;;  %v620_v43 = vld [vmem:[%s2506_s25 + $0xea8] sm:$0xff]  ;;  %v622_v44 = vld [vmem:[%s2506_s25 + $0xeb0] sm:$0xff] }
  0x86   : > { %619 = vst [vmem:[%s2511_s26 + $0x750] sm:$0xff] %v618_v42  ;;  %621 = vst [vmem:[%s2511_s26 + $0x758] sm:$0xff] %v620_v43  ;;  %v624_v45 = vld [vmem:[%s2506_s25 + $0xeb8] sm:$0xff]  ;;  %v626_v46 = vld [vmem:[%s2506_s25 + $0xec0] sm:$0xff] }
  0x87   : > { %623 = vst [vmem:[%s2511_s26 + $0x760] sm:$0xff] %v622_v44  ;;  %v628_v47 = vld [vmem:[%s2506_s25 + $0xec8] sm:$0xff]  ;;  %625 = vst [vmem:[%s2511_s26 + $0x768] sm:$0xff] %v624_v45  ;;  %v630_v48 = vld [vmem:[%s2506_s25 + $0xed0] sm:$0xff] }
  0x88   : > { %627 = vst [vmem:[%s2511_s26 + $0x770] sm:$0xff] %v626_v46  ;;  %629 = vst [vmem:[%s2511_s26 + $0x778] sm:$0xff] %v628_v47  ;;  %v632_v49 = vld [vmem:[%s2506_s25 + $0xed8] sm:$0xff]  ;;  %v634_v50 = vld [vmem:[%s2506_s25 + $0xee0] sm:$0xff] }
  0x89   : > { %631 = vst [vmem:[%s2511_s26 + $0x780] sm:$0xff] %v630_v48  ;;  %633 = vst [vmem:[%s2511_s26 + $0x788] sm:$0xff] %v632_v49  ;;  %v636_v51 = vld [vmem:[%s2506_s25 + $0xf30] sm:$0xff]  ;;  %v638_v52 = vld [vmem:[%s2506_s25 + $0xf38] sm:$0xff] }
  0x8a   : > { %635 = vst [vmem:[%s2511_s26 + $0x790] sm:$0xff] %v634_v50  ;;  %v640_v53 = vld [vmem:[%s2506_s25 + $0xf40] sm:$0xff]  ;;  %637 = vst [vmem:[%s2511_s26 + $0x798] sm:$0xff] %v636_v51  ;;  %v642_v54 = vld [vmem:[%s2506_s25 + $0xf48] sm:$0xff] }
  0x8b   : > { %639 = vst [vmem:[%s2511_s26 + $0x7a0] sm:$0xff] %v638_v52  ;;  %641 = vst [vmem:[%s2511_s26 + $0x7a8] sm:$0xff] %v640_v53  ;;  %v644_v55 = vld [vmem:[%s2506_s25 + $0xf50] sm:$0xff]  ;;  %v646_v56 = vld [vmem:[%s2506_s25 + $0xf58] sm:$0xff] }
  0x8c   : > { %643 = vst [vmem:[%s2511_s26 + $0x7b0] sm:$0xff] %v642_v54  ;;  %645 = vst [vmem:[%s2511_s26 + $0x7b8] sm:$0xff] %v644_v55  ;;  %v648_v57 = vld [vmem:[%s2506_s25 + $0xf60] sm:$0xff]  ;;  %v650_v58 = vld [vmem:[%s2506_s25 + $0xf68] sm:$0xff] }
  0x8d   : > { %647 = vst [vmem:[%s2511_s26 + $0x7c0] sm:$0xff] %v646_v56  ;;  %v652_v59 = vld [vmem:[%s2506_s25 + $0xf70] sm:$0xff]  ;;  %649 = vst [vmem:[%s2511_s26 + $0x7c8] sm:$0xff] %v648_v57  ;;  %v654_v60 = vld [vmem:[%s2506_s25 + $0xfc0] sm:$0xff] }
  0x8e   : > { %651 = vst [vmem:[%s2511_s26 + $0x7d0] sm:$0xff] %v650_v58  ;;  %653 = vst [vmem:[%s2511_s26 + $0x7d8] sm:$0xff] %v652_v59  ;;  %v656_v61 = vld [vmem:[%s2506_s25 + $0xfc8] sm:$0xff]  ;;  %v658_v62 = vld [vmem:[%s2506_s25 + $0xfd0] sm:$0xff] }
  0x8f   : > { %655 = vst [vmem:[%s2511_s26 + $0x7e0] sm:$0xff] %v654_v60  ;;  %657 = vst [vmem:[%s2511_s26 + $0x7e8] sm:$0xff] %v656_v61  ;;  %v660_v63 = vld [vmem:[%s2506_s25 + $0xfd8] sm:$0xff]  ;;  %v662_v0 = vld [vmem:[%s2506_s25 + $0xfe0] sm:$0xff] }
  0x90   : > { %659 = vst [vmem:[%s2511_s26 + $0x7f0] sm:$0xff] %v658_v62  ;;  %v664_v1 = vld [vmem:[%s2506_s25 + $0xfe8] sm:$0xff]  ;;  %661 = vst [vmem:[%s2511_s26 + $0x7f8] sm:$0xff] %v660_v63  ;;  %v666_v2 = vld [vmem:[%s2506_s25 + $0xff0] sm:$0xff] }
  0x91   : > { %663 = vst [vmem:[%s2511_s26 + $0x800] sm:$0xff] %v662_v0  ;;  %665 = vst [vmem:[%s2511_s26 + $0x808] sm:$0xff] %v664_v1  ;;  %v668_v3 = vld [vmem:[%s2506_s25 + $0xff8] sm:$0xff]  ;;  %v670_v4 = vld [vmem:[%s2506_s25 + $0x1000] sm:$0xff] }
  0x92   : > { %667 = vst [vmem:[%s2511_s26 + $0x810] sm:$0xff] %v666_v2  ;;  %669 = vst [vmem:[%s2511_s26 + $0x818] sm:$0xff] %v668_v3  ;;  %v672_v5 = vld [vmem:[%s2506_s25 + $0x1050] sm:$0xff]  ;;  %v674_v6 = vld [vmem:[%s2506_s25 + $0x1058] sm:$0xff] }
  0x93   : > { %671 = vst [vmem:[%s2511_s26 + $0x820] sm:$0xff] %v670_v4  ;;  %v676_v7 = vld [vmem:[%s2506_s25 + $0x1060] sm:$0xff]  ;;  %673 = vst [vmem:[%s2511_s26 + $0x828] sm:$0xff] %v672_v5  ;;  %v678_v8 = vld [vmem:[%s2506_s25 + $0x1068] sm:$0xff] }
  0x94   : > { %675 = vst [vmem:[%s2511_s26 + $0x830] sm:$0xff] %v674_v6  ;;  %677 = vst [vmem:[%s2511_s26 + $0x838] sm:$0xff] %v676_v7  ;;  %v680_v9 = vld [vmem:[%s2506_s25 + $0x1070] sm:$0xff]  ;;  %v682_v10 = vld [vmem:[%s2506_s25 + $0x1078] sm:$0xff] }
  0x95   : > { %679 = vst [vmem:[%s2511_s26 + $0x840] sm:$0xff] %v678_v8  ;;  %681 = vst [vmem:[%s2511_s26 + $0x848] sm:$0xff] %v680_v9  ;;  %v684_v11 = vld [vmem:[%s2506_s25 + $0x1080] sm:$0xff]  ;;  %v686_v12 = vld [vmem:[%s2506_s25 + $0x1088] sm:$0xff] }
  0x96   : > { %683 = vst [vmem:[%s2511_s26 + $0x850] sm:$0xff] %v682_v10  ;;  %v688_v13 = vld [vmem:[%s2506_s25 + $0x1090] sm:$0xff]  ;;  %685 = vst [vmem:[%s2511_s26 + $0x858] sm:$0xff] %v684_v11  ;;  %v690_v14 = vld [vmem:[%s2506_s25 + $0x10e0] sm:$0xff] }
  0x97   : > { %687 = vst [vmem:[%s2511_s26 + $0x860] sm:$0xff] %v686_v12  ;;  %689 = vst [vmem:[%s2511_s26 + $0x868] sm:$0xff] %v688_v13  ;;  %v692_v15 = vld [vmem:[%s2506_s25 + $0x10e8] sm:$0xff]  ;;  %v694_v16 = vld [vmem:[%s2506_s25 + $0x10f0] sm:$0xff] }
  0x98   : > { %691 = vst [vmem:[%s2511_s26 + $0x870] sm:$0xff] %v690_v14  ;;  %693 = vst [vmem:[%s2511_s26 + $0x878] sm:$0xff] %v692_v15  ;;  %v696_v17 = vld [vmem:[%s2506_s25 + $0x10f8] sm:$0xff]  ;;  %v698_v18 = vld [vmem:[%s2506_s25 + $0x1100] sm:$0xff] }
  0x99   : > { %695 = vst [vmem:[%s2511_s26 + $0x880] sm:$0xff] %v694_v16  ;;  %v700_v19 = vld [vmem:[%s2506_s25 + $0x1108] sm:$0xff]  ;;  %697 = vst [vmem:[%s2511_s26 + $0x888] sm:$0xff] %v696_v17  ;;  %v702_v20 = vld [vmem:[%s2506_s25 + $0x1110] sm:$0xff] }
  0x9a   : > { %699 = vst [vmem:[%s2511_s26 + $0x890] sm:$0xff] %v698_v18  ;;  %701 = vst [vmem:[%s2511_s26 + $0x898] sm:$0xff] %v700_v19  ;;  %v704_v21 = vld [vmem:[%s2506_s25 + $0x1118] sm:$0xff]  ;;  %v706_v22 = vld [vmem:[%s2506_s25 + $0x1120] sm:$0xff] }
  0x9b   : > { %703 = vst [vmem:[%s2511_s26 + $0x8a0] sm:$0xff] %v702_v20  ;;  %705 = vst [vmem:[%s2511_s26 + $0x8a8] sm:$0xff] %v704_v21  ;;  %v708_v23 = vld [vmem:[%s2506_s25 + $0x1170] sm:$0xff]  ;;  %v710_v24 = vld [vmem:[%s2506_s25 + $0x1178] sm:$0xff] }
  0x9c   : > { %707 = vst [vmem:[%s2511_s26 + $0x8b0] sm:$0xff] %v706_v22  ;;  %v712_v25 = vld [vmem:[%s2506_s25 + $0x1180] sm:$0xff]  ;;  %709 = vst [vmem:[%s2511_s26 + $0x8b8] sm:$0xff] %v708_v23  ;;  %v714_v26 = vld [vmem:[%s2506_s25 + $0x1188] sm:$0xff] }
  0x9d   : > { %711 = vst [vmem:[%s2511_s26 + $0x8c0] sm:$0xff] %v710_v24  ;;  %713 = vst [vmem:[%s2511_s26 + $0x8c8] sm:$0xff] %v712_v25  ;;  %v716_v27 = vld [vmem:[%s2506_s25 + $0x1190] sm:$0xff]  ;;  %v718_v28 = vld [vmem:[%s2506_s25 + $0x1198] sm:$0xff] }
  0x9e   : > { %715 = vst [vmem:[%s2511_s26 + $0x8d0] sm:$0xff] %v714_v26  ;;  %717 = vst [vmem:[%s2511_s26 + $0x8d8] sm:$0xff] %v716_v27  ;;  %v720_v29 = vld [vmem:[%s2506_s25 + $0x11a0] sm:$0xff]  ;;  %v722_v30 = vld [vmem:[%s2506_s25 + $0x11a8] sm:$0xff] }
  0x9f   : > { %719 = vst [vmem:[%s2511_s26 + $0x8e0] sm:$0xff] %v718_v28  ;;  %v724_v31 = vld [vmem:[%s2506_s25 + $0x11b0] sm:$0xff]  ;;  %721 = vst [vmem:[%s2511_s26 + $0x8e8] sm:$0xff] %v720_v29  ;;  %v726_v32 = vld [vmem:[%s2506_s25 + $0x1200] sm:$0xff] }
  0xa0   : > { %723 = vst [vmem:[%s2511_s26 + $0x8f0] sm:$0xff] %v722_v30  ;;  %725 = vst [vmem:[%s2511_s26 + $0x8f8] sm:$0xff] %v724_v31  ;;  %v728_v33 = vld [vmem:[%s2506_s25 + $0x1208] sm:$0xff]  ;;  %v730_v34 = vld [vmem:[%s2506_s25 + $0x1210] sm:$0xff] }
  0xa1   : > { %727 = vst [vmem:[%s2511_s26 + $0x900] sm:$0xff] %v726_v32  ;;  %729 = vst [vmem:[%s2511_s26 + $0x908] sm:$0xff] %v728_v33  ;;  %v732_v35 = vld [vmem:[%s2506_s25 + $0x1218] sm:$0xff]  ;;  %v734_v36 = vld [vmem:[%s2506_s25 + $0x1220] sm:$0xff] }
  0xa2   : > { %731 = vst [vmem:[%s2511_s26 + $0x910] sm:$0xff] %v730_v34  ;;  %v736_v37 = vld [vmem:[%s2506_s25 + $0x1228] sm:$0xff]  ;;  %733 = vst [vmem:[%s2511_s26 + $0x918] sm:$0xff] %v732_v35  ;;  %v738_v38 = vld [vmem:[%s2506_s25 + $0x1230] sm:$0xff] }
  0xa3   : > { %735 = vst [vmem:[%s2511_s26 + $0x920] sm:$0xff] %v734_v36  ;;  %737 = vst [vmem:[%s2511_s26 + $0x928] sm:$0xff] %v736_v37  ;;  %v740_v39 = vld [vmem:[%s2506_s25 + $0x1238] sm:$0xff]  ;;  %v742_v40 = vld [vmem:[%s2506_s25 + $0x1240] sm:$0xff] }
  0xa4   : > { %739 = vst [vmem:[%s2511_s26 + $0x930] sm:$0xff] %v738_v38  ;;  %741 = vst [vmem:[%s2511_s26 + $0x938] sm:$0xff] %v740_v39  ;;  %v744_v41 = vld [vmem:[%s2506_s25 + $0x1290] sm:$0xff]  ;;  %v746_v42 = vld [vmem:[%s2506_s25 + $0x1298] sm:$0xff] }
  0xa5   : > { %743 = vst [vmem:[%s2511_s26 + $0x940] sm:$0xff] %v742_v40  ;;  %v748_v43 = vld [vmem:[%s2506_s25 + $0x12a0] sm:$0xff]  ;;  %745 = vst [vmem:[%s2511_s26 + $0x948] sm:$0xff] %v744_v41  ;;  %v750_v44 = vld [vmem:[%s2506_s25 + $0x12a8] sm:$0xff] }
  0xa6   : > { %747 = vst [vmem:[%s2511_s26 + $0x950] sm:$0xff] %v746_v42  ;;  %749 = vst [vmem:[%s2511_s26 + $0x958] sm:$0xff] %v748_v43  ;;  %v752_v45 = vld [vmem:[%s2506_s25 + $0x12b0] sm:$0xff]  ;;  %v754_v46 = vld [vmem:[%s2506_s25 + $0x12b8] sm:$0xff] }
  0xa7   : > { %751 = vst [vmem:[%s2511_s26 + $0x960] sm:$0xff] %v750_v44  ;;  %753 = vst [vmem:[%s2511_s26 + $0x968] sm:$0xff] %v752_v45  ;;  %v756_v47 = vld [vmem:[%s2506_s25 + $0x12c0] sm:$0xff]  ;;  %v758_v48 = vld [vmem:[%s2506_s25 + $0x12c8] sm:$0xff] }
  0xa8   : > { %755 = vst [vmem:[%s2511_s26 + $0x970] sm:$0xff] %v754_v46  ;;  %v760_v49 = vld [vmem:[%s2506_s25 + $0x12d0] sm:$0xff]  ;;  %757 = vst [vmem:[%s2511_s26 + $0x978] sm:$0xff] %v756_v47  ;;  %v762_v50 = vld [vmem:[%s2506_s25 + $0x1320] sm:$0xff] }
  0xa9   : > { %759 = vst [vmem:[%s2511_s26 + $0x980] sm:$0xff] %v758_v48  ;;  %761 = vst [vmem:[%s2511_s26 + $0x988] sm:$0xff] %v760_v49  ;;  %v764_v51 = vld [vmem:[%s2506_s25 + $0x1328] sm:$0xff]  ;;  %v766_v52 = vld [vmem:[%s2506_s25 + $0x1330] sm:$0xff] }
  0xaa   : > { %763 = vst [vmem:[%s2511_s26 + $0x990] sm:$0xff] %v762_v50  ;;  %765 = vst [vmem:[%s2511_s26 + $0x998] sm:$0xff] %v764_v51  ;;  %v768_v53 = vld [vmem:[%s2506_s25 + $0x1338] sm:$0xff]  ;;  %v770_v54 = vld [vmem:[%s2506_s25 + $0x1340] sm:$0xff] }
  0xab   : > { %767 = vst [vmem:[%s2511_s26 + $0x9a0] sm:$0xff] %v766_v52  ;;  %v772_v55 = vld [vmem:[%s2506_s25 + $0x1348] sm:$0xff]  ;;  %769 = vst [vmem:[%s2511_s26 + $0x9a8] sm:$0xff] %v768_v53  ;;  %v774_v56 = vld [vmem:[%s2506_s25 + $0x1350] sm:$0xff] }
  0xac   : > { %771 = vst [vmem:[%s2511_s26 + $0x9b0] sm:$0xff] %v770_v54  ;;  %773 = vst [vmem:[%s2511_s26 + $0x9b8] sm:$0xff] %v772_v55  ;;  %v776_v57 = vld [vmem:[%s2506_s25 + $0x1358] sm:$0xff]  ;;  %v778_v58 = vld [vmem:[%s2506_s25 + $0x1360] sm:$0xff] }
  0xad   : > { %775 = vst [vmem:[%s2511_s26 + $0x9c0] sm:$0xff] %v774_v56  ;;  %777 = vst [vmem:[%s2511_s26 + $0x9c8] sm:$0xff] %v776_v57  ;;  %v780_v59 = vld [vmem:[%s2506_s25 + $0x13b0] sm:$0xff]  ;;  %v782_v60 = vld [vmem:[%s2506_s25 + $0x13b8] sm:$0xff] }
  0xae   : > { %779 = vst [vmem:[%s2511_s26 + $0x9d0] sm:$0xff] %v778_v58  ;;  %v784_v61 = vld [vmem:[%s2506_s25 + $0x13c0] sm:$0xff]  ;;  %781 = vst [vmem:[%s2511_s26 + $0x9d8] sm:$0xff] %v780_v59  ;;  %v786_v62 = vld [vmem:[%s2506_s25 + $0x13c8] sm:$0xff] }
  0xaf   : > { %783 = vst [vmem:[%s2511_s26 + $0x9e0] sm:$0xff] %v782_v60  ;;  %785 = vst [vmem:[%s2511_s26 + $0x9e8] sm:$0xff] %v784_v61  ;;  %v788_v63 = vld [vmem:[%s2506_s25 + $0x13d0] sm:$0xff]  ;;  %v790_v0 = vld [vmem:[%s2506_s25 + $0x13d8] sm:$0xff] }
  0xb0   : > { %787 = vst [vmem:[%s2511_s26 + $0x9f0] sm:$0xff] %v786_v62  ;;  %789 = vst [vmem:[%s2511_s26 + $0x9f8] sm:$0xff] %v788_v63  ;;  %v792_v1 = vld [vmem:[%s2506_s25 + $0x13e0] sm:$0xff]  ;;  %v794_v2 = vld [vmem:[%s2506_s25 + $0x13e8] sm:$0xff] }
  0xb1   : > { %791 = vst [vmem:[%s2511_s26 + $0xa00] sm:$0xff] %v790_v0  ;;  %v796_v3 = vld [vmem:[%s2506_s25 + $0x13f0] sm:$0xff]  ;;  %793 = vst [vmem:[%s2511_s26 + $0xa08] sm:$0xff] %v792_v1  ;;  %v798_v4 = vld [vmem:[%s2506_s25 + $0x1440] sm:$0xff] }
  0xb2   : > { %795 = vst [vmem:[%s2511_s26 + $0xa10] sm:$0xff] %v794_v2  ;;  %797 = vst [vmem:[%s2511_s26 + $0xa18] sm:$0xff] %v796_v3  ;;  %v800_v5 = vld [vmem:[%s2506_s25 + $0x1448] sm:$0xff]  ;;  %v802_v6 = vld [vmem:[%s2506_s25 + $0x1450] sm:$0xff] }
  0xb3   : > { %799 = vst [vmem:[%s2511_s26 + $0xa20] sm:$0xff] %v798_v4  ;;  %801 = vst [vmem:[%s2511_s26 + $0xa28] sm:$0xff] %v800_v5  ;;  %v804_v7 = vld [vmem:[%s2506_s25 + $0x1458] sm:$0xff]  ;;  %v806_v8 = vld [vmem:[%s2506_s25 + $0x1460] sm:$0xff] }
  0xb4   : > { %803 = vst [vmem:[%s2511_s26 + $0xa30] sm:$0xff] %v802_v6  ;;  %v808_v9 = vld [vmem:[%s2506_s25 + $0x1468] sm:$0xff]  ;;  %805 = vst [vmem:[%s2511_s26 + $0xa38] sm:$0xff] %v804_v7  ;;  %v810_v10 = vld [vmem:[%s2506_s25 + $0x1470] sm:$0xff] }
  0xb5   : > { %807 = vst [vmem:[%s2511_s26 + $0xa40] sm:$0xff] %v806_v8  ;;  %809 = vst [vmem:[%s2511_s26 + $0xa48] sm:$0xff] %v808_v9  ;;  %v812_v11 = vld [vmem:[%s2506_s25 + $0x1478] sm:$0xff]  ;;  %v814_v12 = vld [vmem:[%s2506_s25 + $0x1480] sm:$0xff] }
  0xb6   : > { %811 = vst [vmem:[%s2511_s26 + $0xa50] sm:$0xff] %v810_v10  ;;  %813 = vst [vmem:[%s2511_s26 + $0xa58] sm:$0xff] %v812_v11  ;;  %v816_v13 = vld [vmem:[%s2506_s25 + $0x14d0] sm:$0xff]  ;;  %v818_v14 = vld [vmem:[%s2506_s25 + $0x14d8] sm:$0xff] }
  0xb7   : > { %815 = vst [vmem:[%s2511_s26 + $0xa60] sm:$0xff] %v814_v12  ;;  %v820_v15 = vld [vmem:[%s2506_s25 + $0x14e0] sm:$0xff]  ;;  %817 = vst [vmem:[%s2511_s26 + $0xa68] sm:$0xff] %v816_v13  ;;  %v822_v16 = vld [vmem:[%s2506_s25 + $0x14e8] sm:$0xff] }
  0xb8   : > { %819 = vst [vmem:[%s2511_s26 + $0xa70] sm:$0xff] %v818_v14  ;;  %821 = vst [vmem:[%s2511_s26 + $0xa78] sm:$0xff] %v820_v15  ;;  %v824_v17 = vld [vmem:[%s2506_s25 + $0x14f0] sm:$0xff]  ;;  %v826_v18 = vld [vmem:[%s2506_s25 + $0x14f8] sm:$0xff] }
  0xb9   : > { %823 = vst [vmem:[%s2511_s26 + $0xa80] sm:$0xff] %v822_v16  ;;  %825 = vst [vmem:[%s2511_s26 + $0xa88] sm:$0xff] %v824_v17  ;;  %v828_v19 = vld [vmem:[%s2506_s25 + $0x1500] sm:$0xff]  ;;  %v830_v20 = vld [vmem:[%s2506_s25 + $0x1508] sm:$0xff] }
  0xba   : > { %827 = vst [vmem:[%s2511_s26 + $0xa90] sm:$0xff] %v826_v18  ;;  %v832_v21 = vld [vmem:[%s2506_s25 + $0x1510] sm:$0xff]  ;;  %829 = vst [vmem:[%s2511_s26 + $0xa98] sm:$0xff] %v828_v19  ;;  %v834_v22 = vld [vmem:[%s2506_s25 + $0x1560] sm:$0xff] }
  0xbb   : > { %831 = vst [vmem:[%s2511_s26 + $0xaa0] sm:$0xff] %v830_v20  ;;  %833 = vst [vmem:[%s2511_s26 + $0xaa8] sm:$0xff] %v832_v21  ;;  %v836_v23 = vld [vmem:[%s2506_s25 + $0x1568] sm:$0xff]  ;;  %v838_v24 = vld [vmem:[%s2506_s25 + $0x1570] sm:$0xff] }
  0xbc   : > { %835 = vst [vmem:[%s2511_s26 + $0xab0] sm:$0xff] %v834_v22  ;;  %837 = vst [vmem:[%s2511_s26 + $0xab8] sm:$0xff] %v836_v23  ;;  %v840_v25 = vld [vmem:[%s2506_s25 + $0x1578] sm:$0xff]  ;;  %v842_v26 = vld [vmem:[%s2506_s25 + $0x1580] sm:$0xff] }
  0xbd   : > { %839 = vst [vmem:[%s2511_s26 + $0xac0] sm:$0xff] %v838_v24  ;;  %v844_v27 = vld [vmem:[%s2506_s25 + $0x1588] sm:$0xff]  ;;  %841 = vst [vmem:[%s2511_s26 + $0xac8] sm:$0xff] %v840_v25  ;;  %v846_v28 = vld [vmem:[%s2506_s25 + $0x1590] sm:$0xff] }
  0xbe   : > { %843 = vst [vmem:[%s2511_s26 + $0xad0] sm:$0xff] %v842_v26  ;;  %845 = vst [vmem:[%s2511_s26 + $0xad8] sm:$0xff] %v844_v27  ;;  %v848_v29 = vld [vmem:[%s2506_s25 + $0x1598] sm:$0xff]  ;;  %v850_v30 = vld [vmem:[%s2506_s25 + $0x15a0] sm:$0xff] }
  0xbf   : > { %847 = vst [vmem:[%s2511_s26 + $0xae0] sm:$0xff] %v846_v28  ;;  %849 = vst [vmem:[%s2511_s26 + $0xae8] sm:$0xff] %v848_v29  ;;  %v852_v31 = vld [vmem:[%s2506_s25 + $0x15f0] sm:$0xff]  ;;  %v854_v32 = vld [vmem:[%s2506_s25 + $0x15f8] sm:$0xff] }
  0xc0   : > { %851 = vst [vmem:[%s2511_s26 + $0xaf0] sm:$0xff] %v850_v30  ;;  %v856_v33 = vld [vmem:[%s2506_s25 + $0x1600] sm:$0xff]  ;;  %853 = vst [vmem:[%s2511_s26 + $0xaf8] sm:$0xff] %v852_v31  ;;  %v858_v34 = vld [vmem:[%s2506_s25 + $0x1608] sm:$0xff] }
  0xc1   : > { %855 = vst [vmem:[%s2511_s26 + $0xb00] sm:$0xff] %v854_v32  ;;  %857 = vst [vmem:[%s2511_s26 + $0xb08] sm:$0xff] %v856_v33  ;;  %v860_v35 = vld [vmem:[%s2506_s25 + $0x1610] sm:$0xff]  ;;  %v862_v36 = vld [vmem:[%s2506_s25 + $0x1618] sm:$0xff] }
  0xc2   : > { %859 = vst [vmem:[%s2511_s26 + $0xb10] sm:$0xff] %v858_v34  ;;  %861 = vst [vmem:[%s2511_s26 + $0xb18] sm:$0xff] %v860_v35  ;;  %v864_v37 = vld [vmem:[%s2506_s25 + $0x1620] sm:$0xff]  ;;  %v866_v38 = vld [vmem:[%s2506_s25 + $0x1628] sm:$0xff] }
  0xc3   : > { %863 = vst [vmem:[%s2511_s26 + $0xb20] sm:$0xff] %v862_v36  ;;  %v868_v39 = vld [vmem:[%s2506_s25 + $0x1630] sm:$0xff]  ;;  %865 = vst [vmem:[%s2511_s26 + $0xb28] sm:$0xff] %v864_v37  ;;  %v870_v40 = vld [vmem:[%s2506_s25 + $0x1680] sm:$0xff] }
  0xc4   : > { %867 = vst [vmem:[%s2511_s26 + $0xb30] sm:$0xff] %v866_v38  ;;  %869 = vst [vmem:[%s2511_s26 + $0xb38] sm:$0xff] %v868_v39  ;;  %v872_v41 = vld [vmem:[%s2506_s25 + $0x1688] sm:$0xff]  ;;  %v874_v42 = vld [vmem:[%s2506_s25 + $0x1690] sm:$0xff] }
  0xc5   : > { %871 = vst [vmem:[%s2511_s26 + $0xb40] sm:$0xff] %v870_v40  ;;  %873 = vst [vmem:[%s2511_s26 + $0xb48] sm:$0xff] %v872_v41  ;;  %v876_v43 = vld [vmem:[%s2506_s25 + $0x1698] sm:$0xff]  ;;  %v878_v44 = vld [vmem:[%s2506_s25 + $0x16a0] sm:$0xff] }
  0xc6   : > { %875 = vst [vmem:[%s2511_s26 + $0xb50] sm:$0xff] %v874_v42  ;;  %v880_v45 = vld [vmem:[%s2506_s25 + $0x16a8] sm:$0xff]  ;;  %877 = vst [vmem:[%s2511_s26 + $0xb58] sm:$0xff] %v876_v43  ;;  %v882_v46 = vld [vmem:[%s2506_s25 + $0x16b0] sm:$0xff] }
  0xc7   : > { %879 = vst [vmem:[%s2511_s26 + $0xb60] sm:$0xff] %v878_v44  ;;  %881 = vst [vmem:[%s2511_s26 + $0xb68] sm:$0xff] %v880_v45  ;;  %v884_v47 = vld [vmem:[%s2506_s25 + $0x16b8] sm:$0xff]  ;;  %v886_v48 = vld [vmem:[%s2506_s25 + $0x16c0] sm:$0xff] }
  0xc8   : > { %883 = vst [vmem:[%s2511_s26 + $0xb70] sm:$0xff] %v882_v46  ;;  %885 = vst [vmem:[%s2511_s26 + $0xb78] sm:$0xff] %v884_v47  ;;  %v888_v49 = vld [vmem:[%s2506_s25 + $0x1710] sm:$0xff]  ;;  %v890_v50 = vld [vmem:[%s2506_s25 + $0x1718] sm:$0xff] }
  0xc9   : > { %887 = vst [vmem:[%s2511_s26 + $0xb80] sm:$0xff] %v886_v48  ;;  %v892_v51 = vld [vmem:[%s2506_s25 + $0x1720] sm:$0xff]  ;;  %889 = vst [vmem:[%s2511_s26 + $0xb88] sm:$0xff] %v888_v49  ;;  %v894_v52 = vld [vmem:[%s2506_s25 + $0x1728] sm:$0xff] }
  0xca   : > { %891 = vst [vmem:[%s2511_s26 + $0xb90] sm:$0xff] %v890_v50  ;;  %893 = vst [vmem:[%s2511_s26 + $0xb98] sm:$0xff] %v892_v51  ;;  %v896_v53 = vld [vmem:[%s2506_s25 + $0x1730] sm:$0xff]  ;;  %v898_v54 = vld [vmem:[%s2506_s25 + $0x1738] sm:$0xff] }
  0xcb   : > { %895 = vst [vmem:[%s2511_s26 + $0xba0] sm:$0xff] %v894_v52  ;;  %897 = vst [vmem:[%s2511_s26 + $0xba8] sm:$0xff] %v896_v53  ;;  %v900_v55 = vld [vmem:[%s2506_s25 + $0x1740] sm:$0xff]  ;;  %v902_v56 = vld [vmem:[%s2506_s25 + $0x1748] sm:$0xff] }
  0xcc   : > { %899 = vst [vmem:[%s2511_s26 + $0xbb0] sm:$0xff] %v898_v54  ;;  %v904_v57 = vld [vmem:[%s2506_s25 + $0x1750] sm:$0xff]  ;;  %901 = vst [vmem:[%s2511_s26 + $0xbb8] sm:$0xff] %v900_v55  ;;  %v906_v58 = vld [vmem:[%s2506_s25 + $0x17a0] sm:$0xff] }
  0xcd   : > { %903 = vst [vmem:[%s2511_s26 + $0xbc0] sm:$0xff] %v902_v56  ;;  %905 = vst [vmem:[%s2511_s26 + $0xbc8] sm:$0xff] %v904_v57  ;;  %v908_v59 = vld [vmem:[%s2506_s25 + $0x17a8] sm:$0xff]  ;;  %v910_v60 = vld [vmem:[%s2506_s25 + $0x17b0] sm:$0xff] }
  0xce   : > { %907 = vst [vmem:[%s2511_s26 + $0xbd0] sm:$0xff] %v906_v58  ;;  %909 = vst [vmem:[%s2511_s26 + $0xbd8] sm:$0xff] %v908_v59  ;;  %v912_v61 = vld [vmem:[%s2506_s25 + $0x17b8] sm:$0xff]  ;;  %v914_v62 = vld [vmem:[%s2506_s25 + $0x17c0] sm:$0xff] }
  0xcf   : > { %911 = vst [vmem:[%s2511_s26 + $0xbe0] sm:$0xff] %v910_v60  ;;  %v916_v63 = vld [vmem:[%s2506_s25 + $0x17c8] sm:$0xff]  ;;  %913 = vst [vmem:[%s2511_s26 + $0xbe8] sm:$0xff] %v912_v61  ;;  %v918_v0 = vld [vmem:[%s2506_s25 + $0x17d0] sm:$0xff] }
  0xd0   : > { %915 = vst [vmem:[%s2511_s26 + $0xbf0] sm:$0xff] %v914_v62  ;;  %917 = vst [vmem:[%s2511_s26 + $0xbf8] sm:$0xff] %v916_v63  ;;  %v920_v1 = vld [vmem:[%s2506_s25 + $0x17d8] sm:$0xff]  ;;  %v922_v2 = vld [vmem:[%s2506_s25 + $0x17e0] sm:$0xff] }
  0xd1   : > { %919 = vst [vmem:[%s2511_s26 + $0xc00] sm:$0xff] %v918_v0  ;;  %921 = vst [vmem:[%s2511_s26 + $0xc08] sm:$0xff] %v920_v1  ;;  %v924_v3 = vld [vmem:[%s2506_s25 + $0x1830] sm:$0xff]  ;;  %v926_v4 = vld [vmem:[%s2506_s25 + $0x1838] sm:$0xff] }
  0xd2   : > { %923 = vst [vmem:[%s2511_s26 + $0xc10] sm:$0xff] %v922_v2  ;;  %v928_v5 = vld [vmem:[%s2506_s25 + $0x1840] sm:$0xff]  ;;  %925 = vst [vmem:[%s2511_s26 + $0xc18] sm:$0xff] %v924_v3  ;;  %v930_v6 = vld [vmem:[%s2506_s25 + $0x1848] sm:$0xff] }
  0xd3   : > { %927 = vst [vmem:[%s2511_s26 + $0xc20] sm:$0xff] %v926_v4  ;;  %929 = vst [vmem:[%s2511_s26 + $0xc28] sm:$0xff] %v928_v5  ;;  %v932_v7 = vld [vmem:[%s2506_s25 + $0x1850] sm:$0xff]  ;;  %v934_v8 = vld [vmem:[%s2506_s25 + $0x1858] sm:$0xff] }
  0xd4   : > { %931 = vst [vmem:[%s2511_s26 + $0xc30] sm:$0xff] %v930_v6  ;;  %933 = vst [vmem:[%s2511_s26 + $0xc38] sm:$0xff] %v932_v7  ;;  %v936_v9 = vld [vmem:[%s2506_s25 + $0x1860] sm:$0xff]  ;;  %v938_v10 = vld [vmem:[%s2506_s25 + $0x1868] sm:$0xff] }
  0xd5   : > { %935 = vst [vmem:[%s2511_s26 + $0xc40] sm:$0xff] %v934_v8  ;;  %v940_v11 = vld [vmem:[%s2506_s25 + $0x1870] sm:$0xff]  ;;  %937 = vst [vmem:[%s2511_s26 + $0xc48] sm:$0xff] %v936_v9  ;;  %v942_v12 = vld [vmem:[%s2506_s25 + $0x18c0] sm:$0xff] }
  0xd6   : > { %939 = vst [vmem:[%s2511_s26 + $0xc50] sm:$0xff] %v938_v10  ;;  %941 = vst [vmem:[%s2511_s26 + $0xc58] sm:$0xff] %v940_v11  ;;  %v944_v13 = vld [vmem:[%s2506_s25 + $0x18c8] sm:$0xff]  ;;  %v946_v14 = vld [vmem:[%s2506_s25 + $0x18d0] sm:$0xff] }
  0xd7   : > { %943 = vst [vmem:[%s2511_s26 + $0xc60] sm:$0xff] %v942_v12  ;;  %945 = vst [vmem:[%s2511_s26 + $0xc68] sm:$0xff] %v944_v13  ;;  %v948_v15 = vld [vmem:[%s2506_s25 + $0x18d8] sm:$0xff]  ;;  %v950_v16 = vld [vmem:[%s2506_s25 + $0x18e0] sm:$0xff] }
  0xd8   : > { %947 = vst [vmem:[%s2511_s26 + $0xc70] sm:$0xff] %v946_v14  ;;  %v952_v17 = vld [vmem:[%s2506_s25 + $0x18e8] sm:$0xff]  ;;  %949 = vst [vmem:[%s2511_s26 + $0xc78] sm:$0xff] %v948_v15  ;;  %v954_v18 = vld [vmem:[%s2506_s25 + $0x18f0] sm:$0xff] }
  0xd9   : > { %951 = vst [vmem:[%s2511_s26 + $0xc80] sm:$0xff] %v950_v16  ;;  %953 = vst [vmem:[%s2511_s26 + $0xc88] sm:$0xff] %v952_v17  ;;  %v956_v19 = vld [vmem:[%s2506_s25 + $0x18f8] sm:$0xff]  ;;  %v958_v20 = vld [vmem:[%s2506_s25 + $0x1900] sm:$0xff] }
  0xda   : > { %955 = vst [vmem:[%s2511_s26 + $0xc90] sm:$0xff] %v954_v18  ;;  %957 = vst [vmem:[%s2511_s26 + $0xc98] sm:$0xff] %v956_v19  ;;  %v960_v21 = vld [vmem:[%s2506_s25 + $0x1950] sm:$0xff]  ;;  %v962_v22 = vld [vmem:[%s2506_s25 + $0x1958] sm:$0xff] }
  0xdb   : > { %959 = vst [vmem:[%s2511_s26 + $0xca0] sm:$0xff] %v958_v20  ;;  %v964_v23 = vld [vmem:[%s2506_s25 + $0x1960] sm:$0xff]  ;;  %961 = vst [vmem:[%s2511_s26 + $0xca8] sm:$0xff] %v960_v21  ;;  %v966_v24 = vld [vmem:[%s2506_s25 + $0x1968] sm:$0xff] }
  0xdc   : > { %963 = vst [vmem:[%s2511_s26 + $0xcb0] sm:$0xff] %v962_v22  ;;  %965 = vst [vmem:[%s2511_s26 + $0xcb8] sm:$0xff] %v964_v23  ;;  %v968_v25 = vld [vmem:[%s2506_s25 + $0x1970] sm:$0xff]  ;;  %v970_v26 = vld [vmem:[%s2506_s25 + $0x1978] sm:$0xff] }
  0xdd   : > { %967 = vst [vmem:[%s2511_s26 + $0xcc0] sm:$0xff] %v966_v24  ;;  %969 = vst [vmem:[%s2511_s26 + $0xcc8] sm:$0xff] %v968_v25  ;;  %v972_v27 = vld [vmem:[%s2506_s25 + $0x1980] sm:$0xff]  ;;  %v974_v28 = vld [vmem:[%s2506_s25 + $0x1988] sm:$0xff] }
  0xde   : > { %971 = vst [vmem:[%s2511_s26 + $0xcd0] sm:$0xff] %v970_v26  ;;  %v976_v29 = vld [vmem:[%s2506_s25 + $0x1990] sm:$0xff]  ;;  %973 = vst [vmem:[%s2511_s26 + $0xcd8] sm:$0xff] %v972_v27  ;;  %v978_v30 = vld [vmem:[%s2506_s25 + $0x19e0] sm:$0xff] }
  0xdf   : > { %975 = vst [vmem:[%s2511_s26 + $0xce0] sm:$0xff] %v974_v28  ;;  %977 = vst [vmem:[%s2511_s26 + $0xce8] sm:$0xff] %v976_v29  ;;  %v980_v31 = vld [vmem:[%s2506_s25 + $0x19e8] sm:$0xff]  ;;  %v982_v32 = vld [vmem:[%s2506_s25 + $0x19f0] sm:$0xff] }
  0xe0   : > { %979 = vst [vmem:[%s2511_s26 + $0xcf0] sm:$0xff] %v978_v30  ;;  %981 = vst [vmem:[%s2511_s26 + $0xcf8] sm:$0xff] %v980_v31  ;;  %v984_v33 = vld [vmem:[%s2506_s25 + $0x19f8] sm:$0xff]  ;;  %v986_v34 = vld [vmem:[%s2506_s25 + $0x1a00] sm:$0xff] }
  0xe1   : > { %983 = vst [vmem:[%s2511_s26 + $0xd00] sm:$0xff] %v982_v32  ;;  %v988_v35 = vld [vmem:[%s2506_s25 + $0x1a08] sm:$0xff]  ;;  %985 = vst [vmem:[%s2511_s26 + $0xd08] sm:$0xff] %v984_v33  ;;  %v990_v36 = vld [vmem:[%s2506_s25 + $0x1a10] sm:$0xff] }
  0xe2   : > { %987 = vst [vmem:[%s2511_s26 + $0xd10] sm:$0xff] %v986_v34  ;;  %989 = vst [vmem:[%s2511_s26 + $0xd18] sm:$0xff] %v988_v35  ;;  %v992_v37 = vld [vmem:[%s2506_s25 + $0x1a18] sm:$0xff]  ;;  %v994_v38 = vld [vmem:[%s2506_s25 + $0x1a20] sm:$0xff] }
  0xe3   : > { %991 = vst [vmem:[%s2511_s26 + $0xd20] sm:$0xff] %v990_v36  ;;  %993 = vst [vmem:[%s2511_s26 + $0xd28] sm:$0xff] %v992_v37  ;;  %v996_v39 = vld [vmem:[%s2506_s25 + $0x1a70] sm:$0xff]  ;;  %v998_v40 = vld [vmem:[%s2506_s25 + $0x1a78] sm:$0xff] }
  0xe4   : > { %995 = vst [vmem:[%s2511_s26 + $0xd30] sm:$0xff] %v994_v38  ;;  %v1000_v41 = vld [vmem:[%s2506_s25 + $0x1a80] sm:$0xff]  ;;  %997 = vst [vmem:[%s2511_s26 + $0xd38] sm:$0xff] %v996_v39  ;;  %v1002_v42 = vld [vmem:[%s2506_s25 + $0x1a88] sm:$0xff] }
  0xe5   : > { %999 = vst [vmem:[%s2511_s26 + $0xd40] sm:$0xff] %v998_v40  ;;  %1001 = vst [vmem:[%s2511_s26 + $0xd48] sm:$0xff] %v1000_v41  ;;  %v1004_v43 = vld [vmem:[%s2506_s25 + $0x1a90] sm:$0xff]  ;;  %v1006_v44 = vld [vmem:[%s2506_s25 + $0x1a98] sm:$0xff] }
  0xe6   : > { %1003 = vst [vmem:[%s2511_s26 + $0xd50] sm:$0xff] %v1002_v42  ;;  %1005 = vst [vmem:[%s2511_s26 + $0xd58] sm:$0xff] %v1004_v43  ;;  %v1008_v45 = vld [vmem:[%s2506_s25 + $0x1aa0] sm:$0xff]  ;;  %v1010_v46 = vld [vmem:[%s2506_s25 + $0x1aa8] sm:$0xff] }
  0xe7   : > { %1007 = vst [vmem:[%s2511_s26 + $0xd60] sm:$0xff] %v1006_v44  ;;  %v1012_v47 = vld [vmem:[%s2506_s25 + $0x1ab0] sm:$0xff]  ;;  %1009 = vst [vmem:[%s2511_s26 + $0xd68] sm:$0xff] %v1008_v45  ;;  %v1014_v48 = vld [vmem:[%s2506_s25 + $0x1b00] sm:$0xff] }
  0xe8   : > { %1011 = vst [vmem:[%s2511_s26 + $0xd70] sm:$0xff] %v1010_v46  ;;  %1013 = vst [vmem:[%s2511_s26 + $0xd78] sm:$0xff] %v1012_v47  ;;  %v1016_v49 = vld [vmem:[%s2506_s25 + $0x1b08] sm:$0xff]  ;;  %v1018_v50 = vld [vmem:[%s2506_s25 + $0x1b10] sm:$0xff] }
  0xe9   : > { %1015 = vst [vmem:[%s2511_s26 + $0xd80] sm:$0xff] %v1014_v48  ;;  %1017 = vst [vmem:[%s2511_s26 + $0xd88] sm:$0xff] %v1016_v49  ;;  %v1020_v51 = vld [vmem:[%s2506_s25 + $0x1b18] sm:$0xff]  ;;  %v1022_v52 = vld [vmem:[%s2506_s25 + $0x1b20] sm:$0xff] }
  0xea   : > { %1019 = vst [vmem:[%s2511_s26 + $0xd90] sm:$0xff] %v1018_v50  ;;  %v1024_v53 = vld [vmem:[%s2506_s25 + $0x1b28] sm:$0xff]  ;;  %1021 = vst [vmem:[%s2511_s26 + $0xd98] sm:$0xff] %v1020_v51  ;;  %v1026_v54 = vld [vmem:[%s2506_s25 + $0x1b30] sm:$0xff] }
  0xeb   : > { %1023 = vst [vmem:[%s2511_s26 + $0xda0] sm:$0xff] %v1022_v52  ;;  %1025 = vst [vmem:[%s2511_s26 + $0xda8] sm:$0xff] %v1024_v53  ;;  %v1028_v55 = vld [vmem:[%s2506_s25 + $0x1b38] sm:$0xff]  ;;  %v1030_v56 = vld [vmem:[%s2506_s25 + $0x1b40] sm:$0xff] }
  0xec   : > { %1027 = vst [vmem:[%s2511_s26 + $0xdb0] sm:$0xff] %v1026_v54  ;;  %1029 = vst [vmem:[%s2511_s26 + $0xdb8] sm:$0xff] %v1028_v55  ;;  %v1032_v57 = vld [vmem:[%s2506_s25 + $0x1b90] sm:$0xff]  ;;  %v1034_v58 = vld [vmem:[%s2506_s25 + $0x1b98] sm:$0xff] }
  0xed   : > { %1031 = vst [vmem:[%s2511_s26 + $0xdc0] sm:$0xff] %v1030_v56  ;;  %v1036_v59 = vld [vmem:[%s2506_s25 + $0x1ba0] sm:$0xff]  ;;  %1033 = vst [vmem:[%s2511_s26 + $0xdc8] sm:$0xff] %v1032_v57  ;;  %v1038_v60 = vld [vmem:[%s2506_s25 + $0x1ba8] sm:$0xff] }
  0xee   : > { %1035 = vst [vmem:[%s2511_s26 + $0xdd0] sm:$0xff] %v1034_v58  ;;  %1037 = vst [vmem:[%s2511_s26 + $0xdd8] sm:$0xff] %v1036_v59  ;;  %v1040_v61 = vld [vmem:[%s2506_s25 + $0x1bb0] sm:$0xff]  ;;  %v1042_v62 = vld [vmem:[%s2506_s25 + $0x1bb8] sm:$0xff] }
  0xef   : > { %1039 = vst [vmem:[%s2511_s26 + $0xde0] sm:$0xff] %v1038_v60  ;;  %1041 = vst [vmem:[%s2511_s26 + $0xde8] sm:$0xff] %v1040_v61  ;;  %v1044_v63 = vld [vmem:[%s2506_s25 + $0x1bc0] sm:$0xff]  ;;  %v1046_v0 = vld [vmem:[%s2506_s25 + $0x1bc8] sm:$0xff] }
  0xf0   : > { %1043 = vst [vmem:[%s2511_s26 + $0xdf0] sm:$0xff] %v1042_v62  ;;  %v1048_v1 = vld [vmem:[%s2506_s25 + $0x1bd0] sm:$0xff]  ;;  %1045 = vst [vmem:[%s2511_s26 + $0xdf8] sm:$0xff] %v1044_v63 }
  0xf1   : > { %1047 = vst [vmem:[%s2511_s26 + $0xe00] sm:$0xff] %v1046_v0  ;;  %1049 = vst [vmem:[%s2511_s26 + $0xe08] sm:$0xff] %v1048_v1 }
  0xf2 PF: > { %p2348_p5 = scmp.ge.s32.totalorder %s2448_s14, 1  ;;  %p1054_p6 = scmp.lt.s32.totalorder %s2448_s14, 3 }
  0xf4   : > { %p1055_p7 = pnand %p2348_p5, %p1054_p6 }
  0xf5   : > { %s1061_s27 = sand.u32 (!%p1055_p7), 1, %s2440_s12   ;;  %s1085_s26 = smul.u32 (!%p1055_p7), 9, %s2343_s15 }
  0xf6   : > { %1058 = sbr.rel (%p1055_p7) target bundleno = 698 (0x2ba), region = 51 }
  0xf7   : > { %s2394_s5 = smul.u32 (!%p1055_p7), 3600, %s1061_s27  ;;  %p1086_p8 = scmp.lt.s32.totalorder (!%p1055_p7), %s1085_s26, 17 }
  0xf9   : > { %s3426_s6 = scalar_lea.vmem (!%p1055_p7), [#allocation2], %s2394_s5 }
  0xfb   : > { %v3416_v2 = vld [vmem:[%s3977_s0 + $0x18] sm:$0xff]  ;;  %vm1551_vm0 = vcmask 130048   ;;  %v3421_v3 = vld [vmem:[%s3977_s0 + $0x8] sm:$0xff]  ;;  %v1231_v4 = vld [vmem:[%s3426_s6 + $0x440] sm:$0xff]  ;;  %s3985_s26 = smov (!%p1086_p8, %s1085_s26), 17 }
  0xfc   : > { %2350 = vmatprep.mubr.msk.f32.mxu1 %vm1551_vm0, %v3416_v2  ;;  %1619 = vmatprep.mubr.f32.mxu0 %v3421_v3  ;;  %v1519_v5 = vld [vmem:[%s3426_s6 + $0xd40] sm:$0xff]  ;;  %v1230_v6 = vld [vmem:[%s3426_s6 + $0x438] sm:$0xff]  ;;  %v1221_v10 = vld [vmem:[%s3426_s6 + $0x3f0] sm:$0xff]  ;;  %s2349_s27 = sshll.u32 %s3985_s26, 3 }
  0xfd   : > { %1555 = vmatprep.subr.mxu0 %v1231_v4  ;;  %1626 = vmatprep.subr.mxu1 %v1519_v5  ;;  %v1518_v7 = vld [vmem:[%s3426_s6 + $0xd38] sm:$0xff]  ;;  %v1509_v11 = vld [vmem:[%s3426_s6 + $0xcf0] sm:$0xff]  ;;  %v1212_v14 = vld [vmem:[%s3426_s6 + $0x3a8] sm:$0xff]  ;;  %s3956_s30 = scalar_lea.vmem %s3980_s3, %s2349_s27 }
  0xfe   : > { %v1222_v8 = vld [vmem:[%s3426_s6 + $0x3f8] sm:$0xff]  ;;  %1556 = vmatpush1.msra.mxu0 %v1230_v6  ;;  %1627 = vmatpush1.msra.mxu1 %v1518_v7  ;;  %v1213_v12 = vld [vmem:[%s3426_s6 + $0x3b0] sm:$0xff]  ;;  %v1500_v15 = vld [vmem:[%s3426_s6 + $0xca8] sm:$0xff] }
  0xff   : > { %v1510_v9 = vld [vmem:[%s3426_s6 + $0xcf8] sm:$0xff]  ;;  %1557 = vmatprep.subr.mxu0 %v1222_v8  ;;  %v1501_v13 = vld [vmem:[%s3426_s6 + $0xcb0] sm:$0xff]  ;;  %v1204_v16 = vld [vmem:[%s3426_s6 + $0x368] sm:$0xff] }
 0x100   : > { %1628 = vmatprep.subr.mxu1 %v1510_v9  ;;  %1558 = vmatpush1.msra.mxu0 %v1221_v10  ;;  %v1492_v17 = vld [vmem:[%s3426_s6 + $0xc68] sm:$0xff]  ;;  %v1203_v18 = vld [vmem:[%s3426_s6 + $0x360] sm:$0xff]  ;;  %v1194_v22 = vld [vmem:[%s3426_s6 + $0x318] sm:$0xff] }
 0x101   : > { %1629 = vmatpush1.msra.mxu1 %v1509_v11  ;;  %1559 = vmatprep.subr.mxu0 %v1213_v12  ;;  %v1491_v19 = vld [vmem:[%s3426_s6 + $0xc60] sm:$0xff]  ;;  %v1482_v23 = vld [vmem:[%s3426_s6 + $0xc18] sm:$0xff]  ;;  %v1185_v26 = vld [vmem:[%s3426_s6 + $0x2d0] sm:$0xff] }
 0x102   : > { %1630 = vmatprep.subr.mxu1 %v1501_v13  ;;  %1560 = vmatpush1.msra.mxu0 %v1212_v14  ;;  %v1195_v20 = vld [vmem:[%s3426_s6 + $0x320] sm:$0xff]  ;;  %v1186_v24 = vld [vmem:[%s3426_s6 + $0x2d8] sm:$0xff]  ;;  %v1473_v27 = vld [vmem:[%s3426_s6 + $0xbd0] sm:$0xff] }
 0x103   : > { %1631 = vmatpush1.msra.mxu1 %v1500_v15  ;;  %v1483_v21 = vld [vmem:[%s3426_s6 + $0xc20] sm:$0xff]  ;;  %1561 = vmatprep.subr.mxu0 %v1204_v16  ;;  %v1474_v25 = vld [vmem:[%s3426_s6 + $0xbd8] sm:$0xff]  ;;  %v1177_v28 = vld [vmem:[%s3426_s6 + $0x290] sm:$0xff] }
 0x104   : > { %1632 = vmatprep.subr.mxu1 %v1492_v17  ;;  %1562 = vmatpush1.msra.mxu0 %v1203_v18  ;;  %v1465_v29 = vld [vmem:[%s3426_s6 + $0xb90] sm:$0xff]  ;;  %v1176_v30 = vld [vmem:[%s3426_s6 + $0x288] sm:$0xff]  ;;  %v1167_v34 = vld [vmem:[%s3426_s6 + $0x240] sm:$0xff] }
 0x105   : > { %1633 = vmatpush1.msra.mxu1 %v1491_v19  ;;  %1563 = vmatprep.subr.mxu0 %v1195_v20  ;;  %v1464_v31 = vld [vmem:[%s3426_s6 + $0xb88] sm:$0xff]  ;;  %v1455_v35 = vld [vmem:[%s3426_s6 + $0xb40] sm:$0xff]  ;;  %v1158_v38 = vld [vmem:[%s3426_s6 + $0x1f8] sm:$0xff] }
 0x106   : > { %1634 = vmatprep.subr.mxu1 %v1483_v21  ;;  %1564 = vmatpush1.msra.mxu0 %v1194_v22  ;;  %v1168_v32 = vld [vmem:[%s3426_s6 + $0x248] sm:$0xff]  ;;  %v1159_v36 = vld [vmem:[%s3426_s6 + $0x200] sm:$0xff]  ;;  %v1446_v39 = vld [vmem:[%s3426_s6 + $0xaf8] sm:$0xff] }
 0x107   : > { %1635 = vmatpush1.msra.mxu1 %v1482_v23  ;;  %1565 = vmatprep.subr.mxu0 %v1186_v24  ;;  %v1456_v33 = vld [vmem:[%s3426_s6 + $0xb48] sm:$0xff]  ;;  %v1447_v37 = vld [vmem:[%s3426_s6 + $0xb00] sm:$0xff]  ;;  %v1150_v40 = vld [vmem:[%s3426_s6 + $0x1b8] sm:$0xff] }
 0x108   : > { %1636 = vmatprep.subr.mxu1 %v1474_v25  ;;  %1566 = vmatpush1.msra.mxu0 %v1185_v26  ;;  %v1438_v41 = vld [vmem:[%s3426_s6 + $0xab8] sm:$0xff]  ;;  %v1149_v42 = vld [vmem:[%s3426_s6 + $0x1b0] sm:$0xff]  ;;  %v1140_v46 = vld [vmem:[%s3426_s6 + $0x168] sm:$0xff] }
 0x109   : > { %1637 = vmatpush1.msra.mxu1 %v1473_v27  ;;  %1567 = vmatprep.subr.mxu0 %v1177_v28  ;;  %v1437_v43 = vld [vmem:[%s3426_s6 + $0xab0] sm:$0xff]  ;;  %v1428_v47 = vld [vmem:[%s3426_s6 + $0xa68] sm:$0xff]  ;;  %v1131_v50 = vld [vmem:[%s3426_s6 + $0x120] sm:$0xff] }
 0x10a   : > { %1638 = vmatprep.subr.mxu1 %v1465_v29  ;;  %1568 = vmatpush1.msra.mxu0 %v1176_v30  ;;  %v1141_v44 = vld [vmem:[%s3426_s6 + $0x170] sm:$0xff]  ;;  %v1132_v48 = vld [vmem:[%s3426_s6 + $0x128] sm:$0xff]  ;;  %v1419_v51 = vld [vmem:[%s3426_s6 + $0xa20] sm:$0xff] }
 0x10b   : > { %1639 = vmatpush1.msra.mxu1 %v1464_v31  ;;  %1569 = vmatprep.subr.mxu0 %v1168_v32  ;;  %v1429_v45 = vld [vmem:[%s3426_s6 + $0xa70] sm:$0xff]  ;;  %v1420_v49 = vld [vmem:[%s3426_s6 + $0xa28] sm:$0xff]  ;;  %v1123_v52 = vld [vmem:[%s3426_s6 + $0xe0] sm:$0xff] }
 0x10c   : > { %1640 = vmatprep.subr.mxu1 %v1456_v33  ;;  %1570 = vmatpush1.msra.mxu0 %v1167_v34  ;;  %v1411_v53 = vld [vmem:[%s3426_s6 + $0x9e0] sm:$0xff]  ;;  %v1122_v54 = vld [vmem:[%s3426_s6 + $0xd8] sm:$0xff]  ;;  %v1113_v58 = vld [vmem:[%s3426_s6 + $0x90] sm:$0xff] }
 0x10d   : > { %1641 = vmatpush1.msra.mxu1 %v1455_v35  ;;  %1571 = vmatprep.subr.mxu0 %v1159_v36  ;;  %v1410_v55 = vld [vmem:[%s3426_s6 + $0x9d8] sm:$0xff]  ;;  %v1401_v59 = vld [vmem:[%s3426_s6 + $0x990] sm:$0xff]  ;;  %v1104_v62 = vld [vmem:[%s3426_s6 + $0x48] sm:$0xff] }
 0x10e   : > { %1642 = vmatprep.subr.mxu1 %v1447_v37  ;;  %1572 = vmatpush1.msra.mxu0 %v1158_v38  ;;  %v1114_v56 = vld [vmem:[%s3426_s6 + $0x98] sm:$0xff]  ;;  %v1105_v60 = vld [vmem:[%s3426_s6 + $0x50] sm:$0xff]  ;;  %v1392_v63 = vld [vmem:[%s3426_s6 + $0x948] sm:$0xff] }
 0x10f   : > { %1643 = vmatpush1.msra.mxu1 %v1446_v39  ;;  %1573 = vmatprep.subr.mxu0 %v1150_v40  ;;  %v1402_v57 = vld [vmem:[%s3426_s6 + $0x998] sm:$0xff]  ;;  %v1393_v61 = vld [vmem:[%s3426_s6 + $0x950] sm:$0xff]  ;;  %v1096_v0 = vld [vmem:[%s3426_s6 + $0x8] sm:$0xff] }
 0x110   : > { %1644 = vmatprep.subr.mxu1 %v1438_v41  ;;  %1574 = vmatpush1.msra.mxu0 %v1149_v42  ;;  %v1384_v1 = vld [vmem:[%s3426_s6 + $0x908] sm:$0xff]  ;;  %v1095_v4 = vld [vmem:[%s3426_s6] sm:$0xff]  ;;  %v1537_v7 = vld [vmem:[%s3426_s6 + $0xdd0] sm:$0xff] }
 0x111   : > { %1645 = vmatpush1.msra.mxu1 %v1437_v43  ;;  %1575 = vmatprep.subr.mxu0 %v1141_v44  ;;  %v1383_v5 = vld [vmem:[%s3426_s6 + $0x900] sm:$0xff]  ;;  %v1374_v8 = vld [vmem:[%s3426_s6 + $0x8b8] sm:$0xff]  ;;  %v1536_v9 = vld [vmem:[%s3426_s6 + $0xdc8] sm:$0xff] }
 0x112   : > { %1646 = vmatprep.subr.mxu1 %v1429_v45  ;;  %1576 = vmatpush1.msra.mxu0 %v1140_v46  ;;  %v1375_v6 = vld [vmem:[%s3426_s6 + $0x8c0] sm:$0xff]  ;;  %v1366_v10 = vld [vmem:[%s3426_s6 + $0x878] sm:$0xff]  ;;  %v1528_v11 = vld [vmem:[%s3426_s6 + $0xd88] sm:$0xff] }
 0x113   : > { %1647 = vmatpush1.msra.mxu1 %v1428_v47  ;;  %1577 = vmatprep.subr.mxu0 %v1132_v48  ;;  %v1365_v12 = vld [vmem:[%s3426_s6 + $0x870] sm:$0xff]  ;;  %v1527_v13 = vld [vmem:[%s3426_s6 + $0xd80] sm:$0xff]  ;;  %v1356_v16 = vld [vmem:[%s3426_s6 + $0x828] sm:$0xff] }
 0x114   : > { %1648 = vmatprep.subr.mxu1 %v1420_v49  ;;  %1578 = vmatpush1.msra.mxu0 %v1131_v50  ;;  %v1357_v14 = vld [vmem:[%s3426_s6 + $0x830] sm:$0xff]  ;;  %v1232_v18 = vld [vmem:[%s3426_s6 + $0x448] sm:$0xff]  ;;  %v1347_v21 = vld [vmem:[%s3426_s6 + $0x7e0] sm:$0xff] }
 0x115   : > { %1649 = vmatpush1.msra.mxu1 %v1419_v51  ;;  %1579 = vmatprep.subr.mxu0 %v1123_v52  ;;  %v1233_v15 = vld [vmem:[%s3426_s6 + $0x450] sm:$0xff]  ;;  %v1348_v19 = vld [vmem:[%s3426_s6 + $0x7e8] sm:$0xff]  ;;  %v1223_v22 = vld [vmem:[%s3426_s6 + $0x400] sm:$0xff] }
 0x116   : > { %1650 = vmatprep.subr.mxu1 %v1411_v53  ;;  %1580 = vmatpush1.msra.mxu0 %v1122_v54  ;;  %v3506_v17 = vld [vmem:[%s3977_s0 + $0x10] sm:$0xff]  ;;  %v1224_v20 = vld [vmem:[%s3426_s6 + $0x408] sm:$0xff]  ;;  %v1338_v25 = vld [vmem:[%s3426_s6 + $0x798] sm:$0xff] }
 0x117   : > { %1651 = vmatpush1.msra.mxu1 %v1410_v55  ;;  %1581 = vmatprep.subr.mxu0 %v1114_v56  ;;  %v1339_v23 = vld [vmem:[%s3426_s6 + $0x7a0] sm:$0xff]  ;;  %v1214_v26 = vld [vmem:[%s3426_s6 + $0x3b8] sm:$0xff]  ;;  %v1329_v29 = vld [vmem:[%s3426_s6 + $0x750] sm:$0xff] }
 0x118   : > { %1652 = vmatprep.subr.mxu1 %v1402_v57  ;;  %1582 = vmatpush1.msra.mxu0 %v1113_v58  ;;  %v1215_v24 = vld [vmem:[%s3426_s6 + $0x3c0] sm:$0xff]  ;;  %v1330_v27 = vld [vmem:[%s3426_s6 + $0x758] sm:$0xff]  ;;  %v1205_v30 = vld [vmem:[%s3426_s6 + $0x370] sm:$0xff] }
 0x119   : > { %1653 = vmatpush1.msra.mxu1 %v1401_v59  ;;  %1583 = vmatprep.subr.mxu0 %v1105_v60  ;;  %v1206_v28 = vld [vmem:[%s3426_s6 + $0x378] sm:$0xff]  ;;  %v1321_v31 = vld [vmem:[%s3426_s6 + $0x710] sm:$0xff]  ;;  %v1320_v33 = vld [vmem:[%s3426_s6 + $0x708] sm:$0xff] }
 0x11a   : > { %1654 = vmatprep.subr.mxu1 %v1393_v61  ;;  %1584 = vmatpush1.msra.mxu0 %v1104_v62  ;;  %v1197_v32 = vld [vmem:[%s3426_s6 + $0x330] sm:$0xff]  ;;  %v1196_v34 = vld [vmem:[%s3426_s6 + $0x328] sm:$0xff]  ;;  %v1311_v37 = vld [vmem:[%s3426_s6 + $0x6c0] sm:$0xff] }
 0x11b   : > { %1655 = vmatpush1.msra.mxu1 %v1392_v63  ;;  %1585 = vmatprep.subr.mxu0 %v1096_v0  ;;  %v1312_v35 = vld [vmem:[%s3426_s6 + $0x6c8] sm:$0xff]  ;;  %v1187_v38 = vld [vmem:[%s3426_s6 + $0x2e0] sm:$0xff]  ;;  %v1302_v41 = vld [vmem:[%s3426_s6 + $0x678] sm:$0xff] }
 0x11c   : > { %1656 = vmatprep.subr.mxu1 %v1384_v1  ;;  %1586 = vmatpush1.msra.mxu0 %v1095_v4  ;;  %v1188_v36 = vld [vmem:[%s3426_s6 + $0x2e8] sm:$0xff]  ;;  %v1303_v39 = vld [vmem:[%s3426_s6 + $0x680] sm:$0xff]  ;;  %v1178_v42 = vld [vmem:[%s3426_s6 + $0x298] sm:$0xff] }
 0x11d   : > { %1657 = vmatpush1.msra.mxu1 %v1383_v5  ;;  %1587 = vmatprep.subr.mxu0 %v1375_v6  ;;  %v1179_v40 = vld [vmem:[%s3426_s6 + $0x2a0] sm:$0xff]  ;;  %v1294_v43 = vld [vmem:[%s3426_s6 + $0x638] sm:$0xff]  ;;  %v1293_v45 = vld [vmem:[%s3426_s6 + $0x630] sm:$0xff] }
 0x11e   : > { %1686 = vmatprep.subr.mxu1 %v1537_v7  ;;  %1588 = vmatpush2.msra.mxu0 %v1374_v8  ;;  %v1170_v44 = vld [vmem:[%s3426_s6 + $0x258] sm:$0xff]  ;;  %v1169_v46 = vld [vmem:[%s3426_s6 + $0x250] sm:$0xff]  ;;  %v1284_v49 = vld [vmem:[%s3426_s6 + $0x5e8] sm:$0xff] }
 0x11f   : > { %1687 = vmatpush2.msra.mxu1 %v1536_v9  ;;  %1589 = vmatprep.subr.mxu0 %v1366_v10  ;;  %v1285_v47 = vld [vmem:[%s3426_s6 + $0x5f0] sm:$0xff]  ;;  %v1160_v50 = vld [vmem:[%s3426_s6 + $0x208] sm:$0xff]  ;;  %v1275_v53 = vld [vmem:[%s3426_s6 + $0x5a0] sm:$0xff] }
 0x120   : > { %1688 = vmatprep.subr.mxu1 %v1528_v11  ;;  %1590 = vmatpush2.msra.mxu0 %v1365_v12  ;;  %v1161_v48 = vld [vmem:[%s3426_s6 + $0x210] sm:$0xff]  ;;  %v1276_v51 = vld [vmem:[%s3426_s6 + $0x5a8] sm:$0xff]  ;;  %v1151_v54 = vld [vmem:[%s3426_s6 + $0x1c0] sm:$0xff] }
 0x121   : > { %1689 = vmatpush2.msra.mxu1 %v1527_v13  ;;  %1591 = vmatprep.subr.mxu0 %v1357_v14  ;;  %v1152_v52 = vld [vmem:[%s3426_s6 + $0x1c8] sm:$0xff]  ;;  %v1267_v55 = vld [vmem:[%s3426_s6 + $0x560] sm:$0xff]  ;;  %v1266_v57 = vld [vmem:[%s3426_s6 + $0x558] sm:$0xff] }
 0x122   : > { %1697 = vmatprep.subr.mxu1 %v1233_v15  ;;  %1592 = vmatpush2.msra.mxu0 %v1356_v16  ;;  %v1143_v56 = vld [vmem:[%s3426_s6 + $0x180] sm:$0xff]  ;;  %v1142_v58 = vld [vmem:[%s3426_s6 + $0x178] sm:$0xff]  ;;  %v1257_v61 = vld [vmem:[%s3426_s6 + $0x510] sm:$0xff] }
 0x123   : > { %1691 = vmatmul.mubr.f32.vlgmr.msra.gmra.mxu1 %v3506_v17  ;;  %1593 = vmatprep.subr.mxu0 %v1348_v19  ;;  %v1258_v59 = vld [vmem:[%s3426_s6 + $0x518] sm:$0xff]  ;;  %v1133_v62 = vld [vmem:[%s3426_s6 + $0x130] sm:$0xff]  ;;  %v1248_v1 = vld [vmem:[%s3426_s6 + $0x4c8] sm:$0xff] }
 0x124   : > { %1698 = vmatpush1.msra.mxu1 %v1232_v18  ;;  %1594 = vmatpush2.msra.mxu0 %v1347_v21  ;;  %v1134_v60 = vld [vmem:[%s3426_s6 + $0x138] sm:$0xff]  ;;  %v1249_v63 = vld [vmem:[%s3426_s6 + $0x4d0] sm:$0xff]  ;;  %v1124_v4 = vld [vmem:[%s3426_s6 + $0xe8] sm:$0xff] }
 0x125   : > { %1699 = vmatprep.subr.mxu1 %v1224_v20  ;;  %1595 = vmatprep.subr.mxu0 %v1339_v23  ;;  %v1125_v0 = vld [vmem:[%s3426_s6 + $0xf0] sm:$0xff]  ;;  %v1240_v5 = vld [vmem:[%s3426_s6 + $0x488] sm:$0xff]  ;;  %v1239_v7 = vld [vmem:[%s3426_s6 + $0x480] sm:$0xff] }
 0x126   : > { %1700 = vmatpush1.msra.mxu1 %v1223_v22  ;;  %1596 = vmatpush2.msra.mxu0 %v1338_v25  ;;  %v1116_v6 = vld [vmem:[%s3426_s6 + $0xa8] sm:$0xff]  ;;  %v1115_v8 = vld [vmem:[%s3426_s6 + $0xa0] sm:$0xff]  ;;  %v1521_v11 = vld [vmem:[%s3426_s6 + $0xd50] sm:$0xff] }
 0x127   : > { %1701 = vmatprep.subr.mxu1 %v1215_v24  ;;  %1597 = vmatprep.subr.mxu0 %v1330_v27  ;;  %v3565_v9 = vld [vmem:[%s3977_s0] sm:$0xff]  ;;  %v1106_v12 = vld [vmem:[%s3426_s6 + $0x58] sm:$0xff]  ;;  %v1520_v13 = vld [vmem:[%s3426_s6 + $0xd48] sm:$0xff] }
 0x128   : > { %1702 = vmatpush1.msra.mxu1 %v1214_v26  ;;  %1598 = vmatpush2.msra.mxu0 %v1329_v29  ;;  %v1107_v10 = vld [vmem:[%s3426_s6 + $0x60] sm:$0xff]  ;;  %v1098_v14 = vld [vmem:[%s3426_s6 + $0x18] sm:$0xff]  ;;  %v1512_v15 = vld [vmem:[%s3426_s6 + $0xd08] sm:$0xff] }
 0x129   : > { %1703 = vmatprep.subr.mxu1 %v1206_v28  ;;  %1599 = vmatprep.subr.mxu0 %v1321_v31  ;;  %v1097_v16 = vld [vmem:[%s3426_s6 + $0x10] sm:$0xff]  ;;  %v1511_v18 = vld [vmem:[%s3426_s6 + $0xd00] sm:$0xff]  ;;  %v1376_v21 = vld [vmem:[%s3426_s6 + $0x8c8] sm:$0xff] }
 0x12a   : > { %1704 = vmatpush1.msra.mxu1 %v1205_v30  ;;  %1600 = vmatpush2.msra.mxu0 %v1320_v33  ;;  %v1377_v19 = vld [vmem:[%s3426_s6 + $0x8d0] sm:$0xff]  ;;  %v1503_v20 = vld [vmem:[%s3426_s6 + $0xcc0] sm:$0xff]  ;;  %v1502_v22 = vld [vmem:[%s3426_s6 + $0xcb8] sm:$0xff] }
 0x12b   : > { %1705 = vmatprep.subr.mxu1 %v1197_v32  ;;  %1601 = vmatprep.subr.mxu0 %v1312_v35  ;;  %v1368_v23 = vld [vmem:[%s3426_s6 + $0x888] sm:$0xff]  ;;  %v1494_v24 = vld [vmem:[%s3426_s6 + $0xc78] sm:$0xff]  ;;  %v1367_v25 = vld [vmem:[%s3426_s6 + $0x880] sm:$0xff] }
 0x12c   : > { %1706 = vmatpush1.msra.mxu1 %v1196_v34  ;;  %1602 = vmatpush2.msra.mxu0 %v1311_v37  ;;  %v1493_v26 = vld [vmem:[%s3426_s6 + $0xc70] sm:$0xff]  ;;  %v1359_v27 = vld [vmem:[%s3426_s6 + $0x840] sm:$0xff]  ;;  %v1358_v29 = vld [vmem:[%s3426_s6 + $0x838] sm:$0xff] }
 0x12d   : > { %1707 = vmatprep.subr.mxu1 %v1188_v36  ;;  %1603 = vmatprep.subr.mxu0 %v1303_v39  ;;  %v1485_v28 = vld [vmem:[%s3426_s6 + $0xc30] sm:$0xff]  ;;  %v1484_v30 = vld [vmem:[%s3426_s6 + $0xc28] sm:$0xff]  ;;  %v1350_v31 = vld [vmem:[%s3426_s6 + $0x7f8] sm:$0xff] }
 0x12e   : > { %1708 = vmatpush1.msra.mxu1 %v1187_v38  ;;  %1604 = vmatpush2.msra.mxu0 %v1302_v41  ;;  %v1476_v32 = vld [vmem:[%s3426_s6 + $0xbe8] sm:$0xff]  ;;  %v1349_v33 = vld [vmem:[%s3426_s6 + $0x7f0] sm:$0xff]  ;;  %v1475_v34 = vld [vmem:[%s3426_s6 + $0xbe0] sm:$0xff] }
 0x12f   : > { %1709 = vmatprep.subr.mxu1 %v1179_v40  ;;  %1605 = vmatprep.subr.mxu0 %v1294_v43  ;;  %v1341_v35 = vld [vmem:[%s3426_s6 + $0x7b0] sm:$0xff]  ;;  %v1467_v36 = vld [vmem:[%s3426_s6 + $0xba0] sm:$0xff]  ;;  %v1340_v37 = vld [vmem:[%s3426_s6 + $0x7a8] sm:$0xff] }
 0x130   : > { %1710 = vmatpush1.msra.mxu1 %v1178_v42  ;;  %1606 = vmatpush2.msra.mxu0 %v1293_v45  ;;  %v1466_v38 = vld [vmem:[%s3426_s6 + $0xb98] sm:$0xff]  ;;  %v1332_v39 = vld [vmem:[%s3426_s6 + $0x768] sm:$0xff]  ;;  %v1331_v41 = vld [vmem:[%s3426_s6 + $0x760] sm:$0xff] }
 0x131   : > { %1711 = vmatprep.subr.mxu1 %v1170_v44  ;;  %1607 = vmatprep.subr.mxu0 %v1285_v47  ;;  %v1458_v40 = vld [vmem:[%s3426_s6 + $0xb58] sm:$0xff]  ;;  %v1457_v42 = vld [vmem:[%s3426_s6 + $0xb50] sm:$0xff]  ;;  %v1323_v43 = vld [vmem:[%s3426_s6 + $0x720] sm:$0xff] }
 0x132   : > { %1712 = vmatpush1.msra.mxu1 %v1169_v46  ;;  %1608 = vmatpush2.msra.mxu0 %v1284_v49  ;;  %v1449_v44 = vld [vmem:[%s3426_s6 + $0xb10] sm:$0xff]  ;;  %v1322_v45 = vld [vmem:[%s3426_s6 + $0x718] sm:$0xff]  ;;  %v1448_v46 = vld [vmem:[%s3426_s6 + $0xb08] sm:$0xff] }
 0x133   : > { %1713 = vmatprep.subr.mxu1 %v1161_v48  ;;  %1609 = vmatprep.subr.mxu0 %v1276_v51  ;;  %v1314_v47 = vld [vmem:[%s3426_s6 + $0x6d8] sm:$0xff]  ;;  %v1440_v48 = vld [vmem:[%s3426_s6 + $0xac8] sm:$0xff]  ;;  %v1313_v49 = vld [vmem:[%s3426_s6 + $0x6d0] sm:$0xff] }
 0x134   : > { %1714 = vmatpush1.msra.mxu1 %v1160_v50  ;;  %1610 = vmatpush2.msra.mxu0 %v1275_v53  ;;  %v1439_v50 = vld [vmem:[%s3426_s6 + $0xac0] sm:$0xff]  ;;  %v1305_v51 = vld [vmem:[%s3426_s6 + $0x690] sm:$0xff]  ;;  %v1304_v53 = vld [vmem:[%s3426_s6 + $0x688] sm:$0xff] }
 0x135   : > { %1715 = vmatprep.subr.mxu1 %v1152_v52  ;;  %1611 = vmatprep.subr.mxu0 %v1267_v55  ;;  %v1431_v52 = vld [vmem:[%s3426_s6 + $0xa80] sm:$0xff]  ;;  %v1296_v55 = vld [vmem:[%s3426_s6 + $0x648] sm:$0xff] }
 0x136   : > { %1716 = vmatpush1.msra.mxu1 %v1151_v54  ;;  %1612 = vmatpush2.msra.mxu0 %v1266_v57  ;;  %v1430_v54 = vld [vmem:[%s3426_s6 + $0xa78] sm:$0xff]  ;;  %v1295_v57 = vld [vmem:[%s3426_s6 + $0x640] sm:$0xff] }
 0x137   : > { %1717 = vmatprep.subr.mxu1 %v1143_v56  ;;  %1613 = vmatprep.subr.mxu0 %v1258_v59  ;;  %v1422_v56 = vld [vmem:[%s3426_s6 + $0xa38] sm:$0xff]  ;;  %v1287_v59 = vld [vmem:[%s3426_s6 + $0x600] sm:$0xff] }
 0x138   : > { %1718 = vmatpush1.msra.mxu1 %v1142_v58  ;;  %1614 = vmatpush2.msra.mxu0 %v1257_v61  ;;  %v1421_v58 = vld [vmem:[%s3426_s6 + $0xa30] sm:$0xff]  ;;  %v1286_v61 = vld [vmem:[%s3426_s6 + $0x5f8] sm:$0xff] }
 0x139   : > { %1719 = vmatprep.subr.mxu1 %v1134_v60  ;;  %1615 = vmatprep.subr.mxu0 %v1249_v63  ;;  %v1413_v60 = vld [vmem:[%s3426_s6 + $0x9f0] sm:$0xff]  ;;  %v1278_v63 = vld [vmem:[%s3426_s6 + $0x5b8] sm:$0xff] }
 0x13a   : > { %1720 = vmatpush1.msra.mxu1 %v1133_v62  ;;  %1616 = vmatpush2.msra.mxu0 %v1248_v1  ;;  %v1412_v62 = vld [vmem:[%s3426_s6 + $0x9e8] sm:$0xff]  ;;  %v1277_v1 = vld [vmem:[%s3426_s6 + $0x5b0] sm:$0xff] }
 0x13b   : > { %1721 = vmatprep.subr.mxu1 %v1125_v0  ;;  %1617 = vmatprep.subr.mxu0 %v1240_v5  ;;  %v1404_v0 = vld [vmem:[%s3426_s6 + $0x9a8] sm:$0xff]  ;;  %v1269_v5 = vld [vmem:[%s3426_s6 + $0x570] sm:$0xff] }
 0x13c   : > { %1722 = vmatpush1.msra.mxu1 %v1124_v4  ;;  %1618 = vmatpush2.msra.mxu0 %v1239_v7  ;;  %v1403_v4 = vld [vmem:[%s3426_s6 + $0x9a0] sm:$0xff]  ;;  %v1268_v7 = vld [vmem:[%s3426_s6 + $0x568] sm:$0xff] }
 0x13d   : > { %1723 = vmatprep.subr.mxu1 %v1116_v6  ;;  %1620 = vmatmul.mubr.f32.vlgmr.msra.gmra.mxu0 %v3565_v9  ;;  %v1395_v6 = vld [vmem:[%s3426_s6 + $0x960] sm:$0xff] }
 0x13e   : > { %1724 = vmatpush1.msra.mxu1 %v1115_v8  ;;  %1768 = vmatprep.subr.mxu0 %v1521_v11  ;;  %v1394_v8 = vld [vmem:[%s3426_s6 + $0x958] sm:$0xff] }
 0x13f   : > { %1725 = vmatprep.subr.mxu1 %v1107_v10  ;;  %1769 = vmatpush1.msra.mxu0 %v1520_v13  ;;  %v1260_v10 = vld [vmem:[%s3426_s6 + $0x528] sm:$0xff]  ;;  %v1386_v11 = vld [vmem:[%s3426_s6 + $0x918] sm:$0xff]  ;;  %v1385_v13 = vld [vmem:[%s3426_s6 + $0x910] sm:$0xff] }
 0x140   : > { %1726 = vmatpush1.msra.mxu1 %v1106_v12  ;;  %1770 = vmatprep.subr.mxu0 %v1512_v15  ;;  %v1259_v12 = vld [vmem:[%s3426_s6 + $0x520] sm:$0xff] }
 0x141   : > { %1727 = vmatprep.subr.mxu1 %v1098_v14  ;;  %1771 = vmatpush1.msra.mxu0 %v1511_v18  ;;  %v1251_v14 = vld [vmem:[%s3426_s6 + $0x4e0] sm:$0xff]  ;;  %v1538_v18 = vld [vmem:[%s3426_s6 + $0xdd8] sm:$0xff] }
 0x142   : > { %1728 = vmatpush1.msra.mxu1 %v1097_v16  ;;  %1772 = vmatprep.subr.mxu0 %v1503_v20  ;;  %v1539_v15 = vld [vmem:[%s3426_s6 + $0xde0] sm:$0xff]  ;;  %v1250_v16 = vld [vmem:[%s3426_s6 + $0x4d8] sm:$0xff] }
 0x143   : > { %1729 = vmatprep.subr.mxu1 %v1377_v19  ;;  %1773 = vmatpush1.msra.mxu0 %v1502_v22  ;;  %v1242_v19 = vld [vmem:[%s3426_s6 + $0x498] sm:$0xff]  ;;  %v1529_v22 = vld [vmem:[%s3426_s6 + $0xd90] sm:$0xff] }
 0x144   : > { %1730 = vmatpush2.msra.mxu1 %v1376_v21  ;;  %1774 = vmatprep.subr.mxu0 %v1494_v24  ;;  %v1530_v20 = vld [vmem:[%s3426_s6 + $0xd98] sm:$0xff]  ;;  %v1241_v21 = vld [vmem:[%s3426_s6 + $0x490] sm:$0xff]  ;;  %v1523_v24 = vld [vmem:[%s3426_s6 + $0xd60] sm:$0xff] }
 0x145   : > { %1731 = vmatprep.subr.mxu1 %v1368_v23  ;;  %1775 = vmatpush1.msra.mxu0 %v1493_v26  ;;  %v1235_v23 = vld [vmem:[%s3426_s6 + $0x460] sm:$0xff]  ;;  %v1522_v26 = vld [vmem:[%s3426_s6 + $0xd58] sm:$0xff] }
 0x146   : > { %1732 = vmatpush2.msra.mxu1 %v1367_v25  ;;  %1776 = vmatprep.subr.mxu0 %v1485_v28  ;;  %v1234_v25 = vld [vmem:[%s3426_s6 + $0x458] sm:$0xff] }
 0x147   : > { %1733 = vmatprep.subr.mxu1 %v1359_v27  ;;  %1777 = vmatpush1.msra.mxu0 %v1484_v30  ;;  %v1226_v27 = vld [vmem:[%s3426_s6 + $0x418] sm:$0xff]  ;;  %v1505_v30 = vld [vmem:[%s3426_s6 + $0xcd0] sm:$0xff] }
 0x148   : > { %1734 = vmatpush2.msra.mxu1 %v1358_v29  ;;  %1778 = vmatprep.subr.mxu0 %v1476_v32  ;;  %v1514_v28 = vld [vmem:[%s3426_s6 + $0xd18] sm:$0xff]  ;;  %v1513_v29 = vld [vmem:[%s3426_s6 + $0xd10] sm:$0xff]  ;;  %v1504_v32 = vld [vmem:[%s3426_s6 + $0xcc8] sm:$0xff] }
 0x149   : > { %1735 = vmatprep.subr.mxu1 %v1350_v31  ;;  %1779 = vmatpush1.msra.mxu0 %v1475_v34  ;;  %v1216_v31 = vld [vmem:[%s3426_s6 + $0x3c8] sm:$0xff] }
 0x14a   : > { %1736 = vmatpush2.msra.mxu1 %v1349_v33  ;;  %1780 = vmatprep.subr.mxu0 %v1467_v36  ;;  %v1208_v33 = vld [vmem:[%s3426_s6 + $0x388] sm:$0xff]  ;;  %v1495_v36 = vld [vmem:[%s3426_s6 + $0xc80] sm:$0xff] }
 0x14b   : > { %1737 = vmatprep.subr.mxu1 %v1341_v35  ;;  %1781 = vmatpush1.msra.mxu0 %v1466_v38  ;;  %v1496_v34 = vld [vmem:[%s3426_s6 + $0xc88] sm:$0xff]  ;;  %v1207_v35 = vld [vmem:[%s3426_s6 + $0x380] sm:$0xff] }
 0x14c   : > { %1738 = vmatpush2.msra.mxu1 %v1340_v37  ;;  %1782 = vmatprep.subr.mxu0 %v1458_v40  ;;  %v1199_v37 = vld [vmem:[%s3426_s6 + $0x340] sm:$0xff]  ;;  %v1486_v40 = vld [vmem:[%s3426_s6 + $0xc38] sm:$0xff] }
 0x14d   : > { %1739 = vmatprep.subr.mxu1 %v1332_v39  ;;  %1783 = vmatpush1.msra.mxu0 %v1457_v42  ;;  %v1487_v38 = vld [vmem:[%s3426_s6 + $0xc40] sm:$0xff]  ;;  %v1198_v39 = vld [vmem:[%s3426_s6 + $0x338] sm:$0xff] }
 0x14e   : > { %1740 = vmatpush2.msra.mxu1 %v1331_v41  ;;  %1784 = vmatprep.subr.mxu0 %v1449_v44  ;;  %v1190_v41 = vld [vmem:[%s3426_s6 + $0x2f8] sm:$0xff]  ;;  %v1477_v44 = vld [vmem:[%s3426_s6 + $0xbf0] sm:$0xff] }
 0x14f   : > { %1741 = vmatprep.subr.mxu1 %v1323_v43  ;;  %1785 = vmatpush1.msra.mxu0 %v1448_v46  ;;  %v1478_v42 = vld [vmem:[%s3426_s6 + $0xbf8] sm:$0xff]  ;;  %v1189_v43 = vld [vmem:[%s3426_s6 + $0x2f0] sm:$0xff] }
 0x150   : > { %1742 = vmatpush2.msra.mxu1 %v1322_v45  ;;  %1786 = vmatprep.subr.mxu0 %v1440_v48  ;;  %v1181_v45 = vld [vmem:[%s3426_s6 + $0x2b0] sm:$0xff]  ;;  %v1468_v48 = vld [vmem:[%s3426_s6 + $0xba8] sm:$0xff] }
 0x151   : > { %1743 = vmatprep.subr.mxu1 %v1314_v47  ;;  %1787 = vmatpush1.msra.mxu0 %v1439_v50  ;;  %v1469_v46 = vld [vmem:[%s3426_s6 + $0xbb0] sm:$0xff]  ;;  %v1180_v47 = vld [vmem:[%s3426_s6 + $0x2a8] sm:$0xff] }
 0x152   : > { %1744 = vmatpush2.msra.mxu1 %v1313_v49  ;;  %1788 = vmatprep.subr.mxu0 %v1431_v52  ;;  %v1172_v49 = vld [vmem:[%s3426_s6 + $0x268] sm:$0xff]  ;;  %v1459_v52 = vld [vmem:[%s3426_s6 + $0xb60] sm:$0xff] }
 0x153   : > { %1745 = vmatprep.subr.mxu1 %v1305_v51  ;;  %1789 = vmatpush1.msra.mxu0 %v1430_v54  ;;  %v1460_v50 = vld [vmem:[%s3426_s6 + $0xb68] sm:$0xff]  ;;  %v1171_v51 = vld [vmem:[%s3426_s6 + $0x260] sm:$0xff] }
 0x154   : > { %1746 = vmatpush2.msra.mxu1 %v1304_v53  ;;  %1790 = vmatprep.subr.mxu0 %v1422_v56  ;;  %v1163_v53 = vld [vmem:[%s3426_s6 + $0x220] sm:$0xff]  ;;  %v1450_v56 = vld [vmem:[%s3426_s6 + $0xb18] sm:$0xff] }
 0x155   : > { %1747 = vmatprep.subr.mxu1 %v1296_v55  ;;  %1791 = vmatpush1.msra.mxu0 %v1421_v58  ;;  %v1451_v54 = vld [vmem:[%s3426_s6 + $0xb20] sm:$0xff]  ;;  %v1162_v55 = vld [vmem:[%s3426_s6 + $0x218] sm:$0xff] }
 0x156   : > { %1748 = vmatpush2.msra.mxu1 %v1295_v57  ;;  %1792 = vmatprep.subr.mxu0 %v1413_v60  ;;  %v1154_v57 = vld [vmem:[%s3426_s6 + $0x1d8] sm:$0xff]  ;;  %v1441_v60 = vld [vmem:[%s3426_s6 + $0xad0] sm:$0xff] }
 0x157   : > { %1749 = vmatprep.subr.mxu1 %v1287_v59  ;;  %1793 = vmatpush1.msra.mxu0 %v1412_v62  ;;  %v1442_v58 = vld [vmem:[%s3426_s6 + $0xad8] sm:$0xff]  ;;  %v1153_v59 = vld [vmem:[%s3426_s6 + $0x1d0] sm:$0xff] }
 0x158   : > { %1750 = vmatpush2.msra.mxu1 %v1286_v61  ;;  %1794 = vmatprep.subr.mxu0 %v1404_v0  ;;  %v1145_v61 = vld [vmem:[%s3426_s6 + $0x190] sm:$0xff]  ;;  %v1432_v0 = vld [vmem:[%s3426_s6 + $0xa88] sm:$0xff] }
 0x159   : > { %1751 = vmatprep.subr.mxu1 %v1278_v63  ;;  %1795 = vmatpush1.msra.mxu0 %v1403_v4  ;;  %v1433_v62 = vld [vmem:[%s3426_s6 + $0xa90] sm:$0xff]  ;;  %v1144_v63 = vld [vmem:[%s3426_s6 + $0x188] sm:$0xff] }
 0x15a   : > { %1752 = vmatpush2.msra.mxu1 %v1277_v1  ;;  %1796 = vmatprep.subr.mxu0 %v1395_v6  ;;  %v1136_v1 = vld [vmem:[%s3426_s6 + $0x148] sm:$0xff]  ;;  %v1423_v6 = vld [vmem:[%s3426_s6 + $0xa40] sm:$0xff] }
 0x15b   : > { %1753 = vmatprep.subr.mxu1 %v1269_v5  ;;  %1797 = vmatpush1.msra.mxu0 %v1394_v8  ;;  %v1424_v4 = vld [vmem:[%s3426_s6 + $0xa48] sm:$0xff]  ;;  %v1135_v5 = vld [vmem:[%s3426_s6 + $0x140] sm:$0xff] }
 0x15c   : > { %1754 = vmatpush2.msra.mxu1 %v1268_v7  ;;  %1798 = vmatprep.subr.mxu0 %v1386_v11  ;;  %v1127_v7 = vld [vmem:[%s3426_s6 + $0x100] sm:$0xff]  ;;  %v1414_v11 = vld [vmem:[%s3426_s6 + $0x9f8] sm:$0xff] }
 0x15d   : > { %1755 = vmatprep.subr.mxu1 %v1260_v10  ;;  %1799 = vmatpush1.msra.mxu0 %v1385_v13  ;;  %v1415_v8 = vld [vmem:[%s3426_s6 + $0xa00] sm:$0xff]  ;;  %v1126_v10 = vld [vmem:[%s3426_s6 + $0xf8] sm:$0xff] }
 0x15e   : > { %1756 = vmatpush2.msra.mxu1 %v1259_v12  ;;  %1828 = vmatprep.subr.mxu0 %v1539_v15  ;;  %v1118_v12 = vld [vmem:[%s3426_s6 + $0xb8] sm:$0xff]  ;;  %v1405_v15 = vld [vmem:[%s3426_s6 + $0x9b0] sm:$0xff] }
 0x15f   : > { %1757 = vmatprep.subr.mxu1 %v1251_v14  ;;  %1829 = vmatpush2.msra.mxu0 %v1538_v18  ;;  %v1406_v13 = vld [vmem:[%s3426_s6 + $0x9b8] sm:$0xff]  ;;  %v1117_v14 = vld [vmem:[%s3426_s6 + $0xb0] sm:$0xff] }
 0x160   : > { %1758 = vmatpush2.msra.mxu1 %v1250_v16  ;;  %1830 = vmatprep.subr.mxu0 %v1530_v20  ;;  %v1109_v16 = vld [vmem:[%s3426_s6 + $0x70] sm:$0xff]  ;;  %v1396_v20 = vld [vmem:[%s3426_s6 + $0x968] sm:$0xff] }
 0x161   : > { %1759 = vmatprep.subr.mxu1 %v1242_v19  ;;  %1761 = vmatprep.mubr.f32.mxu1 %v3421_v3  ;;  %v1225_v3 = vld [vmem:[%s3426_s6 + $0x410] sm:$0xff]  ;;  %v1108_v19 = vld [vmem:[%s3426_s6 + $0x68] sm:$0xff] }
 0x162   : > { %1760 = vmatpush2.msra.mxu1 %v1241_v21  ;;  %1831 = vmatpush2.msra.mxu0 %v1529_v22  ;;  %v1397_v18 = vld [vmem:[%s3426_s6 + $0x970] sm:$0xff]  ;;  %v1100_v21 = vld [vmem:[%s3426_s6 + $0x28] sm:$0xff] }
 0x163   : > { %2351 = vmatprep.mubr.msk.f32.mxu0 %vm1551_vm0, %v3416_v2  ;;  %1762 = vmatmul.mubr.f32.vlgmr.msra.gmra.mxu1 %v3565_v9  ;;  %v1217_v2 = vld [vmem:[%s3426_s6 + $0x3d0] sm:$0xff]  ;;  %v1388_v22 = vld [vmem:[%s3426_s6 + $0x928] sm:$0xff] }
 0x164   : > { %1833 = vmatmul.mubr.f32.vlgmr.msra.gmra.mxu0 %v3506_v17  ;;  %1839 = vmatprep.subr.mxu0 %v1235_v23  ;;  %v1099_v23 = vld [vmem:[%s3426_s6 + $0x20] sm:$0xff] }
 0x165   : > { %1910 = vmatprep.subr.mxu1 %v1523_v24  ;;  %1840 = vmatpush1.msra.mxu0 %v1234_v25  ;;  %v1387_v24 = vld [vmem:[%s3426_s6 + $0x920] sm:$0xff] }
 0x166   : > { %1911 = vmatpush1.msra.mxu1 %v1522_v26  ;;  %1841 = vmatprep.subr.mxu0 %v1226_v27  ;;  %v1379_v25 = vld [vmem:[%s3426_s6 + $0x8e0] sm:$0xff]  ;;  %v1541_v26 = vld [vmem:[%s3426_s6 + $0xdf0] sm:$0xff] }
 0x167   : > { %1912 = vmatprep.subr.mxu1 %v1514_v28  ;;  %1842 = vmatpush1.msra.mxu0 %v1225_v3  ;;  %v1545_v27 = vld [vmem:[%s3979_s2] sm:$0xff]  ;;  %v1378_v28 = vld [vmem:[%s3426_s6 + $0x8d8] sm:$0xff]  ;;  %v1540_v3 = vld [vmem:[%s3426_s6 + $0xde8] sm:$0xff] }
 0x168   : > { %1913 = vmatpush1.msra.mxu1 %v1513_v29  ;;  %1843 = vmatprep.subr.mxu0 %v1217_v2  ;;  %v2450_v29 = vmov 0   ;;  %v1370_v2 = vld [vmem:[%s3426_s6 + $0x898] sm:$0xff] }
 0x169   : > { %1914 = vmatprep.subr.mxu1 %v1505_v30  ;;  %1844 = vmatpush1.msra.mxu0 %v1216_v31  ;;  %v1532_v30 = vld [vmem:[%s3426_s6 + $0xda8] sm:$0xff]  ;;  %v1369_v31 = vld [vmem:[%s3426_s6 + $0x890] sm:$0xff] }
 0x16a   : > { %1915 = vmatpush1.msra.mxu1 %v1504_v32  ;;  %1845 = vmatprep.subr.mxu0 %v1208_v33  ;;  %v1531_v32 = vld [vmem:[%s3426_s6 + $0xda0] sm:$0xff]  ;;  %v1361_v33 = vld [vmem:[%s3426_s6 + $0x850] sm:$0xff] }
 0x16b   : > { %1916 = vmatprep.subr.mxu1 %v1496_v34  ;;  %1846 = vmatpush1.msra.mxu0 %v1207_v35  ;;  %v1237_v34 = vld [vmem:[%s3426_s6 + $0x470] sm:$0xff]  ;;  %v1360_v35 = vld [vmem:[%s3426_s6 + $0x848] sm:$0xff] }
 0x16c   : > { %1917 = vmatpush1.msra.mxu1 %v1495_v36  ;;  %1847 = vmatprep.subr.mxu0 %v1199_v37  ;;  %v1352_v36 = vld [vmem:[%s3426_s6 + $0x808] sm:$0xff] }
 0x16d   : > { %1918 = vmatprep.subr.mxu1 %v1487_v38  ;;  %1848 = vmatpush1.msra.mxu0 %v1198_v39  ;;  %v3727_v37 = vld [vmem:[%s3977_s0 + $0x18] sm:$0xff]  ;;  %v1351_v39 = vld [vmem:[%s3426_s6 + $0x800] sm:$0xff] }
 0x16e   : > { %1919 = vmatpush1.msra.mxu1 %v1486_v40  ;;  %1849 = vmatprep.subr.mxu0 %v1190_v41  ;;  %v1236_v38 = vld [vmem:[%s3426_s6 + $0x468] sm:$0xff]  ;;  %v1343_v41 = vld [vmem:[%s3426_s6 + $0x7c0] sm:$0xff] }
 0x16f   : > { %1920 = vmatprep.subr.mxu1 %v1478_v42  ;;  %1850 = vmatpush1.msra.mxu0 %v1189_v43  ;;  %v1228_v40 = vld [vmem:[%s3426_s6 + $0x428] sm:$0xff]  ;;  %v1227_v42 = vld [vmem:[%s3426_s6 + $0x420] sm:$0xff]  ;;  %v1342_v43 = vld [vmem:[%s3426_s6 + $0x7b8] sm:$0xff] }
 0x170   : > { %1921 = vmatpush1.msra.mxu1 %v1477_v44  ;;  %1851 = vmatprep.subr.mxu0 %v1181_v45  ;;  %v1219_v44 = vld [vmem:[%s3426_s6 + $0x3e0] sm:$0xff]  ;;  %v1334_v45 = vld [vmem:[%s3426_s6 + $0x778] sm:$0xff] }
 0x171   : > { %1922 = vmatprep.subr.mxu1 %v1469_v46  ;;  %1852 = vmatpush1.msra.mxu0 %v1180_v47  ;;  %v1218_v46 = vld [vmem:[%s3426_s6 + $0x3d8] sm:$0xff]  ;;  %v1333_v47 = vld [vmem:[%s3426_s6 + $0x770] sm:$0xff] }
 0x172   : > { %1923 = vmatpush1.msra.mxu1 %v1468_v48  ;;  %1853 = vmatprep.subr.mxu0 %v1172_v49  ;;  %v1325_v48 = vld [vmem:[%s3426_s6 + $0x730] sm:$0xff] }
 0x173   : > { %1924 = vmatprep.subr.mxu1 %v1460_v50  ;;  %1854 = vmatpush1.msra.mxu0 %v1171_v51  ;;  %v1209_v49 = vld [vmem:[%s3426_s6 + $0x390] sm:$0xff]  ;;  %v1324_v50 = vld [vmem:[%s3426_s6 + $0x728] sm:$0xff] }
 0x174   : > { %1925 = vmatpush1.msra.mxu1 %v1459_v52  ;;  %1855 = vmatprep.subr.mxu0 %v1163_v53  ;;  %v1201_v51 = vld [vmem:[%s3426_s6 + $0x350] sm:$0xff]  ;;  %v1316_v52 = vld [vmem:[%s3426_s6 + $0x6e8] sm:$0xff] }
 0x175   : > { %1926 = vmatprep.subr.mxu1 %v1451_v54  ;;  %1856 = vmatpush1.msra.mxu0 %v1162_v55  ;;  %v1200_v53 = vld [vmem:[%s3426_s6 + $0x348] sm:$0xff]  ;;  %v1315_v54 = vld [vmem:[%s3426_s6 + $0x6e0] sm:$0xff] }
 0x176   : > { %1927 = vmatpush1.msra.mxu1 %v1450_v56  ;;  %1857 = vmatprep.subr.mxu0 %v1154_v57  ;;  %v1192_v55 = vld [vmem:[%s3426_s6 + $0x308] sm:$0xff]  ;;  %v1307_v56 = vld [vmem:[%s3426_s6 + $0x6a0] sm:$0xff] }
 0x177   : > { %1928 = vmatprep.subr.mxu1 %v1442_v58  ;;  %1858 = vmatpush1.msra.mxu0 %v1153_v59  ;;  %v1191_v57 = vld [vmem:[%s3426_s6 + $0x300] sm:$0xff]  ;;  %v1306_v58 = vld [vmem:[%s3426_s6 + $0x698] sm:$0xff] }
 0x178   : > { %1929 = vmatpush1.msra.mxu1 %v1441_v60  ;;  %1859 = vmatprep.subr.mxu0 %v1145_v61  ;;  %v1183_v59 = vld [vmem:[%s3426_s6 + $0x2c0] sm:$0xff]  ;;  %v1298_v60 = vld [vmem:[%s3426_s6 + $0x658] sm:$0xff] }
 0x179   : > { %1930 = vmatprep.subr.mxu1 %v1433_v62  ;;  %1860 = vmatpush1.msra.mxu0 %v1144_v63  ;;  %v1182_v61 = vld [vmem:[%s3426_s6 + $0x2b8] sm:$0xff]  ;;  %v1297_v62 = vld [vmem:[%s3426_s6 + $0x650] sm:$0xff] }
 0x17a   : > { %1931 = vmatpush1.msra.mxu1 %v1432_v0  ;;  %1861 = vmatprep.subr.mxu0 %v1136_v1  ;;  %v1174_v63 = vld [vmem:[%s3426_s6 + $0x278] sm:$0xff]  ;;  %v1289_v0 = vld [vmem:[%s3426_s6 + $0x610] sm:$0xff] }
 0x17b   : > { %1932 = vmatprep.subr.mxu1 %v1424_v4  ;;  %1862 = vmatpush1.msra.mxu0 %v1135_v5  ;;  %v1173_v1 = vld [vmem:[%s3426_s6 + $0x270] sm:$0xff]  ;;  %v1288_v4 = vld [vmem:[%s3426_s6 + $0x608] sm:$0xff] }
 0x17c   : > { %1933 = vmatpush1.msra.mxu1 %v1423_v6  ;;  %1863 = vmatprep.subr.mxu0 %v1127_v7  ;;  %v1165_v5 = vld [vmem:[%s3426_s6 + $0x230] sm:$0xff]  ;;  %v1280_v6 = vld [vmem:[%s3426_s6 + $0x5c8] sm:$0xff] }
 0x17d   : > { %1934 = vmatprep.subr.mxu1 %v1415_v8  ;;  %1864 = vmatpush1.msra.mxu0 %v1126_v10  ;;  %v1164_v7 = vld [vmem:[%s3426_s6 + $0x228] sm:$0xff]  ;;  %v1279_v8 = vld [vmem:[%s3426_s6 + $0x5c0] sm:$0xff] }
 0x17e   : > { %1935 = vmatpush1.msra.mxu1 %v1414_v11  ;;  %1865 = vmatprep.subr.mxu0 %v1118_v12  ;;  %v1156_v10 = vld [vmem:[%s3426_s6 + $0x1e8] sm:$0xff]  ;;  %v1271_v11 = vld [vmem:[%s3426_s6 + $0x580] sm:$0xff] }
 0x17f   : > { %1936 = vmatprep.subr.mxu1 %v1406_v13  ;;  %1866 = vmatpush1.msra.mxu0 %v1117_v14  ;;  %v1155_v12 = vld [vmem:[%s3426_s6 + $0x1e0] sm:$0xff]  ;;  %v1270_v13 = vld [vmem:[%s3426_s6 + $0x578] sm:$0xff] }
 0x180   : > { %1937 = vmatpush1.msra.mxu1 %v1405_v15  ;;  %1867 = vmatprep.subr.mxu0 %v1109_v16  ;;  %v1147_v14 = vld [vmem:[%s3426_s6 + $0x1a0] sm:$0xff]  ;;  %v1262_v15 = vld [vmem:[%s3426_s6 + $0x538] sm:$0xff] }
 0x181   : > { %1938 = vmatprep.subr.mxu1 %v1397_v18  ;;  %1868 = vmatpush1.msra.mxu0 %v1108_v19  ;;  %v1146_v16 = vld [vmem:[%s3426_s6 + $0x198] sm:$0xff]  ;;  %v1261_v18 = vld [vmem:[%s3426_s6 + $0x530] sm:$0xff] }
 0x182   : > { %1939 = vmatpush1.msra.mxu1 %v1396_v20  ;;  %1869 = vmatprep.subr.mxu0 %v1100_v21  ;;  %v1138_v19 = vld [vmem:[%s3426_s6 + $0x158] sm:$0xff]  ;;  %v1253_v20 = vld [vmem:[%s3426_s6 + $0x4f0] sm:$0xff] }
 0x183   : > { %1940 = vmatprep.subr.mxu1 %v1388_v22  ;;  %1870 = vmatpush1.msra.mxu0 %v1099_v23  ;;  %v1137_v21 = vld [vmem:[%s3426_s6 + $0x150] sm:$0xff]  ;;  %v1252_v22 = vld [vmem:[%s3426_s6 + $0x4e8] sm:$0xff] }
 0x184   : > { %1941 = vmatpush1.msra.mxu1 %v1387_v24  ;;  %2421 = vset.pattern.permute.xlu0 %v2450_v29  ;;  %v1129_v23 = vld [vmem:[%s3426_s6 + $0x110] sm:$0xff]  ;;  %v1244_v24 = vld [vmem:[%s3426_s6 + $0x4a8] sm:$0xff] }
 0x185   : > { %1871 = vmatprep.subr.mxu0 %v1379_v25  ;;  %1970 = vmatprep.subr.mxu1 %v1541_v26  ;;  %v1128_v25 = vld [vmem:[%s3426_s6 + $0x108] sm:$0xff]  ;;  %v1243_v26 = vld [vmem:[%s3426_s6 + $0x4a0] sm:$0xff]  ;;  %v1525_v29 = vld [vmem:[%s3426_s6 + $0xd70] sm:$0xff] }
 0x186   : > { %1548 = vperm.xlu0 %2421, %v1545_v27   ;;  %1872 = vmatpush2.msra.mxu0 %v1378_v28  ;;  %v1120_v27 = vld [vmem:[%s3426_s6 + $0xc8] sm:$0xff]  ;;  %v1119_v28 = vld [vmem:[%s3426_s6 + $0xc0] sm:$0xff] }
 0x187   : > { %1971 = vmatpush2.msra.mxu1 %v1540_v3  ;;  %1873 = vmatprep.subr.mxu0 %v1370_v2  ;;  %v1111_v3 = vld [vmem:[%s3426_s6 + $0x80] sm:$0xff]  ;;  %v3789_v2 = vld [vmem:[%s3977_s0 + $0x8] sm:$0xff] }
 0x188   : > { %1972 = vmatprep.subr.mxu1 %v1532_v30  ;;  %1874 = vmatpush2.msra.mxu0 %v1369_v31  ;;  %v1110_v30 = vld [vmem:[%s3426_s6 + $0x78] sm:$0xff]  ;;  %v1524_v31 = vld [vmem:[%s3426_s6 + $0xd68] sm:$0xff] }
 0x189   : > { %1973 = vmatpush2.msra.mxu1 %v1531_v32  ;;  %1875 = vmatprep.subr.mxu0 %v1361_v33  ;;  %v1102_v32 = vld [vmem:[%s3426_s6 + $0x38] sm:$0xff]  ;;  %v1516_v33 = vld [vmem:[%s3426_s6 + $0xd28] sm:$0xff] }
 0x18a   : > { %2352 = vmatprep.mubr.msk.f32.mxu1 %vm1551_vm0, %v3727_v37  ;;  %1981 = vmatprep.subr.mxu1 %v1237_v34  ;;  %v1101_v34 = vld [vmem:[%s3426_s6 + $0x30] sm:$0xff] }
 0x18b   : > { %1876 = vmatpush2.msra.mxu0 %v1360_v35  ;;  %1975 = vmatmul.mubr.f32.vlgmr.msra.gmra.mxu1 %v3506_v17  ;;  %v1210_v17 = vld [vmem:[%s3426_s6 + $0x398] sm:$0xff]  ;;  %v1515_v35 = vld [vmem:[%s3426_s6 + $0xd20] sm:$0xff] }
 0x18c   : > { %1877 = vmatprep.subr.mxu0 %v1352_v36  ;;  %1982 = vmatpush1.msra.mxu1 %v1236_v38  ;;  %v1381_v36 = vld [vmem:[%s3426_s6 + $0x8f0] sm:$0xff]  ;;  %v1507_v38 = vld [vmem:[%s3426_s6 + $0xce0] sm:$0xff] }
 0x18d   : > { %1878 = vmatpush2.msra.mxu0 %v1351_v39  ;;  %1983 = vmatprep.subr.mxu1 %v1228_v40  ;;  %v1380_v39 = vld [vmem:[%s3426_s6 + $0x8e8] sm:$0xff] }
 0x18e   : > { %1879 = vmatprep.subr.mxu0 %v1343_v41  ;;  %1984 = vmatpush1.msra.mxu1 %v1227_v42  ;;  %v1372_v40 = vld [vmem:[%s3426_s6 + $0x8a8] sm:$0xff]  ;;  %v1498_v41 = vld [vmem:[%s3426_s6 + $0xc98] sm:$0xff]  ;;  %v1371_v42 = vld [vmem:[%s3426_s6 + $0x8a0] sm:$0xff] }
 0x18f   : > { %1880 = vmatpush2.msra.mxu0 %v1342_v43  ;;  %1985 = vmatprep.subr.mxu1 %v1219_v44  ;;  %v1497_v43 = vld [vmem:[%s3426_s6 + $0xc90] sm:$0xff]  ;;  %v1363_v44 = vld [vmem:[%s3426_s6 + $0x860] sm:$0xff] }
 0x190   : > { %1881 = vmatprep.subr.mxu0 %v1334_v45  ;;  %1986 = vmatpush1.msra.mxu1 %v1218_v46  ;;  %v1489_v45 = vld [vmem:[%s3426_s6 + $0xc50] sm:$0xff]  ;;  %v1362_v46 = vld [vmem:[%s3426_s6 + $0x858] sm:$0xff] }
 0x191   : > { %1882 = vmatpush2.msra.mxu0 %v1333_v47  ;;  %1987 = vmatprep.subr.mxu1 %v1210_v17  ;;  %v1488_v47 = vld [vmem:[%s3426_s6 + $0xc48] sm:$0xff]  ;;  %v1354_v17 = vld [vmem:[%s3426_s6 + $0x818] sm:$0xff] }
 0x192   : > { %1883 = vmatprep.subr.mxu0 %v1325_v48  ;;  %1988 = vmatpush1.msra.mxu1 %v1209_v49  ;;  %v1480_v48 = vld [vmem:[%s3426_s6 + $0xc08] sm:$0xff]  ;;  %v1353_v49 = vld [vmem:[%s3426_s6 + $0x810] sm:$0xff] }
 0x193   : > { %1884 = vmatpush2.msra.mxu0 %v1324_v50  ;;  %1989 = vmatprep.subr.mxu1 %v1201_v51  ;;  %v1479_v50 = vld [vmem:[%s3426_s6 + $0xc00] sm:$0xff]  ;;  %v1345_v51 = vld [vmem:[%s3426_s6 + $0x7d0] sm:$0xff] }
 0x194   : > { %1885 = vmatprep.subr.mxu0 %v1316_v52  ;;  %1990 = vmatpush1.msra.mxu1 %v1200_v53  ;;  %v1471_v52 = vld [vmem:[%s3426_s6 + $0xbc0] sm:$0xff]  ;;  %v1344_v53 = vld [vmem:[%s3426_s6 + $0x7c8] sm:$0xff] }
 0x195   : > { %1886 = vmatpush2.msra.mxu0 %v1315_v54  ;;  %1991 = vmatprep.subr.mxu1 %v1192_v55  ;;  %v1470_v54 = vld [vmem:[%s3426_s6 + $0xbb8] sm:$0xff]  ;;  %v1336_v55 = vld [vmem:[%s3426_s6 + $0x788] sm:$0xff] }
 0x196   : > { %1887 = vmatprep.subr.mxu0 %v1307_v56  ;;  %1992 = vmatpush1.msra.mxu1 %v1191_v57  ;;  %v1462_v56 = vld [vmem:[%s3426_s6 + $0xb78] sm:$0xff]  ;;  %v1335_v57 = vld [vmem:[%s3426_s6 + $0x780] sm:$0xff] }
 0x197   : > { %1888 = vmatpush2.msra.mxu0 %v1306_v58  ;;  %1993 = vmatprep.subr.mxu1 %v1183_v59  ;;  %v1461_v58 = vld [vmem:[%s3426_s6 + $0xb70] sm:$0xff]  ;;  %v1327_v59 = vld [vmem:[%s3426_s6 + $0x740] sm:$0xff] }
 0x198   : > { %1889 = vmatprep.subr.mxu0 %v1298_v60  ;;  %1994 = vmatpush1.msra.mxu1 %v1182_v61  ;;  %v1453_v60 = vld [vmem:[%s3426_s6 + $0xb30] sm:$0xff]  ;;  %v1326_v61 = vld [vmem:[%s3426_s6 + $0x738] sm:$0xff] }
 0x199   : > { %1890 = vmatpush2.msra.mxu0 %v1297_v62  ;;  %1995 = vmatprep.subr.mxu1 %v1174_v63  ;;  %v1452_v62 = vld [vmem:[%s3426_s6 + $0xb28] sm:$0xff]  ;;  %v1318_v63 = vld [vmem:[%s3426_s6 + $0x6f8] sm:$0xff] }
 0x19a   : > { %1891 = vmatprep.subr.mxu0 %v1289_v0  ;;  %1996 = vmatpush1.msra.mxu1 %v1173_v1  ;;  %v1444_v0 = vld [vmem:[%s3426_s6 + $0xae8] sm:$0xff]  ;;  %v1317_v1 = vld [vmem:[%s3426_s6 + $0x6f0] sm:$0xff] }
 0x19b   : > { %1892 = vmatpush2.msra.mxu0 %v1288_v4  ;;  %1997 = vmatprep.subr.mxu1 %v1165_v5  ;;  %v1443_v4 = vld [vmem:[%s3426_s6 + $0xae0] sm:$0xff]  ;;  %v1309_v5 = vld [vmem:[%s3426_s6 + $0x6b0] sm:$0xff] }
 0x19c   : > { %1893 = vmatprep.subr.mxu0 %v1280_v6  ;;  %1998 = vmatpush1.msra.mxu1 %v1164_v7  ;;  %v1435_v6 = vld [vmem:[%s3426_s6 + $0xaa0] sm:$0xff]  ;;  %v1308_v7 = vld [vmem:[%s3426_s6 + $0x6a8] sm:$0xff] }
 0x19d   : > { %1894 = vmatpush2.msra.mxu0 %v1279_v8  ;;  %1999 = vmatprep.subr.mxu1 %v1156_v10  ;;  %v1434_v8 = vld [vmem:[%s3426_s6 + $0xa98] sm:$0xff]  ;;  %v1300_v10 = vld [vmem:[%s3426_s6 + $0x668] sm:$0xff] }
 0x19e   : > { %1895 = vmatprep.subr.mxu0 %v1271_v11  ;;  %2000 = vmatpush1.msra.mxu1 %v1155_v12  ;;  %v1426_v11 = vld [vmem:[%s3426_s6 + $0xa58] sm:$0xff]  ;;  %v1299_v12 = vld [vmem:[%s3426_s6 + $0x660] sm:$0xff] }
 0x19f   : > { %1896 = vmatpush2.msra.mxu0 %v1270_v13  ;;  %2001 = vmatprep.subr.mxu1 %v1147_v14  ;;  %v1425_v13 = vld [vmem:[%s3426_s6 + $0xa50] sm:$0xff]  ;;  %v1291_v14 = vld [vmem:[%s3426_s6 + $0x620] sm:$0xff] }
 0x1a0   : > { %1897 = vmatprep.subr.mxu0 %v1262_v15  ;;  %2002 = vmatpush1.msra.mxu1 %v1146_v16  ;;  %v1417_v15 = vld [vmem:[%s3426_s6 + $0xa10] sm:$0xff]  ;;  %v1290_v16 = vld [vmem:[%s3426_s6 + $0x618] sm:$0xff] }
 0x1a1   : > { %1898 = vmatpush2.msra.mxu0 %v1261_v18  ;;  %2003 = vmatprep.subr.mxu1 %v1138_v19  ;;  %v1416_v18 = vld [vmem:[%s3426_s6 + $0xa08] sm:$0xff]  ;;  %v1282_v19 = vld [vmem:[%s3426_s6 + $0x5d8] sm:$0xff] }
 0x1a2   : > { %1899 = vmatprep.subr.mxu0 %v1253_v20  ;;  %2004 = vmatpush1.msra.mxu1 %v1137_v21  ;;  %v1408_v20 = vld [vmem:[%s3426_s6 + $0x9c8] sm:$0xff]  ;;  %v1281_v21 = vld [vmem:[%s3426_s6 + $0x5d0] sm:$0xff] }
 0x1a3   : > { %1900 = vmatpush2.msra.mxu0 %v1252_v22  ;;  %2005 = vmatprep.subr.mxu1 %v1129_v23  ;;  %v1407_v22 = vld [vmem:[%s3426_s6 + $0x9c0] sm:$0xff]  ;;  %v1273_v23 = vld [vmem:[%s3426_s6 + $0x590] sm:$0xff] }
 0x1a4   : > { %1901 = vmatprep.subr.mxu0 %v1244_v24  ;;  %2006 = vmatpush1.msra.mxu1 %v1128_v25  ;;  %v1399_v24 = vld [vmem:[%s3426_s6 + $0x980] sm:$0xff]  ;;  %v1272_v25 = vld [vmem:[%s3426_s6 + $0x588] sm:$0xff] }
 0x1a5   : > { %1902 = vmatpush2.msra.mxu0 %v1243_v26  ;;  %2007 = vmatprep.subr.mxu1 %v1120_v27  ;;  %v1398_v26 = vld [vmem:[%s3426_s6 + $0x978] sm:$0xff]  ;;  %v1264_v27 = vld [vmem:[%s3426_s6 + $0x548] sm:$0xff] }
 0x1a6   : > { %1903 = vmatprep.mubr.f32.mxu0 %v3789_v2  ;;  %2008 = vmatpush1.msra.mxu1 %v1119_v28  ;;  %v1390_v28 = vld [vmem:[%s3426_s6 + $0x938] sm:$0xff] }
 0x1a7   : > { %1904 = vmatmul.mubr.f32.vlgmr.msra.gmra.mxu0 %v3565_v9  ;;  %2009 = vmatprep.subr.mxu1 %v1111_v3  ;;  %v1506_v9 = vld [vmem:[%s3426_s6 + $0xcd8] sm:$0xff]  ;;  %v1263_v3 = vld [vmem:[%s3426_s6 + $0x540] sm:$0xff] }
 0x1a8   : > { %2052 = vmatprep.subr.mxu0 %v1525_v29  ;;  %2010 = vmatpush1.msra.mxu1 %v1110_v30  ;;  %v1389_v29 = vld [vmem:[%s3426_s6 + $0x930] sm:$0xff]  ;;  %v1255_v30 = vld [vmem:[%s3426_s6 + $0x500] sm:$0xff] }
 0x1a9   : > { %2053 = vmatpush1.msra.mxu0 %v1524_v31  ;;  %2011 = vmatprep.subr.mxu1 %v1102_v32  ;;  %v1543_v31 = vld [vmem:[%s3426_s6 + $0xe00] sm:$0xff]  ;;  %v1254_v32 = vld [vmem:[%s3426_s6 + $0x4f8] sm:$0xff] }
 0x1aa   : > { %2054 = vmatprep.subr.mxu0 %v1516_v33  ;;  %2012 = vmatpush1.msra.mxu1 %v1101_v34  ;;  %v1542_v33 = vld [vmem:[%s3426_s6 + $0xdf8] sm:$0xff] }
 0x1ab   : > { %2055 = vmatpush1.msra.mxu0 %v1515_v35  ;;  %2013 = vmatprep.subr.mxu1 %v1381_v36  ;;  %v1246_v34 = vld [vmem:[%s3426_s6 + $0x4b8] sm:$0xff]  ;;  %v1245_v36 = vld [vmem:[%s3426_s6 + $0x4b0] sm:$0xff] }
 0x1ac   : > { %2056 = vmatprep.subr.mxu0 %v1507_v38  ;;  %2014 = vmatpush2.msra.mxu1 %v1380_v39  ;;  %v1534_v35 = vld [vmem:[%s3426_s6 + $0xdb8] sm:$0xff]  ;;  %v1533_v38 = vld [vmem:[%s3426_s6 + $0xdb0] sm:$0xff] }
 0x1ad   : > { %2057 = vmatpush1.msra.mxu0 %v1506_v9  ;;  %2015 = vmatprep.subr.mxu1 %v1372_v40  ;;  %v1382_v39 = vld [vmem:[%s3426_s6 + $0x8f8] sm:$0xff] }
 0x1ae   : > { %2058 = vmatprep.subr.mxu0 %v1498_v41  ;;  %2016 = vmatpush2.msra.mxu1 %v1371_v42  ;;  %v1238_v9 = vld [vmem:[%s3426_s6 + $0x478] sm:$0xff]  ;;  %v3872_v41 = vld [vmem:[%s3977_s0] sm:$0xff]  ;;  %v3878_v42 = vld [vmem:[%s3977_s0 + $0x10] sm:$0xff] }
 0x1af   : > { %2059 = vmatpush1.msra.mxu0 %v1497_v43  ;;  %2017 = vmatprep.subr.mxu1 %v1363_v44  ;;  %v1526_v40 = vld [vmem:[%s3426_s6 + $0xd78] sm:$0xff]  ;;  %v1373_v43 = vld [vmem:[%s3426_s6 + $0x8b0] sm:$0xff]  ;;  %v2451_v44 = vmov 0.0  }
 0x1b0   : > { %2060 = vmatprep.subr.mxu0 %v1489_v45  ;;  %2018 = vmatpush2.msra.mxu1 %v1362_v46  ;;  %v1229_v45 = vld [vmem:[%s3426_s6 + $0x430] sm:$0xff] }
 0x1b1   : > { %2061 = vmatpush1.msra.mxu0 %v1488_v47  ;;  %2019 = vmatprep.subr.mxu1 %v1354_v17  ;;  %v1517_v46 = vld [vmem:[%s3426_s6 + $0xd30] sm:$0xff]  ;;  %v1364_v47 = vld [vmem:[%s3426_s6 + $0x868] sm:$0xff] }
 0x1b2   : > { %2062 = vmatprep.subr.mxu0 %v1480_v48  ;;  %2020 = vmatpush2.msra.mxu1 %v1353_v49  ;;  %v1220_v17 = vld [vmem:[%s3426_s6 + $0x3e8] sm:$0xff]  ;;  %v1355_v49 = vld [vmem:[%s3426_s6 + $0x820] sm:$0xff] }
 0x1b3   : > { %2063 = vmatpush1.msra.mxu0 %v1479_v50  ;;  %2021 = vmatprep.subr.mxu1 %v1345_v51  ;;  %v1508_v48 = vld [vmem:[%s3426_s6 + $0xce8] sm:$0xff]  ;;  %v1211_v50 = vld [vmem:[%s3426_s6 + $0x3a0] sm:$0xff] }
 0x1b4   : > { %2064 = vmatprep.subr.mxu0 %v1471_v52  ;;  %2022 = vmatpush2.msra.mxu1 %v1344_v53  ;;  %v1499_v51 = vld [vmem:[%s3426_s6 + $0xca0] sm:$0xff]  ;;  %v1346_v52 = vld [vmem:[%s3426_s6 + $0x7d8] sm:$0xff] }
 0x1b5   : > { %2065 = vmatpush1.msra.mxu0 %v1470_v54  ;;  %2023 = vmatprep.subr.mxu1 %v1336_v55  ;;  %v1202_v53 = vld [vmem:[%s3426_s6 + $0x358] sm:$0xff]  ;;  %v1337_v55 = vld [vmem:[%s3426_s6 + $0x790] sm:$0xff] }
 0x1b6   : > { %2066 = vmatprep.subr.mxu0 %v1462_v56  ;;  %2024 = vmatpush2.msra.mxu1 %v1335_v57  ;;  %v1490_v54 = vld [vmem:[%s3426_s6 + $0xc58] sm:$0xff]  ;;  %v1193_v56 = vld [vmem:[%s3426_s6 + $0x310] sm:$0xff] }
 0x1b7   : > { %2067 = vmatpush1.msra.mxu0 %v1461_v58  ;;  %2025 = vmatprep.subr.mxu1 %v1327_v59  ;;  %v1481_v57 = vld [vmem:[%s3426_s6 + $0xc10] sm:$0xff]  ;;  %v1328_v58 = vld [vmem:[%s3426_s6 + $0x748] sm:$0xff] }
 0x1b8   : > { %2068 = vmatprep.subr.mxu0 %v1453_v60  ;;  %2026 = vmatpush2.msra.mxu1 %v1326_v61  ;;  %v1184_v59 = vld [vmem:[%s3426_s6 + $0x2c8] sm:$0xff]  ;;  %v1319_v61 = vld [vmem:[%s3426_s6 + $0x700] sm:$0xff] }
 0x1b9   : > { %2069 = vmatpush1.msra.mxu0 %v1452_v62  ;;  %2027 = vmatprep.subr.mxu1 %v1318_v63  ;;  %v1472_v60 = vld [vmem:[%s3426_s6 + $0xbc8] sm:$0xff]  ;;  %v1175_v62 = vld [vmem:[%s3426_s6 + $0x280] sm:$0xff] }
 0x1ba   : > { %2070 = vmatprep.subr.mxu0 %v1444_v0  ;;  %2028 = vmatpush2.msra.mxu1 %v1317_v1  ;;  %v1463_v63 = vld [vmem:[%s3426_s6 + $0xb80] sm:$0xff]  ;;  %v1310_v0 = vld [vmem:[%s3426_s6 + $0x6b8] sm:$0xff] }
 0x1bb   : > { %2071 = vmatpush1.msra.mxu0 %v1443_v4  ;;  %2029 = vmatprep.subr.mxu1 %v1309_v5  ;;  %v1166_v1 = vld [vmem:[%s3426_s6 + $0x238] sm:$0xff]  ;;  %v1301_v5 = vld [vmem:[%s3426_s6 + $0x670] sm:$0xff] }
 0x1bc   : > { %2072 = vmatprep.subr.mxu0 %v1435_v6  ;;  %2030 = vmatpush2.msra.mxu1 %v1308_v7  ;;  %v1454_v4 = vld [vmem:[%s3426_s6 + $0xb38] sm:$0xff]  ;;  %v1157_v6 = vld [vmem:[%s3426_s6 + $0x1f0] sm:$0xff] }
 0x1bd   : > { %2073 = vmatpush1.msra.mxu0 %v1434_v8  ;;  %2031 = vmatprep.subr.mxu1 %v1300_v10  ;;  %v1445_v7 = vld [vmem:[%s3426_s6 + $0xaf0] sm:$0xff]  ;;  %v1292_v8 = vld [vmem:[%s3426_s6 + $0x628] sm:$0xff] }
 0x1be   : > { %2074 = vmatprep.subr.mxu0 %v1426_v11  ;;  %2032 = vmatpush2.msra.mxu1 %v1299_v12  ;;  %v1148_v10 = vld [vmem:[%s3426_s6 + $0x1a8] sm:$0xff]  ;;  %v1283_v12 = vld [vmem:[%s3426_s6 + $0x5e0] sm:$0xff] }
 0x1bf   : > { %2075 = vmatpush1.msra.mxu0 %v1425_v13  ;;  %2033 = vmatprep.subr.mxu1 %v1291_v14  ;;  %v1436_v11 = vld [vmem:[%s3426_s6 + $0xaa8] sm:$0xff]  ;;  %v1139_v13 = vld [vmem:[%s3426_s6 + $0x160] sm:$0xff] }
 0x1c0   : > { %2076 = vmatprep.subr.mxu0 %v1417_v15  ;;  %2034 = vmatpush2.msra.mxu1 %v1290_v16  ;;  %v1427_v14 = vld [vmem:[%s3426_s6 + $0xa60] sm:$0xff]  ;;  %v1274_v15 = vld [vmem:[%s3426_s6 + $0x598] sm:$0xff] }
 0x1c1   : > { %2077 = vmatpush1.msra.mxu0 %v1416_v18  ;;  %2035 = vmatprep.subr.mxu1 %v1282_v19  ;;  %v1130_v16 = vld [vmem:[%s3426_s6 + $0x118] sm:$0xff]  ;;  %v1265_v19 = vld [vmem:[%s3426_s6 + $0x550] sm:$0xff] }
 0x1c2   : > { %2078 = vmatprep.subr.mxu0 %v1408_v20  ;;  %2036 = vmatpush2.msra.mxu1 %v1281_v21  ;;  %v1418_v18 = vld [vmem:[%s3426_s6 + $0xa18] sm:$0xff]  ;;  %v1121_v20 = vld [vmem:[%s3426_s6 + $0xd0] sm:$0xff] }
 0x1c3   : > { %2079 = vmatpush1.msra.mxu0 %v1407_v22  ;;  %2037 = vmatprep.subr.mxu1 %v1273_v23  ;;  %v1409_v21 = vld [vmem:[%s3426_s6 + $0x9d0] sm:$0xff]  ;;  %v1256_v22 = vld [vmem:[%s3426_s6 + $0x508] sm:$0xff] }
 0x1c4   : > { %2080 = vmatprep.subr.mxu0 %v1399_v24  ;;  %2038 = vmatpush2.msra.mxu1 %v1272_v25  ;;  %v1112_v23 = vld [vmem:[%s3426_s6 + $0x88] sm:$0xff]  ;;  %v1247_v25 = vld [vmem:[%s3426_s6 + $0x4c0] sm:$0xff] }
 0x1c5   : > { %2081 = vmatpush1.msra.mxu0 %v1398_v26  ;;  %2039 = vmatprep.subr.mxu1 %v1264_v27  ;;  %v1400_v24 = vld [vmem:[%s3426_s6 + $0x988] sm:$0xff]  ;;  %v1103_v26 = vld [vmem:[%s3426_s6 + $0x40] sm:$0xff] }
 0x1c6   : > { %2082 = vmatprep.subr.mxu0 %v1390_v28  ;;  %2040 = vmatpush2.msra.mxu1 %v1263_v3  ;;  %v1391_v27 = vld [vmem:[%s3426_s6 + $0x940] sm:$0xff]  ;;  %v1544_v28 = vld [vmem:[%s3426_s6 + $0xe08] sm:$0xff] }
 0x1c7   : > { %2083 = vmatpush1.msra.mxu0 %v1389_v29  ;;  %2041 = vmatprep.subr.mxu1 %v1255_v30  ;;  %v1535_v3 = vld [vmem:[%s3426_s6 + $0xdc0] sm:$0xff] }
 0x1c8   : > { %2112 = vmatprep.subr.mxu0 %v1543_v31  ;;  %2042 = vmatpush2.msra.mxu1 %v1254_v32 }
 0x1c9   : > { %2113 = vmatpush2.msra.mxu0 %v1542_v33  ;;  %2043 = vmatprep.subr.mxu1 %v1246_v34 }
 0x1ca   : > { %2114 = vmatprep.subr.mxu0 %v1534_v35  ;;  %2044 = vmatpush2.msra.mxu1 %v1245_v36 }
 0x1cb   : > { %2045 = vmatprep.mubr.f32.mxu1 %v3789_v2  ;;  %2115 = vmatpush2.msra.mxu0 %v1533_v38 }
 0x1cc   : > { %2353 = vmatprep.mubr.msk.f32.mxu0 %vm1551_vm0, %v3727_v37  ;;  %2046 = vmatmul.mubr.f32.vlgmr.msra.gmra.mxu1 %v3872_v41 }
 0x1cd   : > { %2117 = vmatmul.mubr.f32.vlgmr.msra.gmra.mxu0 %v3878_v42  ;;  %2358 = vmatprep.subr.mxu0 %v1382_v39 }
 0x1ce   : > { %2193 = vmatprep.subr.mxu1 %v2451_v44  ;;  %2359 = vmatpush3.msra.mxu0 %v1238_v9 }
 0x1cf   : > { %2194 = vmatpush1.msra.mxu1 %v1526_v40  ;;  %2360 = vmatprep.subr.mxu0 %v1373_v43 }
 0x1d0   : > { %2195 = vmatprep.subr.mxu1 %v2451_v44  ;;  %2361 = vmatpush3.msra.mxu0 %v1229_v45 }
 0x1d1   : > { %2196 = vmatpush1.msra.mxu1 %v1517_v46  ;;  %2362 = vmatprep.subr.mxu0 %v1364_v47 }
 0x1d2   : > { %2197 = vmatprep.subr.mxu1 %v2451_v44  ;;  %2363 = vmatpush3.msra.mxu0 %v1220_v17 }
 0x1d3   : > { %2198 = vmatpush1.msra.mxu1 %v1508_v48  ;;  %2364 = vmatprep.subr.mxu0 %v1355_v49 }
 0x1d4   : > { %2199 = vmatprep.subr.mxu1 %v2451_v44  ;;  %2365 = vmatpush3.msra.mxu0 %v1211_v50 }
 0x1d5   : > { %2200 = vmatpush1.msra.mxu1 %v1499_v51  ;;  %2366 = vmatprep.subr.mxu0 %v1346_v52 }
 0x1d6   : > { %2201 = vmatprep.subr.mxu1 %v2451_v44  ;;  %2367 = vmatpush3.msra.mxu0 %v1202_v53 }
 0x1d7   : > { %2202 = vmatpush1.msra.mxu1 %v1490_v54  ;;  %2368 = vmatprep.subr.mxu0 %v1337_v55 }
 0x1d8   : > { %2203 = vmatprep.subr.mxu1 %v2451_v44  ;;  %2369 = vmatpush3.msra.mxu0 %v1193_v56 }
 0x1d9   : > { %2204 = vmatpush1.msra.mxu1 %v1481_v57  ;;  %2370 = vmatprep.subr.mxu0 %v1328_v58 }
 0x1da   : > { %2205 = vmatprep.subr.mxu1 %v2451_v44  ;;  %2371 = vmatpush3.msra.mxu0 %v1184_v59 }
 0x1db   : > { %2206 = vmatpush1.msra.mxu1 %v1472_v60  ;;  %2372 = vmatprep.subr.mxu0 %v1319_v61 }
 0x1dc   : > { %2207 = vmatprep.subr.mxu1 %v2451_v44  ;;  %2373 = vmatpush3.msra.mxu0 %v1175_v62 }
 0x1dd   : > { %2208 = vmatpush1.msra.mxu1 %v1463_v63  ;;  %2374 = vmatprep.subr.mxu0 %v1310_v0 }
 0x1de   : > { %2209 = vmatprep.subr.mxu1 %v2451_v44  ;;  %2375 = vmatpush3.msra.mxu0 %v1166_v1 }
 0x1df   : > { %2210 = vmatpush1.msra.mxu1 %v1454_v4  ;;  %2376 = vmatprep.subr.mxu0 %v1301_v5 }
 0x1e0   : > { %2211 = vmatprep.subr.mxu1 %v2451_v44  ;;  %2377 = vmatpush3.msra.mxu0 %v1157_v6 }
 0x1e1   : > { %2212 = vmatpush1.msra.mxu1 %v1445_v7  ;;  %2378 = vmatprep.subr.mxu0 %v1292_v8 }
 0x1e2   : > { %2213 = vmatprep.subr.mxu1 %v2451_v44  ;;  %2379 = vmatpush3.msra.mxu0 %v1148_v10 }
 0x1e3   : > { %2214 = vmatpush1.msra.mxu1 %v1436_v11  ;;  %2380 = vmatprep.subr.mxu0 %v1283_v12  ;;  %v1692_v29 = vpop.f32.mrf.mxu1 }
 0x1e4   : > { %2215 = vmatprep.subr.mxu1 %v2451_v44  ;;  %2381 = vmatpush3.msra.mxu0 %v1139_v13 }
 0x1e5   : > { %2216 = vmatpush1.msra.mxu1 %v1427_v14  ;;  %2382 = vmatprep.subr.mxu0 %v1274_v15  ;;  %v1694_v34 = vpop.f32.mrf.mxu1 }
 0x1e6   : > { %2217 = vmatprep.subr.mxu1 %v2451_v44  ;;  %2383 = vmatpush3.msra.mxu0 %v1130_v16 }
 0x1e7   : > { %2218 = vmatpush1.msra.mxu1 %v1418_v18  ;;  %2384 = vmatprep.subr.mxu0 %v1265_v19 }
 0x1e8   : > { %2219 = vmatprep.subr.mxu1 %v2451_v44  ;;  %2385 = vmatpush3.msra.mxu0 %v1121_v20 }
 0x1e9   : > { %2220 = vmatpush1.msra.mxu1 %v1409_v21  ;;  %2386 = vmatprep.subr.mxu0 %v1256_v22 }
 0x1ea   : > { %2221 = vmatprep.subr.mxu1 %v2451_v44  ;;  %2387 = vmatpush3.msra.mxu0 %v1112_v23 }
 0x1eb   : > { %2222 = vmatpush1.msra.mxu1 %v1400_v24  ;;  %2388 = vmatprep.subr.mxu0 %v1247_v25 }
 0x1ec   : > { %2223 = vmatprep.subr.mxu1 %v2451_v44  ;;  %2389 = vmatpush3.msra.mxu0 %v1103_v26 }
 0x1ed   : > { %2187 = vmatprep.mubr.f32.mxu0 %v3789_v2  ;;  %2224 = vmatpush1.msra.mxu1 %v1391_v27 }
 0x1ee   : > { %2188 = vmatmul.mubr.f32.vlgmr.msra.gmra.mxu0 %v3872_v41  ;;  %2253 = vmatprep.subr.mxu1 %v2451_v44 }
 0x1ef   : > { %2354 = vmatprep.mubr.msk.f32.mxu1 %vm1551_vm0, %v3727_v37  ;;  %2254 = vmatpush2.msra.mxu1 %v1544_v28 }
 0x1f0   : > { %2255 = vmatprep.subr.mxu1 %v2451_v44 }
 0x1f1   : > { %2256 = vmatpush2.msra.mxu1 %v1535_v3 }
 0x1f2   : > { %2258 = vmatmul.mubr.f32.vlgmr.msra.gmra.mxu1 %v3878_v42 }
 0x1fd   : > { %v1621_v2 = vpop.f32.mrf.mxu0 }
 0x1ff   : > { %v1623_v30 = vpop.f32.mrf.mxu0 }
 0x201   : > { %v1549_v31 = vpop.permute.xlu0 %1548 }
 0x202   : > { %v1622_v32 = vadd.f32 %v1621_v2, %v1549_v31  ;;  %v1624_v33 = vadd.f32 %v1623_v30, %v1549_v31 }
 0x204   : > { %v1693_v35 = vadd.f32 %v1692_v29, %v1622_v32  ;;  %v1695_v37 = vadd.f32 %v1694_v34, %v1624_v33 }
 0x206   : > { %v2263_v36 = vmax.f32 %v1693_v35, 0.0  ;;  %v2264_v38 = vmax.f32 %v1695_v37, 0.0 }
 0x208   : > { %2272 = vst [vmem:[%s3956_s30] sm:$0xff] %v2263_v36  ;;  %2273 = vst [vmem:[%s3956_s30 + $0x8] sm:$0xff] %v2264_v38 }
 0x223   : > { %v1763_v39 = vpop.f32.mrf.mxu1 }
 0x224   : > { %v1834_v9 = vpop.f32.mrf.mxu0  ;;  %v1764_v40 = vadd.f32 %v1763_v39, %v1549_v31 }
 0x225   : > { %v1765_v41 = vpop.f32.mrf.mxu1 }
 0x226   : > { %v1835_v42 = vadd.f32 %v1834_v9, %v1764_v40  ;;  %v1766_v43 = vadd.f32 %v1765_v41, %v1549_v31  ;;  %v1836_v44 = vpop.f32.mrf.mxu0 }
 0x228   : > { %v2265_v45 = vmax.f32 %v1835_v42, 0.0  ;;  %v1837_v46 = vadd.f32 %v1836_v44, %v1766_v43 }
 0x22a   : > { %2274 = vst [vmem:[%s3956_s30 + $0x10] sm:$0xff] %v2265_v45  ;;  %v2266_v47 = vmax.f32 %v1837_v46, 0.0 }
 0x22c   : > { %2275 = vst [vmem:[%s3956_s30 + $0x18] sm:$0xff] %v2266_v47 }
 0x24b   : > { %v1976_v17 = vpop.f32.mrf.mxu1 }
 0x24d   : > { %v1978_v53 = vpop.f32.mrf.mxu1 }
 0x267   : > { %v1905_v48 = vpop.f32.mrf.mxu0 }
 0x268   : > { %v1906_v49 = vadd.f32 %v1905_v48, %v1549_v31 }
 0x269   : > { %v1907_v50 = vpop.f32.mrf.mxu0 }
 0x26a   : > { %v1977_v51 = vadd.f32 %v1976_v17, %v1906_v49  ;;  %v1908_v52 = vadd.f32 %v1907_v50, %v1549_v31 }
 0x26c   : > { %v2267_v54 = vmax.f32 %v1977_v51, 0.0  ;;  %v1979_v55 = vadd.f32 %v1978_v53, %v1908_v52 }
 0x26e   : > { %2276 = vst [vmem:[%s3956_s30 + $0x20] sm:$0xff] %v2267_v54  ;;  %v2268_v56 = vmax.f32 %v1979_v55, 0.0 }
 0x270   : > { %2277 = vst [vmem:[%s3956_s30 + $0x28] sm:$0xff] %v2268_v56 }
 0x28c   : > { %v2047_v57 = vpop.f32.mrf.mxu1 }
 0x28d   : > { %v2118_v58 = vpop.f32.mrf.mxu0  ;;  %v2048_v59 = vadd.f32 %v2047_v57, %v1549_v31 }
 0x28e   : > { %v2049_v60 = vpop.f32.mrf.mxu1 }
 0x28f   : > { %v2119_v61 = vadd.f32 %v2118_v58, %v2048_v59  ;;  %v2050_v62 = vadd.f32 %v2049_v60, %v1549_v31  ;;  %v2120_v63 = vpop.f32.mrf.mxu0 }
 0x291   : > { %v2269_v0 = vmax.f32 %v2119_v61, 0.0  ;;  %v2121_v1 = vadd.f32 %v2120_v63, %v2050_v62 }
 0x293   : > { %2278 = vst [vmem:[%s3956_s30 + $0x30] sm:$0xff] %v2269_v0  ;;  %v2270_v4 = vmax.f32 %v2121_v1, 0.0 }
 0x295   : > { %2279 = vst [vmem:[%s3956_s30 + $0x38] sm:$0xff] %v2270_v4 }
 0x2ae   : > { %v2390_v5 = vpop.f32.mrf.mxu0 }
 0x2b0   : > { %v2391_v6 = vpop.f32.mrf.mxu0 }
 0x2b1   : > { %v2392_v7 = vadd.f32 %v2391_v6, %v2390_v5 }
 0x2b2   : > { %v2259_v10 = vpop.f32.mrf.mxu1 }
 0x2b3   : > { %v2190_v8 = vadd.f32 %v2392_v7, %v1549_v31 }
 0x2b4   : > { %v2261_v12 = vpop.f32.mrf.mxu1 }
 0x2b5   : > { %v2260_v11 = vadd.f32 %v2259_v10, %v2190_v8 }
 0x2b7   : > { %v2271_v13 = vmax.f32 %v2260_v11, 0.0 }
 0x2b9   : > { %2280 = vst [vmem:[%s3956_s30 + $0x40] sm:$0xff] %v2271_v13 }
 0x2ba PF: > { %p10_p9 = scmp.ge.s32.totalorder %s2489_s16, 4   ;;  %s3981_s12 = smov %s2444_s13 }
 0x2bb   : > { %s3982_s13 = smov %s2498_s19  ;;  %s3983_s14 = smov %s2489_s16 }
 0x2bc   :  { %12 = sbr.rel (!%p10_p9) target bundleno = 2 (0x2), region = 90 }

// kernel: celeba_autoencoder.13
= control target key start
LH: loop header
LB: loop body
LE: loop exit
PB: predicated region body
PF: predicated region fallthrough
CT: control target
= control target key end

     0   :  { %s1584_s0 = inlined_call_operand.vmem [shape: f32[1,32], index: 0, kind: input, shape index: {}]   ;;  %s1585_s1 = inlined_call_operand.vmem [shape: f32[32,8192], index: 1, kind: input, shape index: {}]   ;;  %s1586_s2 = inlined_call_operand.<no memory space> [shape: f32[1,1], index: 2, kind: input, shape index: {}]   ;;  %s1587_s3 = inlined_call_operand.vmem [shape: f32[1,8192], index: 3, kind: output, shape index: {}]  }
   0x1   :  { %v8_v0 = vstv %s1586_s2 }
   0x2   :  { %9 = vst [vmem:[#allocation2] sm:$0x1] %v8_v0 }
   0x3   :  { %s1287_s14 = smov 0   ;;  %s1289_s15 = smov 0  }
   0x4   :  { %s1291_s16 = smov 0  }
   0x5 LB: > { %s1156_s2 = sadd.s32 4294967295, %s1259_s16   ;;  %s1304_s17 = sadd.s32 1, %s1259_s16   ;;  %s1259_s16 = sphi %s1291_s16, %s1590_s16   ;;  %s1255_s15 = sphi %s1289_s15, %s1589_s15   ;;  %s1251_s14 = sphi %s1287_s14, %s1588_s14  }
   0x6   : > { %s40_s18 = ssub.s32 %s1259_s16, %s1304_s17  ;;  %s43_s19 = sadd.s32 1, %s1255_s15 }
   0x7   : > { %p41_p0 = scmp.eq.s32.totalorder %s40_s18, 0  ;;  %p50_p1 = scmp.ne.s32.totalorder %s1255_s15, %s1251_s14 }
   0x8   : > { %p51_p2 = scmp.eq.s32.totalorder %s1259_s16, 0  ;;  %p1159_p4 = scmp.ge.s32.totalorder %s1259_s16, 4 }
   0x9   : > { %s1313_s20 = scalar_select %p41_p0, %s1255_s15, %s43_s19  }
   0xa   : > { %p52_p3 = por %p51_p2, %p50_p1  ;;  %129 = sbr.rel (%p1159_p4) target bundleno = 51 (0x33), region = 24 }
   0xf   : > { %132 = sbr.rel (!%p52_p3) target bundleno = 51 (0x33), region = 28  ;;  %s134_s21 = sand.u32 (%p52_p3), 1, %s1255_s15  }
  0x10   : > { %s1176_s22 = sshll.u32 (%p52_p3), %s1259_s16, 7  ;;  %s1160_s23 = sshll.u32 (%p52_p3), %s134_s21, 9 }
  0x11   : > { %s1321_s26 = scalar_lea.vmem (%p52_p3), %s1585_s1, %s1176_s22  ;;  %s1326_s27 = scalar_lea.vmem (%p52_p3), [#allocation3], %s1160_s23 }
  0x12   : > { %v152_v1 = vld [vmem:[%s1321_s26] sm:$0xff] (%p52_p3)  ;;  %v154_v2 = vld [vmem:[%s1321_s26 + $0x8] sm:$0xff] (%p52_p3)  ;;  %v156_v3 = vld [vmem:[%s1321_s26 + $0x10] sm:$0xff] (%p52_p3) }
  0x13   : > { %153 = vst [vmem:[%s1326_s27] sm:$0xff] (%p52_p3), %v152_v1  ;;  %155 = vst [vmem:[%s1326_s27 + $0x8] sm:$0xff] (%p52_p3), %v154_v2  ;;  %v158_v4 = vld [vmem:[%s1321_s26 + $0x18] sm:$0xff] (%p52_p3)  ;;  %v160_v5 = vld [vmem:[%s1321_s26 + $0x20] sm:$0xff] (%p52_p3) }
  0x14   : > { %157 = vst [vmem:[%s1326_s27 + $0x10] sm:$0xff] %v156_v3  ;;  %v162_v6 = vld [vmem:[%s1321_s26 + $0x28] sm:$0xff]  ;;  %159 = vst [vmem:[%s1326_s27 + $0x18] sm:$0xff] %v158_v4  ;;  %v164_v7 = vld [vmem:[%s1321_s26 + $0x30] sm:$0xff] }
  0x15   : > { %161 = vst [vmem:[%s1326_s27 + $0x20] sm:$0xff] %v160_v5  ;;  %163 = vst [vmem:[%s1326_s27 + $0x28] sm:$0xff] %v162_v6  ;;  %v166_v8 = vld [vmem:[%s1321_s26 + $0x38] sm:$0xff]  ;;  %v168_v9 = vld [vmem:[%s1321_s26 + $0x40] sm:$0xff] }
  0x16   : > { %165 = vst [vmem:[%s1326_s27 + $0x30] sm:$0xff] %v164_v7  ;;  %167 = vst [vmem:[%s1326_s27 + $0x38] sm:$0xff] %v166_v8  ;;  %v170_v10 = vld [vmem:[%s1321_s26 + $0x48] sm:$0xff]  ;;  %v172_v11 = vld [vmem:[%s1321_s26 + $0x50] sm:$0xff] }
  0x17   : > { %169 = vst [vmem:[%s1326_s27 + $0x40] sm:$0xff] %v168_v9  ;;  %v174_v12 = vld [vmem:[%s1321_s26 + $0x58] sm:$0xff]  ;;  %171 = vst [vmem:[%s1326_s27 + $0x48] sm:$0xff] %v170_v10  ;;  %v176_v13 = vld [vmem:[%s1321_s26 + $0x60] sm:$0xff] }
  0x18   : > { %173 = vst [vmem:[%s1326_s27 + $0x50] sm:$0xff] %v172_v11  ;;  %175 = vst [vmem:[%s1326_s27 + $0x58] sm:$0xff] %v174_v12  ;;  %v178_v14 = vld [vmem:[%s1321_s26 + $0x68] sm:$0xff]  ;;  %v180_v15 = vld [vmem:[%s1321_s26 + $0x70] sm:$0xff] }
  0x19   : > { %177 = vst [vmem:[%s1326_s27 + $0x60] sm:$0xff] %v176_v13  ;;  %179 = vst [vmem:[%s1326_s27 + $0x68] sm:$0xff] %v178_v14  ;;  %v182_v16 = vld [vmem:[%s1321_s26 + $0x78] sm:$0xff]  ;;  %v184_v17 = vld [vmem:[%s1321_s26 + $0x200] sm:$0xff] }
  0x1a   : > { %181 = vst [vmem:[%s1326_s27 + $0x70] sm:$0xff] %v180_v15  ;;  %v186_v18 = vld [vmem:[%s1321_s26 + $0x208] sm:$0xff]  ;;  %183 = vst [vmem:[%s1326_s27 + $0x78] sm:$0xff] %v182_v16  ;;  %v188_v19 = vld [vmem:[%s1321_s26 + $0x210] sm:$0xff] }
  0x1b   : > { %185 = vst [vmem:[%s1326_s27 + $0x80] sm:$0xff] %v184_v17  ;;  %187 = vst [vmem:[%s1326_s27 + $0x88] sm:$0xff] %v186_v18  ;;  %v190_v20 = vld [vmem:[%s1321_s26 + $0x218] sm:$0xff]  ;;  %v192_v21 = vld [vmem:[%s1321_s26 + $0x220] sm:$0xff] }
  0x1c   : > { %189 = vst [vmem:[%s1326_s27 + $0x90] sm:$0xff] %v188_v19  ;;  %191 = vst [vmem:[%s1326_s27 + $0x98] sm:$0xff] %v190_v20  ;;  %v194_v22 = vld [vmem:[%s1321_s26 + $0x228] sm:$0xff]  ;;  %v196_v23 = vld [vmem:[%s1321_s26 + $0x230] sm:$0xff] }
  0x1d   : > { %193 = vst [vmem:[%s1326_s27 + $0xa0] sm:$0xff] %v192_v21  ;;  %v198_v24 = vld [vmem:[%s1321_s26 + $0x238] sm:$0xff]  ;;  %195 = vst [vmem:[%s1326_s27 + $0xa8] sm:$0xff] %v194_v22  ;;  %v200_v25 = vld [vmem:[%s1321_s26 + $0x240] sm:$0xff] }
  0x1e   : > { %197 = vst [vmem:[%s1326_s27 + $0xb0] sm:$0xff] %v196_v23  ;;  %199 = vst [vmem:[%s1326_s27 + $0xb8] sm:$0xff] %v198_v24  ;;  %v202_v26 = vld [vmem:[%s1321_s26 + $0x248] sm:$0xff]  ;;  %v204_v27 = vld [vmem:[%s1321_s26 + $0x250] sm:$0xff] }
  0x1f   : > { %201 = vst [vmem:[%s1326_s27 + $0xc0] sm:$0xff] %v200_v25  ;;  %203 = vst [vmem:[%s1326_s27 + $0xc8] sm:$0xff] %v202_v26  ;;  %v206_v28 = vld [vmem:[%s1321_s26 + $0x258] sm:$0xff]  ;;  %v208_v29 = vld [vmem:[%s1321_s26 + $0x260] sm:$0xff] }
  0x20   : > { %205 = vst [vmem:[%s1326_s27 + $0xd0] sm:$0xff] %v204_v27  ;;  %v210_v30 = vld [vmem:[%s1321_s26 + $0x268] sm:$0xff]  ;;  %207 = vst [vmem:[%s1326_s27 + $0xd8] sm:$0xff] %v206_v28  ;;  %v212_v31 = vld [vmem:[%s1321_s26 + $0x270] sm:$0xff] }
  0x21   : > { %209 = vst [vmem:[%s1326_s27 + $0xe0] sm:$0xff] %v208_v29  ;;  %211 = vst [vmem:[%s1326_s27 + $0xe8] sm:$0xff] %v210_v30  ;;  %v214_v32 = vld [vmem:[%s1321_s26 + $0x278] sm:$0xff]  ;;  %v216_v33 = vld [vmem:[%s1321_s26 + $0x400] sm:$0xff] }
  0x22   : > { %213 = vst [vmem:[%s1326_s27 + $0xf0] sm:$0xff] %v212_v31  ;;  %215 = vst [vmem:[%s1326_s27 + $0xf8] sm:$0xff] %v214_v32  ;;  %v218_v34 = vld [vmem:[%s1321_s26 + $0x408] sm:$0xff]  ;;  %v220_v35 = vld [vmem:[%s1321_s26 + $0x410] sm:$0xff] }
  0x23   : > { %217 = vst [vmem:[%s1326_s27 + $0x100] sm:$0xff] %v216_v33  ;;  %v222_v36 = vld [vmem:[%s1321_s26 + $0x418] sm:$0xff]  ;;  %219 = vst [vmem:[%s1326_s27 + $0x108] sm:$0xff] %v218_v34  ;;  %v224_v37 = vld [vmem:[%s1321_s26 + $0x420] sm:$0xff] }
  0x24   : > { %221 = vst [vmem:[%s1326_s27 + $0x110] sm:$0xff] %v220_v35  ;;  %223 = vst [vmem:[%s1326_s27 + $0x118] sm:$0xff] %v222_v36  ;;  %v226_v38 = vld [vmem:[%s1321_s26 + $0x428] sm:$0xff]  ;;  %v228_v39 = vld [vmem:[%s1321_s26 + $0x430] sm:$0xff] }
  0x25   : > { %225 = vst [vmem:[%s1326_s27 + $0x120] sm:$0xff] %v224_v37  ;;  %227 = vst [vmem:[%s1326_s27 + $0x128] sm:$0xff] %v226_v38  ;;  %v230_v40 = vld [vmem:[%s1321_s26 + $0x438] sm:$0xff]  ;;  %v232_v41 = vld [vmem:[%s1321_s26 + $0x440] sm:$0xff] }
  0x26   : > { %229 = vst [vmem:[%s1326_s27 + $0x130] sm:$0xff] %v228_v39  ;;  %v234_v42 = vld [vmem:[%s1321_s26 + $0x448] sm:$0xff]  ;;  %231 = vst [vmem:[%s1326_s27 + $0x138] sm:$0xff] %v230_v40  ;;  %v236_v43 = vld [vmem:[%s1321_s26 + $0x450] sm:$0xff] }
  0x27   : > { %233 = vst [vmem:[%s1326_s27 + $0x140] sm:$0xff] %v232_v41  ;;  %235 = vst [vmem:[%s1326_s27 + $0x148] sm:$0xff] %v234_v42  ;;  %v238_v44 = vld [vmem:[%s1321_s26 + $0x458] sm:$0xff]  ;;  %v240_v45 = vld [vmem:[%s1321_s26 + $0x460] sm:$0xff] }
  0x28   : > { %237 = vst [vmem:[%s1326_s27 + $0x150] sm:$0xff] %v236_v43  ;;  %239 = vst [vmem:[%s1326_s27 + $0x158] sm:$0xff] %v238_v44  ;;  %v242_v46 = vld [vmem:[%s1321_s26 + $0x468] sm:$0xff]  ;;  %v244_v47 = vld [vmem:[%s1321_s26 + $0x470] sm:$0xff] }
  0x29   : > { %241 = vst [vmem:[%s1326_s27 + $0x160] sm:$0xff] %v240_v45  ;;  %v246_v48 = vld [vmem:[%s1321_s26 + $0x478] sm:$0xff]  ;;  %243 = vst [vmem:[%s1326_s27 + $0x168] sm:$0xff] %v242_v46  ;;  %v248_v49 = vld [vmem:[%s1321_s26 + $0x600] sm:$0xff] }
  0x2a   : > { %245 = vst [vmem:[%s1326_s27 + $0x170] sm:$0xff] %v244_v47  ;;  %247 = vst [vmem:[%s1326_s27 + $0x178] sm:$0xff] %v246_v48  ;;  %v250_v50 = vld [vmem:[%s1321_s26 + $0x608] sm:$0xff]  ;;  %v252_v51 = vld [vmem:[%s1321_s26 + $0x610] sm:$0xff] }
  0x2b   : > { %249 = vst [vmem:[%s1326_s27 + $0x180] sm:$0xff] %v248_v49  ;;  %251 = vst [vmem:[%s1326_s27 + $0x188] sm:$0xff] %v250_v50  ;;  %v254_v52 = vld [vmem:[%s1321_s26 + $0x618] sm:$0xff]  ;;  %v256_v53 = vld [vmem:[%s1321_s26 + $0x620] sm:$0xff] }
  0x2c   : > { %253 = vst [vmem:[%s1326_s27 + $0x190] sm:$0xff] %v252_v51  ;;  %v258_v54 = vld [vmem:[%s1321_s26 + $0x628] sm:$0xff]  ;;  %255 = vst [vmem:[%s1326_s27 + $0x198] sm:$0xff] %v254_v52  ;;  %v260_v55 = vld [vmem:[%s1321_s26 + $0x630] sm:$0xff] }
  0x2d   : > { %257 = vst [vmem:[%s1326_s27 + $0x1a0] sm:$0xff] %v256_v53  ;;  %259 = vst [vmem:[%s1326_s27 + $0x1a8] sm:$0xff] %v258_v54  ;;  %v262_v56 = vld [vmem:[%s1321_s26 + $0x638] sm:$0xff]  ;;  %v264_v57 = vld [vmem:[%s1321_s26 + $0x640] sm:$0xff] }
  0x2e   : > { %261 = vst [vmem:[%s1326_s27 + $0x1b0] sm:$0xff] %v260_v55  ;;  %263 = vst [vmem:[%s1326_s27 + $0x1b8] sm:$0xff] %v262_v56  ;;  %v266_v58 = vld [vmem:[%s1321_s26 + $0x648] sm:$0xff]  ;;  %v268_v59 = vld [vmem:[%s1321_s26 + $0x650] sm:$0xff] }
  0x2f   : > { %265 = vst [vmem:[%s1326_s27 + $0x1c0] sm:$0xff] %v264_v57  ;;  %v270_v60 = vld [vmem:[%s1321_s26 + $0x658] sm:$0xff]  ;;  %267 = vst [vmem:[%s1326_s27 + $0x1c8] sm:$0xff] %v266_v58  ;;  %v272_v61 = vld [vmem:[%s1321_s26 + $0x660] sm:$0xff] }
  0x30   : > { %269 = vst [vmem:[%s1326_s27 + $0x1d0] sm:$0xff] %v268_v59  ;;  %271 = vst [vmem:[%s1326_s27 + $0x1d8] sm:$0xff] %v270_v60  ;;  %v274_v62 = vld [vmem:[%s1321_s26 + $0x668] sm:$0xff]  ;;  %v276_v63 = vld [vmem:[%s1321_s26 + $0x670] sm:$0xff] }
  0x31   : > { %273 = vst [vmem:[%s1326_s27 + $0x1e0] sm:$0xff] %v272_v61  ;;  %275 = vst [vmem:[%s1326_s27 + $0x1e8] sm:$0xff] %v274_v62  ;;  %v278_v0 = vld [vmem:[%s1321_s26 + $0x678] sm:$0xff] }
  0x32   : > { %277 = vst [vmem:[%s1326_s27 + $0x1f0] sm:$0xff] %v276_v63  ;;  %279 = vst [vmem:[%s1326_s27 + $0x1f8] sm:$0xff] %v278_v0 }
  0x33 PF: > { %p1163_p5 = scmp.ge.s32.totalorder %s1259_s16, 1  ;;  %p284_p6 = scmp.lt.s32.totalorder %s1259_s16, 5 }
  0x35   : > { %p285_p7 = pnand %p1163_p5, %p284_p6 }
  0x36   : > { %s291_s28 = sand.u32 (!%p285_p7), 1, %s1251_s14   ;;  %s1165_s6 = sshll.u32 (!%p285_p7), %s1156_s2, 4 }
  0x37   : > { %288 = sbr.rel (%p285_p7) target bundleno = 324 (0x144), region = 51  ;;  %s1164_s29 = sshll.u32 (!%p285_p7), %s291_s28, 9 }
  0x38   : > { %s1458_s30 = scalar_lea.vmem (!%p285_p7), [#allocation3], %s1164_s29  ;;  %p315_p8 = scmp.lt.s32.totalorder (!%p285_p7), %s1165_s6, 63 }
  0x3c   : > { %v1261_v1 = vmov 0.0   ;;  %v384_v2 = vld [vmem:[#allocation2] sm:$0x1]  ;;  %v1262_v3 = vmov 0   ;;  %v369_v4 = vld [vmem:[%s1458_s30 + $0x188] sm:$0xff]  ;;  %v368_v6 = vld [vmem:[%s1458_s30 + $0x180] sm:$0xff] }
  0x3d   : > { %462 = vmatprep.mubr.f32.mxu0 %v1261_v1  ;;  %533 = vmatprep.mubr.f32.mxu1 %v1261_v1  ;;  %v371_v5 = vld [vmem:[%s1458_s30 + $0x198] sm:$0xff]  ;;  %v370_v7 = vld [vmem:[%s1458_s30 + $0x190] sm:$0xff]  ;;  %v353_v8 = vld [vmem:[%s1458_s30 + $0x108] sm:$0xff]  ;;  %vm394_vm0 = vcmask 261120   ;;  %s1592_s6 = smov (!%p315_p8, %s1165_s6), 63 }
  0x3e   : > { %1204 = vset.pattern.permute.xlu0 %v1262_v3  ;;  %422 = vmatprep.subr.mxu0 %v369_v4  ;;  %v355_v9 = vld [vmem:[%s1458_s30 + $0x118] sm:$0xff]  ;;  %v352_v10 = vld [vmem:[%s1458_s30 + $0x100] sm:$0xff]  ;;  %v354_v11 = vld [vmem:[%s1458_s30 + $0x110] sm:$0xff]  ;;  %s317_s9 = scalar_lea.vmem %s1587_s3, %s1592_s6 }
  0x3f   : > { %387 = vperm.xlu0 %1204, %v384_v2   ;;  %493 = vmatprep.subr.mxu1 %v371_v5  ;;  %v337_v12 = vld [vmem:[%s1458_s30 + $0x88] sm:$0xff]  ;;  %v339_v13 = vld [vmem:[%s1458_s30 + $0x98] sm:$0xff]  ;;  %v336_v14 = vld [vmem:[%s1458_s30 + $0x80] sm:$0xff] }
  0x40   : > { %423 = vmatpush1.msra.mxu0 %v368_v6  ;;  %494 = vmatpush1.msra.mxu1 %v370_v7  ;;  %v338_v15 = vld [vmem:[%s1458_s30 + $0x90] sm:$0xff]  ;;  %v321_v16 = vld [vmem:[%s1458_s30 + $0x8] sm:$0xff]  ;;  %v323_v17 = vld [vmem:[%s1458_s30 + $0x18] sm:$0xff]  ;;  %v390_v6 = vlaneseq }
  0x41   : > { %424 = vmatprep.subr.mxu0 %v353_v8  ;;  %495 = vmatprep.subr.mxu1 %v355_v9  ;;  %v320_v18 = vld [vmem:[%s1458_s30] sm:$0xff]  ;;  %v322_v19 = vld [vmem:[%s1458_s30 + $0x10] sm:$0xff]  ;;  %v1479_v20 = vld [vmem:[%s1584_s0] sm:$0x1] }
  0x42   : > { %425 = vmatpush1.msra.mxu0 %v352_v10  ;;  %496 = vmatpush1.msra.mxu1 %v354_v11  ;;  %v373_v21 = vld [vmem:[%s1458_s30 + $0x1a8] sm:$0xff]  ;;  %v375_v22 = vld [vmem:[%s1458_s30 + $0x1b8] sm:$0xff]  ;;  %v372_v23 = vld [vmem:[%s1458_s30 + $0x1a0] sm:$0xff]  ;;  %v391_v7 = vshrl.u32 %v390_v6, 7 }
  0x43   : > { %426 = vmatprep.subr.mxu0 %v337_v12  ;;  %497 = vmatprep.subr.mxu1 %v339_v13  ;;  %v374_v24 = vld [vmem:[%s1458_s30 + $0x1b0] sm:$0xff]  ;;  %v357_v25 = vld [vmem:[%s1458_s30 + $0x128] sm:$0xff]  ;;  %v359_v26 = vld [vmem:[%s1458_s30 + $0x138] sm:$0xff] }
  0x44   : > { %427 = vmatpush1.msra.mxu0 %v336_v14  ;;  %498 = vmatpush1.msra.mxu1 %v338_v15  ;;  %v356_v27 = vld [vmem:[%s1458_s30 + $0x120] sm:$0xff]  ;;  %v358_v28 = vld [vmem:[%s1458_s30 + $0x130] sm:$0xff]  ;;  %v341_v29 = vld [vmem:[%s1458_s30 + $0xa8] sm:$0xff]  ;;  %v392_v8 = vsub.s32 0, %v391_v7 }
  0x45   : > { %428 = vmatprep.subr.mxu0 %v321_v16  ;;  %499 = vmatprep.subr.mxu1 %v323_v17  ;;  %v343_v30 = vld [vmem:[%s1458_s30 + $0xb8] sm:$0xff]  ;;  %v340_v31 = vld [vmem:[%s1458_s30 + $0xa0] sm:$0xff]  ;;  %v342_v32 = vld [vmem:[%s1458_s30 + $0xb0] sm:$0xff] }
  0x46   : > { %429 = vmatpush1.msra.mxu0 %v320_v18  ;;  %500 = vmatpush1.msra.mxu1 %v322_v19  ;;  %v325_v33 = vld [vmem:[%s1458_s30 + $0x28] sm:$0xff]  ;;  %v327_v34 = vld [vmem:[%s1458_s30 + $0x38] sm:$0xff]  ;;  %v324_v35 = vld [vmem:[%s1458_s30 + $0x20] sm:$0xff] }
  0x47   : > { %1166 = vmatmul.mubr.msk.f32.vlgmr.msra.gmra.mxu0 %vm394_vm0, %v1479_v20  ;;  %1167 = vmatmul.mubr.msk.f32.vlgmr.msra.gmra.mxu1 %vm394_vm0, %v1479_v20  ;;  %v326_v36 = vld [vmem:[%s1458_s30 + $0x30] sm:$0xff]  ;;  %v377_v37 = vld [vmem:[%s1458_s30 + $0x1c8] sm:$0xff]  ;;  %v379_v38 = vld [vmem:[%s1458_s30 + $0x1d8] sm:$0xff] }
  0x48   : > { %564 = vmatprep.subr.mxu0 %v373_v21  ;;  %635 = vmatprep.subr.mxu1 %v375_v22  ;;  %v376_v39 = vld [vmem:[%s1458_s30 + $0x1c0] sm:$0xff]  ;;  %v378_v40 = vld [vmem:[%s1458_s30 + $0x1d0] sm:$0xff]  ;;  %v361_v41 = vld [vmem:[%s1458_s30 + $0x148] sm:$0xff] }
  0x49   : > { %565 = vmatpush1.msra.mxu0 %v372_v23  ;;  %636 = vmatpush1.msra.mxu1 %v374_v24  ;;  %v363_v42 = vld [vmem:[%s1458_s30 + $0x158] sm:$0xff]  ;;  %v360_v43 = vld [vmem:[%s1458_s30 + $0x140] sm:$0xff]  ;;  %v362_v44 = vld [vmem:[%s1458_s30 + $0x150] sm:$0xff] }
  0x4a   : > { %566 = vmatprep.subr.mxu0 %v357_v25  ;;  %637 = vmatprep.subr.mxu1 %v359_v26  ;;  %v345_v45 = vld [vmem:[%s1458_s30 + $0xc8] sm:$0xff]  ;;  %v347_v46 = vld [vmem:[%s1458_s30 + $0xd8] sm:$0xff]  ;;  %v344_v47 = vld [vmem:[%s1458_s30 + $0xc0] sm:$0xff]  ;;  %v1263_v26 = vmov 1966171168  }
  0x4b   : > { %567 = vmatpush1.msra.mxu0 %v356_v27  ;;  %638 = vmatpush1.msra.mxu1 %v358_v28  ;;  %v346_v48 = vld [vmem:[%s1458_s30 + $0xd0] sm:$0xff]  ;;  %v329_v49 = vld [vmem:[%s1458_s30 + $0x48] sm:$0xff]  ;;  %v331_v50 = vld [vmem:[%s1458_s30 + $0x58] sm:$0xff]  ;;  %v1003_v27 = vunpack.c.l.s4 %v1263_v26 }
  0x4c   : > { %568 = vmatprep.subr.mxu0 %v341_v29  ;;  %639 = vmatprep.subr.mxu1 %v343_v30  ;;  %v328_v51 = vld [vmem:[%s1458_s30 + $0x40] sm:$0xff]  ;;  %v330_v52 = vld [vmem:[%s1458_s30 + $0x50] sm:$0xff]  ;;  %v381_v53 = vld [vmem:[%s1458_s30 + $0x1e8] sm:$0xff] }
  0x4d   : > { %569 = vmatpush1.msra.mxu0 %v340_v31  ;;  %640 = vmatpush1.msra.mxu1 %v342_v32  ;;  %v383_v54 = vld [vmem:[%s1458_s30 + $0x1f8] sm:$0xff]  ;;  %v380_v55 = vld [vmem:[%s1458_s30 + $0x1e0] sm:$0xff]  ;;  %v382_v56 = vld [vmem:[%s1458_s30 + $0x1f0] sm:$0xff]  ;;  %v1004_v31 = vunpack.c.0.s8 %v1003_v27 }
  0x4e   : > { %570 = vmatprep.subr.mxu0 %v325_v33  ;;  %641 = vmatprep.subr.mxu1 %v327_v34  ;;  %v365_v57 = vld [vmem:[%s1458_s30 + $0x168] sm:$0xff]  ;;  %v367_v58 = vld [vmem:[%s1458_s30 + $0x178] sm:$0xff]  ;;  %v364_v59 = vld [vmem:[%s1458_s30 + $0x160] sm:$0xff] }
  0x4f   : > { %571 = vmatpush1.msra.mxu0 %v324_v35  ;;  %604 = vmatprep.mubr.f32.mxu0 %v1261_v1  ;;  %v366_v60 = vld [vmem:[%s1458_s30 + $0x170] sm:$0xff]  ;;  %v349_v61 = vld [vmem:[%s1458_s30 + $0xe8] sm:$0xff]  ;;  %v351_v62 = vld [vmem:[%s1458_s30 + $0xf8] sm:$0xff] }
  0x50   : > { %642 = vmatpush1.msra.mxu1 %v326_v36  ;;  %675 = vmatprep.mubr.f32.mxu1 %v1261_v1  ;;  %v348_v63 = vld [vmem:[%s1458_s30 + $0xe0] sm:$0xff]  ;;  %v350_v0 = vld [vmem:[%s1458_s30 + $0xf0] sm:$0xff]  ;;  %v333_v2 = vld [vmem:[%s1458_s30 + $0x68] sm:$0xff] }
  0x51   : > { %1168 = vmatmul.mubr.msk.f32.vlgmr.msra.gmra.mxu0 %vm394_vm0, %v1479_v20  ;;  %1169 = vmatmul.mubr.msk.f32.vlgmr.msra.gmra.mxu1 %vm394_vm0, %v1479_v20  ;;  %v335_v3 = vld [vmem:[%s1458_s30 + $0x78] sm:$0xff]  ;;  %v332_v4 = vld [vmem:[%s1458_s30 + $0x60] sm:$0xff]  ;;  %v334_v5 = vld [vmem:[%s1458_s30 + $0x70] sm:$0xff] }
  0x52   : > { %706 = vmatprep.subr.mxu0 %v377_v37  ;;  %777 = vmatprep.subr.mxu1 %v379_v38 }
  0x53   : > { %707 = vmatpush1.msra.mxu0 %v376_v39  ;;  %778 = vmatpush1.msra.mxu1 %v378_v40  ;;  %v1007_v40 = vsub.s32 %v1004_v31, %v391_v7 }
  0x54   : > { %708 = vmatprep.subr.mxu0 %v361_v41  ;;  %779 = vmatprep.subr.mxu1 %v363_v42 }
  0x55   : > { %709 = vmatpush1.msra.mxu0 %v360_v43  ;;  %780 = vmatpush1.msra.mxu1 %v362_v44 }
  0x56   : > { %710 = vmatprep.subr.mxu0 %v345_v45  ;;  %781 = vmatprep.subr.mxu1 %v347_v46 }
  0x57   : > { %711 = vmatpush1.msra.mxu0 %v344_v47  ;;  %782 = vmatpush1.msra.mxu1 %v346_v48 }
  0x58   : > { %712 = vmatprep.subr.mxu0 %v329_v49  ;;  %783 = vmatprep.subr.mxu1 %v331_v50 }
  0x59   : > { %713 = vmatpush1.msra.mxu0 %v328_v51  ;;  %746 = vmatprep.mubr.f32.mxu0 %v1261_v1 }
  0x5a   : > { %784 = vmatpush1.msra.mxu1 %v330_v52  ;;  %817 = vmatprep.mubr.f32.mxu1 %v1261_v1 }
  0x5b   : > { %1170 = vmatmul.mubr.msk.f32.vlgmr.msra.gmra.mxu0 %vm394_vm0, %v1479_v20  ;;  %1171 = vmatmul.mubr.msk.f32.vlgmr.msra.gmra.mxu1 %vm394_vm0, %v1479_v20 }
  0x5c   : > { %848 = vmatprep.subr.mxu0 %v381_v53  ;;  %919 = vmatprep.subr.mxu1 %v383_v54 }
  0x5d   : > { %849 = vmatpush1.msra.mxu0 %v380_v55  ;;  %920 = vmatpush1.msra.mxu1 %v382_v56 }
  0x5e   : > { %850 = vmatprep.subr.mxu0 %v365_v57  ;;  %921 = vmatprep.subr.mxu1 %v367_v58 }
  0x5f   : > { %851 = vmatpush1.msra.mxu0 %v364_v59  ;;  %922 = vmatpush1.msra.mxu1 %v366_v60 }
  0x60   : > { %852 = vmatprep.subr.mxu0 %v349_v61  ;;  %923 = vmatprep.subr.mxu1 %v351_v62 }
  0x61   : > { %853 = vmatpush1.msra.mxu0 %v348_v63  ;;  %924 = vmatpush1.msra.mxu1 %v350_v0 }
  0x62   : > { %854 = vmatprep.subr.mxu0 %v333_v2  ;;  %925 = vmatprep.subr.mxu1 %v335_v3 }
  0x63   : > { %855 = vmatpush1.msra.mxu0 %v332_v4  ;;  %888 = vmatprep.mubr.f32.mxu0 %v1261_v1 }
  0x64   : > { %926 = vmatpush1.msra.mxu1 %v334_v5  ;;  %959 = vmatprep.mubr.f32.mxu1 %v1261_v1 }
  0x65   : > { %1172 = vmatmul.mubr.msk.f32.vlgmr.msra.gmra.mxu0 %vm394_vm0, %v1479_v20  ;;  %1173 = vmatmul.mubr.msk.f32.vlgmr.msra.gmra.mxu1 %vm394_vm0, %v1479_v20 }
  0xba   : > { %v388_v9 = vpop.permute.xlu0 %387 }
  0xbb   : > { %v1551_v10 = vrot.slane %v388_v9, %v392_v8 }
 0x107   : > { %v464_v11 = vpop.f32.mrf.mxu0  ;;  %v535_v12 = vpop.f32.mrf.mxu1 }
 0x108   : > { %v465_v13 = vadd.f32 %v464_v11, %v1551_v10  ;;  %v536_v14 = vadd.f32 %v535_v12, %v1551_v10 }
 0x109   : > { %v466_v15 = vpop.f32.mrf.mxu0  ;;  %v537_v1 = vpop.f32.mrf.mxu1 }
 0x10a   : > { %v467_v16 = vadd.f32 %v466_v15, %v1551_v10  ;;  %v538_v17 = vadd.f32 %v537_v1, %v1551_v10  ;;  %1205 = vtanh.f32 %v465_v13 }
 0x10b   : > { %1207 = vtanh.f32 %v536_v14 }
 0x10c   : > { %1209 = vtanh.f32 %v467_v16 }
 0x10d   : > { %1211 = vtanh.f32 %v538_v17 }
 0x111   : > { %v606_v18 = vpop.f32.mrf.mxu0  ;;  %v677_v19 = vpop.f32.mrf.mxu1 }
 0x112   : > { %v607_v20 = vadd.f32 %v606_v18, %v1551_v10  ;;  %v678_v21 = vadd.f32 %v677_v19, %v1551_v10 }
 0x113   : > { %v608_v22 = vpop.f32.mrf.mxu0  ;;  %v679_v23 = vpop.f32.mrf.mxu1 }
 0x114   : > { %1213 = vtanh.f32 %v607_v20  ;;  %v609_v24 = vadd.f32 %v608_v22, %v1551_v10  ;;  %v680_v25 = vadd.f32 %v679_v23, %v1551_v10 }
 0x115   : > { %1215 = vtanh.f32 %v678_v21 }
 0x116   : > { %1217 = vtanh.f32 %v609_v24 }
 0x117   : > { %1219 = vtanh.f32 %v680_v25  ;;  %v1206_v28 = vpop.eup %1205 }
 0x118   : > { %v1208_v29 = vpop.eup %1207 }
 0x119   : > { %v1210_v30 = vpop.eup %1209 }
 0x11a   : > { %v1212_v34 = vpop.eup %1211  ;;  %v998_v41 = vcombine.low %v1206_v28, %v1210_v30 }
 0x11b   : > { %v748_v32 = vpop.f32.mrf.mxu0  ;;  %v819_v33 = vpop.f32.mrf.mxu1  ;;  %v999_v42 = vcombine.low %v1208_v29, %v1212_v34 }
 0x11c   : > { %v749_v35 = vadd.f32 %v748_v32, %v1551_v10  ;;  %v820_v36 = vadd.f32 %v819_v33, %v1551_v10  ;;  %v1008_v47 = vrot.slane %v998_v41, %v1007_v40 }
 0x11d   : > { %v750_v37 = vpop.f32.mrf.mxu0  ;;  %v821_v38 = vpop.f32.mrf.mxu1  ;;  %v1015_v48 = vrot.slane %v999_v42, %v1007_v40 }
 0x11e   : > { %v751_v39 = vadd.f32 %v750_v37, %v1551_v10  ;;  %v822_v43 = vadd.f32 %v821_v38, %v1551_v10  ;;  %1221 = vtanh.f32 %v749_v35 }
 0x11f   : > { %1223 = vtanh.f32 %v820_v36  ;;  %v1030_v57 = vcombine.low %v1008_v47, %v1015_v48 }
 0x120   : > { %1225 = vtanh.f32 %v751_v39 }
 0x121   : > { %v1214_v44 = vpop.eup %1213  ;;  %1227 = vtanh.f32 %v822_v43  ;;  %v1038_v0 = vrot.slane %v1030_v57, %v1007_v40 }
 0x122   : > { %v1216_v45 = vpop.eup %1215 }
 0x123   : > { %v1218_v46 = vpop.eup %1217 }
 0x124   : > { %v1220_v49 = vpop.eup %1219  ;;  %v1000_v50 = vcombine.low %v1214_v44, %v1218_v46 }
 0x125   : > { %v1001_v51 = vcombine.low %v1216_v45, %v1220_v49  ;;  %v890_v52 = vpop.f32.mrf.mxu0  ;;  %v961_v53 = vpop.f32.mrf.mxu1 }
 0x126   : > { %v1022_v54 = vrot.slane %v1000_v50, %v1007_v40  ;;  %v891_v55 = vadd.f32 %v890_v52, %v1551_v10  ;;  %v962_v56 = vadd.f32 %v961_v53, %v1551_v10 }
 0x127   : > { %v1029_v58 = vrot.slane %v1001_v51, %v1007_v40  ;;  %v892_v59 = vpop.f32.mrf.mxu0  ;;  %v963_v60 = vpop.f32.mrf.mxu1 }
 0x128   : > { %1229 = vtanh.f32 %v891_v55  ;;  %v893_v61 = vadd.f32 %v892_v59, %v1551_v10  ;;  %v964_v62 = vadd.f32 %v963_v60, %v1551_v10 }
 0x129   : > { %v1031_v63 = vcombine.low %v1022_v54, %v1029_v58  ;;  %1231 = vtanh.f32 %v962_v56 }
 0x12a   : > { %1233 = vtanh.f32 %v893_v61 }
 0x12b   : > { %v1045_v2 = vrot.slane %v1031_v63, %v1007_v40  ;;  %1235 = vtanh.f32 %v964_v62  ;;  %v1222_v3 = vpop.eup %1221 }
 0x12c   : > { %v1224_v5 = vpop.eup %1223 }
 0x12d   : > { %v1046_v4 = vcombine.low %v1038_v0, %v1045_v2  ;;  %v1226_v6 = vpop.eup %1225 }
 0x12e   : > { %v1228_v7 = vpop.eup %1227  ;;  %v1047_v8 = vcombine.low %v1222_v3, %v1226_v6 }
 0x12f   : > { %1098 = vst [vmem:[%s317_s9] sm:$0xff] %v1046_v4  ;;  %v1048_v9 = vcombine.low %v1224_v5, %v1228_v7 }
 0x130   : > { %v1057_v13 = vrot.slane %v1047_v8, %v1007_v40 }
 0x131   : > { %v1064_v14 = vrot.slane %v1048_v9, %v1007_v40 }
 0x133   : > { %v1079_v18 = vcombine.low %v1057_v13, %v1064_v14 }
 0x135   : > { %v1230_v11 = vpop.eup %1229  ;;  %v1087_v21 = vrot.slane %v1079_v18, %v1007_v40 }
 0x136   : > { %v1232_v10 = vpop.eup %1231 }
 0x137   : > { %v1234_v12 = vpop.eup %1233 }
 0x138   : > { %v1236_v15 = vpop.eup %1235  ;;  %v1049_v1 = vcombine.low %v1230_v11, %v1234_v12 }
 0x139   : > { %v1050_v16 = vcombine.low %v1232_v10, %v1236_v15 }
 0x13a   : > { %v1071_v17 = vrot.slane %v1049_v1, %v1007_v40 }
 0x13b   : > { %v1078_v19 = vrot.slane %v1050_v16, %v1007_v40 }
 0x13d   : > { %v1080_v20 = vcombine.low %v1071_v17, %v1078_v19 }
 0x13f   : > { %v1094_v22 = vrot.slane %v1080_v20, %v1007_v40 }
 0x141   : > { %v1095_v23 = vcombine.low %v1087_v21, %v1094_v22 }
 0x143   : > { %1099 = vst [vmem:[%s317_s9 + $0x8] sm:$0xff] %v1095_v23 }
 0x144 PF: > { %p12_p9 = scmp.ge.s32.totalorder %s1304_s17, 6   ;;  %s1588_s14 = smov %s1255_s15 }
 0x145   : > { %s1589_s15 = smov %s1313_s20  ;;  %s1590_s16 = smov %s1304_s17 }
 0x146   :  { %14 = sbr.rel (!%p12_p9) target bundleno = 5 (0x5), region = 90 }

</bundles_post_ra>
